<compile_context>
chip_gen: v5e
topology: v5e:2x2
jax: 0.10.0
libtpu: 0.0.40
codegen_flags: <defaults>
</compile_context>

<pallas_src>
import jax
import jax.numpy as jnp
import numpy as np
from jax.experimental import pallas as pl
from jax.experimental.pallas import tpu as pltpu


# ----------------------------- tiling helper ---------------------------------

def _pick_tile(m, cap=512):
    """Largest power-of-two row tile <= cap dividing m (falls back to m, which
    is always legal because a block equal to the full dim is allowed)."""
    for t in (1024, 512, 256, 128, 64, 32, 16, 8):
        if t <= cap and m % t == 0:
            return t
    return m


# ------------------------------ Pallas kernels --------------------------------

def _mm_stats_kernel(a_ref, w_ref, y_ref, sum_ref, sq_ref):
    """y = a @ w (bf16 x bf16 -> f32 on the MXU) with fused per-column
    sum / sum-of-squares accumulation (BatchNorm batch statistics)."""
    y = jnp.dot(a_ref[...], w_ref[...], preferred_element_type=jnp.float32)
    y_ref[...] = y.astype(y_ref.dtype)

    @pl.when(pl.program_id(0) == 0)
    def _():
        sum_ref[...] = jnp.zeros_like(sum_ref)
        sq_ref[...] = jnp.zeros_like(sq_ref)

    sum_ref[...] += jnp.sum(y, axis=0, keepdims=True)
    sq_ref[...] += jnp.sum(y * y, axis=0, keepdims=True)


def _mm_tanh_kernel(a_ref, w_ref, y_ref):
    """Final layer: y = tanh(a @ w); tanh fused into the matmul epilogue."""
    y = jnp.dot(a_ref[...], w_ref[...], preferred_element_type=jnp.float32)
    y_ref[...] = jnp.tanh(y)


def _scale_shift_relu_kernel(x_ref, s_ref, b_ref, o_ref):
    """BatchNorm (precomputed per-column scale/shift) + ReLU, elementwise."""
    y = x_ref[...].astype(jnp.float32) * s_ref[...] + b_ref[...]
    o_ref[...] = jnp.maximum(y, 0.0).astype(o_ref.dtype)


# ----------------------------- kernel wrappers --------------------------------

def matmul_with_stats(a, w, tm_cap=256):
    M, K = a.shape
    _, N = w.shape
    tm = _pick_tile(M, tm_cap)
    return pl.pallas_call(
        _mm_stats_kernel,
        grid=(M // tm,),
        in_specs=[pl.BlockSpec((tm, K), lambda m: (m, 0)),
                  pl.BlockSpec((K, N), lambda m: (0, 0))],
        out_specs=(pl.BlockSpec((tm, N), lambda m: (m, 0)),
                   pl.BlockSpec((1, N), lambda m: (0, 0)),
                   pl.BlockSpec((1, N), lambda m: (0, 0))),
        out_shape=(jax.ShapeDtypeStruct((M, N), jnp.bfloat16),
                   jax.ShapeDtypeStruct((1, N), jnp.float32),
                   jax.ShapeDtypeStruct((1, N), jnp.float32)),
        compiler_params=pltpu.CompilerParams(
            dimension_semantics=("arbitrary",)),  # stats accumulate across M tiles
    )(a, w)


def matmul_tanh(a, w, tm_cap=256):
    M, K = a.shape
    _, N = w.shape
    tm = _pick_tile(M, tm_cap)
    return pl.pallas_call(
        _mm_tanh_kernel,
        grid=(M // tm,),
        in_specs=[pl.BlockSpec((tm, K), lambda m: (m, 0)),
                  pl.BlockSpec((K, N), lambda m: (0, 0))],
        out_specs=pl.BlockSpec((tm, N), lambda m: (m, 0)),
        out_shape=jax.ShapeDtypeStruct((M, N), jnp.float32),
        compiler_params=pltpu.CompilerParams(
            dimension_semantics=("parallel",)),
    )(a, w)


def scale_shift_relu(x, scale_cols, shift_cols, tm_cap=512):
    M, N = x.shape
    tm = _pick_tile(M, tm_cap)
    return pl.pallas_call(
        _scale_shift_relu_kernel,
        grid=(M // tm,),
        in_specs=[pl.BlockSpec((tm, N), lambda m: (m, 0)),
                  pl.BlockSpec((1, N), lambda m: (0, 0)),
                  pl.BlockSpec((1, N), lambda m: (0, 0))],
        out_specs=pl.BlockSpec((tm, N), lambda m: (m, 0)),
        out_shape=jax.ShapeDtypeStruct((M, N), jnp.bfloat16),
        compiler_params=pltpu.CompilerParams(
            dimension_semantics=("parallel",)),
    )(x, scale_cols, shift_cols)


# --------------- ConvTranspose2d lowering (packing / gather glue) -------------

# For ConvT(k=4, s=2, p=1): output pixel (2i + r) pulls from padded-input row
# (i + sh) with kernel tap kh = _TAP[(r, sh)]; unused (r, sh) combos are zero.
_TAP = {(0, 0): 3, (0, 1): 1, (0, 2): None,
        (1, 0): None, (1, 1): 2, (1, 2): 0}


def pack_w_s2(w):
    """PyTorch ConvT weight (Cin, Cout, 4, 4) -> (9*Cin, 4*Cout) bf16.
    K axis ordered (shift_h, shift_w, cin), N axis ordered (par_h, par_w, cout)."""
    w = np.asarray(w, np.float32)
    cin, cout = w.shape[0], w.shape[1]
    wp = np.zeros((3, 3, cin, 2, 2, cout), np.float32)
    for ri in (0, 1):
        for sh in (0, 1, 2):
            kh = _TAP[(ri, sh)]
            if kh is None:
                continue
            for rj in (0, 1):
                for sw in (0, 1, 2):
                    kw = _TAP[(rj, sw)]
                    if kw is None:
                        continue
                    wp[sh, sw, :, ri, rj, :] = w[:, :, kh, kw]
    return jnp.asarray(wp.reshape(9 * cin, 4 * cout), jnp.bfloat16)


def pack_w_first(w):
    """First ConvT (1x1 input, k=4 s=1 p=0): (L, Cout, 4, 4) -> (L, 16*Cout),
    column order (kh, kw, cout) so the matmul output reshapes to NHWC (B,4,4,C)."""
    w = np.asarray(w, np.float32)
    L, cout = w.shape[0], w.shape[1]
    return jnp.asarray(np.transpose(w, (0, 2, 3, 1)).reshape(L, 16 * cout),
                       jnp.bfloat16)


def im2col_s2(x):
    """(B, H, W, C) NHWC -> (B*H*W, 9*C): the 3x3 shifted views of the 1-padded
    activation, concatenated on the channel axis (order matches pack_w_s2)."""
    # TODO(synk): this gather is still an XLA pad+concat; it could move inside
    # the matmul kernel (halo-block manual DMA via memory_space=pl.ANY) to cut
    # another ~3-5x of HBM traffic.
    B, H, W, C = x.shape
    xp = jnp.pad(x, ((0, 0), (1, 1), (1, 1), (0, 0)))
    cols = [xp[:, sh:sh + H, sw:sw + W, :] for sh in range(3) for sw in range(3)]
    return jnp.concatenate(cols, axis=-1).reshape(B * H * W, 9 * C)


def parity_to_nhwc(y, B, H, W, cout):
    """(B*H*W, 4*Cout) with N ordered (ri, rj, cout) -> (B, 2H, 2W, Cout)."""
    y = y.reshape(B, H, W, 2, 2, cout)
    y = jnp.transpose(y, (0, 1, 3, 2, 4, 5))
    return y.reshape(B, 2 * H, 2 * W, cout)


def bn_relu_from_stats(y, col_sum, col_sq, gamma, beta, groups):
    """Fold BatchNorm2d (training batch stats, biased var, eps=1e-5) + ReLU.
    y: (M, groups*C); col_sum/col_sq are the per-column sums produced by the
    matmul kernel; the O(C)-sized stat folding runs in XLA, the full-tensor
    normalize+ReLU runs in the Pallas elementwise kernel."""
    C = gamma.shape[0]
    M = y.shape[0]
    n = float(M * groups)
    s = col_sum.reshape(groups, C).sum(axis=0)
    q = col_sq.reshape(groups, C).sum(axis=0)
    mean = s / n
    var = q / n - mean * mean
    scale = gamma / jnp.sqrt(var + 1e-5)
    shift = beta - mean * scale
    scale_cols = jnp.tile(scale, groups).reshape(1, groups * C)
    shift_cols = jnp.tile(shift, groups).reshape(1, groups * C)
    return scale_shift_relu(y, scale_cols, shift_cols)


# -------------------------------- full decoder --------------------------------

def lsun_decoder_forward(z, p):
    """z: (B, latent) -> (B, num_chanel, 64, 64), matching LSUNDecoder.forward."""
    B = z.shape[0]

    # layer 1: ConvT(latent -> 8h, k4 s1 p0) on a 1x1 input == a single matmul
    c1 = p["g1"].shape[0]
    y, s, q = matmul_with_stats(z.astype(jnp.bfloat16), p["w1p"])
    x = bn_relu_from_stats(y, s, q, p["g1"], p["b1"], groups=16)
    x = x.reshape(B, 4, 4, c1)                        # NHWC, free reshape

    # layers 2-4: ConvT(k4 s2 p1) -> BN -> ReLU, one matmul kernel per layer
    for i in (2, 3, 4):
        Bn, H, W, _ = x.shape
        cout = p[f"g{i}"].shape[0]
        a = im2col_s2(x)
        y, s, q = matmul_with_stats(a, p[f"w{i}p"])
        y = bn_relu_from_stats(y, s, q, p[f"g{i}"], p[f"b{i}"], groups=4)
        x = parity_to_nhwc(y, Bn, H, W, cout)

    # layer 5: ConvT(k4 s2 p1) with Tanh fused into the matmul epilogue
    Bn, H, W, _ = x.shape
    cout = p["w5p"].shape[1] // 4
    y = matmul_tanh(im2col_s2(x), p["w5p"])
    x = parity_to_nhwc(y, Bn, H, W, cout)             # (B, 2H, 2W, C), f32
    return jnp.transpose(x, (0, 3, 1, 2))             # NCHW, like PyTorch


def init_params(key, latent, num_chanel, h):
    ks = jax.random.split(key, 13)

    def rw(k, cin, cout):
        return (0.05 * jax.random.normal(k, (cin, cout, 4, 4))).astype(jnp.float32)

    chans = (8 * h, 4 * h, 2 * h, h)
    p = {
        "w1": rw(ks[0], latent, chans[0]),
        "w2": rw(ks[1], chans[0], chans[1]),
        "w3": rw(ks[2], chans[1], chans[2]),
        "w4": rw(ks[3], chans[2], chans[3]),
        "w5": rw(ks[4], chans[3], num_chanel),
    }
    # pre-packed bf16 matmul weights (built once, outside jit)
    p["w1p"] = pack_w_first(p["w1"])
    for i in (2, 3, 4, 5):
        p[f"w{i}p"] = pack_w_s2(p[f"w{i}"])
    # BatchNorm affine params (slightly randomized to exercise the full path)
    for i, c in enumerate(chans, start=1):
        p[f"g{i}"] = (1.0 + 0.1 * jax.random.normal(ks[3 + 2 * i], (c,))).astype(jnp.float32)
        p[f"b{i}"] = (0.1 * jax.random.normal(ks[4 + 2 * i], (c,))).astype(jnp.float32)
    return p


# ----------------------------- pure-JAX reference ------------------------------

def _ref_deconv(x, w, stride, padding):
    k = w.shape[2]
    w_oihw = jnp.transpose(w[:, :, ::-1, ::-1], (1, 0, 2, 3))
    pad = k - 1 - padding
    return jax.lax.conv_general_dilated(
        x, w_oihw, window_strides=(1, 1), padding=[(pad, pad), (pad, pad)],
        lhs_dilation=(stride, stride),
        dimension_numbers=("NCHW", "OIHW", "NCHW"),
        precision=jax.lax.Precision.HIGHEST)


def _ref_bn_relu(x, g, b):
    mean = x.mean(axis=(0, 2, 3), keepdims=True)
    var = ((x - mean) ** 2).mean(axis=(0, 2, 3), keepdims=True)
    y = (x - mean) / jnp.sqrt(var + 1e-5) * g.reshape(1, -1, 1, 1) + b.reshape(1, -1, 1, 1)
    return jnp.maximum(y, 0.0)


def ref_forward(z, p):
    x = z.reshape(z.shape[0], -1, 1, 1)
    x = _ref_bn_relu(_ref_deconv(x, p["w1"], 1, 0), p["g1"], p["b1"])
    x = _ref_bn_relu(_ref_deconv(x, p["w2"], 2, 1), p["g2"], p["b2"])
    x = _ref_bn_relu(_ref_deconv(x, p["w3"], 2, 1), p["g3"], p["b3"])
    x = _ref_bn_relu(_ref_deconv(x, p["w4"], 2, 1), p["g4"], p["b4"])
    return jnp.tanh(_ref_deconv(x, p["w5"], 2, 1))


# ------------------------------------ main -------------------------------------

if __name__ == "__main__":
    B, LATENT, NUM_CHANEL, HIDDEN = 2, 16, 3, 8   # small shapes for the demo
    key = jax.random.PRNGKey(0)
    kz, kp = jax.random.split(key)
    z = jax.random.normal(kz, (B, LATENT), dtype=jnp.float32)
    params = init_params(kp, LATENT, NUM_CHANEL, HIDDEN)

    fwd = jax.jit(lsun_decoder_forward)
    out = jax.block_until_ready(fwd(z, params))
    assert out.shape == (B, NUM_CHANEL, 64, 64), out.shape

    ref = jax.block_until_ready(jax.jit(ref_forward)(z, params))
    # bf16 matmul inputs / bf16 inter-layer activations vs. an f32 HIGHEST-
    # precision reference: 2e-2 absorbs the bf16 rounding through 5 layers.
    np.testing.assert_allclose(np.asarray(out, np.float32), np.asarray(ref),
                               rtol=2e-2, atol=2e-2)
    print("KERNEL_OK")
</pallas_src>

<mosaic_0001>
module attributes {stable_mosaic.version = 11 : i64} {
  func.func @_mm_stats_kernel(%arg0: i32, %arg1: memref<2x16xbf16, #tpu.memory_space<vmem>>, %arg2: memref<16x1024xbf16, #tpu.memory_space<vmem>>, %arg3: memref<2x1024xbf16, #tpu.memory_space<vmem>>, %arg4: memref<1x1024xf32, #tpu.memory_space<vmem>>, %arg5: memref<1x1024xf32, #tpu.memory_space<vmem>>) attributes {dimension_semantics = [#tpu.dimension_semantics<arbitrary>], iteration_bounds = array<i64: 1>, scalar_prefetch = 0 : i64, scratch_operands = 0 : i64, tpu.core_type = #tpu.core_type<tc>, window_params = [{transform_indices = @transform_0, window_bounds = array<i64: 2, 16>}, {pipeline_mode = #tpu.pipeline_mode<synchronous>, transform_indices = @transform_1, window_bounds = array<i64: 16, 1024>}, {transform_indices = @transform_2, window_bounds = array<i64: 2, 1024>}, {pipeline_mode = #tpu.pipeline_mode<synchronous>, transform_indices = @transform_3, window_bounds = array<i64: 1, 1024>}, {pipeline_mode = #tpu.pipeline_mode<synchronous>, transform_indices = @transform_4, window_bounds = array<i64: 1, 1024>}]} {
    %c0 = arith.constant 0 : index
    %c0_0 = arith.constant 0 : index
    %0 = vector.load %arg1[%c0, %c0_0] : memref<2x16xbf16, #tpu.memory_space<vmem>>, vector<2x16xbf16>
    %c0_1 = arith.constant 0 : index
    %c0_2 = arith.constant 0 : index
    %1 = vector.load %arg2[%c0_1, %c0_2] : memref<16x1024xbf16, #tpu.memory_space<vmem>>, vector<16x1024xbf16>
    %cst = arith.constant dense<0.000000e+00> : vector<2x1024xf32>
    %2 = tpu.matmul %0, %1, %cst {dimension_numbers = #tpu.dot_dimension_numbers<[1], [0], [0], [1], [0, 0, 1, 1], [], []>} : vector<2x16xbf16>, vector<16x1024xbf16>, vector<2x1024xf32> -> vector<2x1024xf32>
    %3 = arith.truncf %2 : vector<2x1024xf32> to vector<2x1024xbf16>
    %c0_3 = arith.constant 0 : index
    %c0_4 = arith.constant 0 : index
    %4 = vector.load %arg3[%c0_3, %c0_4] : memref<2x1024xbf16, #tpu.memory_space<vmem>>, vector<2x1024xbf16>
    tpu.vector_store %arg3[%c0_3, %c0_4], %3 {strides = array<i32>} : memref<2x1024xbf16, #tpu.memory_space<vmem>>, vector<2x1024xbf16>,
    %c0_i32 = arith.constant 0 : i32
    %5 = arith.cmpi eq, %arg0, %c0_i32 : i32
    %6 = arith.extui %5 : i1 to i32
    %c0_i32_5 = arith.constant 0 : i32
    %7 = arith.cmpi ne, %6, %c0_i32_5 : i32
    scf.if %7 {
      %cst_16 = arith.constant 0.000000e+00 : f32
      %19 = vector.broadcast %cst_16 : f32 to vector<1x1024xf32>
      %c0_17 = arith.constant 0 : index
      %c0_18 = arith.constant 0 : index
      %20 = vector.load %arg4[%c0_17, %c0_18] : memref<1x1024xf32, #tpu.memory_space<vmem>>, vector<1x1024xf32>
      tpu.vector_store %arg4[%c0_17, %c0_18], %19 {strides = array<i32>} : memref<1x1024xf32, #tpu.memory_space<vmem>>, vector<1x1024xf32>,
      %cst_19 = arith.constant 0.000000e+00 : f32
      %21 = vector.broadcast %cst_19 : f32 to vector<1x1024xf32>
      %c0_20 = arith.constant 0 : index
      %c0_21 = arith.constant 0 : index
      %22 = vector.load %arg5[%c0_20, %c0_21] : memref<1x1024xf32, #tpu.memory_space<vmem>>, vector<1x1024xf32>
      tpu.vector_store %arg5[%c0_20, %c0_21], %21 {strides = array<i32>} : memref<1x1024xf32, #tpu.memory_space<vmem>>, vector<1x1024xf32>,
    } else {
    }
    %c0_6 = arith.constant 0 : index
    %c0_7 = arith.constant 0 : index
    %8 = vector.load %arg4[%c0_6, %c0_7] : memref<1x1024xf32, #tpu.memory_space<vmem>>, vector<1x1024xf32>
    %cst_8 = arith.constant dense<0.000000e+00> : vector<1024xf32>
    %9 = vector.multi_reduction <add>, %2, %cst_8 [0] : vector<2x1024xf32> to vector<1024xf32>
    %10 = vector.shape_cast %9 : vector<1024xf32> to vector<1x1024xf32>
    %11 = arith.addf %8, %10 : vector<1x1024xf32>
    %c0_9 = arith.constant 0 : index
    %c0_10 = arith.constant 0 : index
    %12 = vector.load %arg4[%c0_9, %c0_10] : memref<1x1024xf32, #tpu.memory_space<vmem>>, vector<1x1024xf32>
    tpu.vector_store %arg4[%c0_9, %c0_10], %11 {strides = array<i32>} : memref<1x1024xf32, #tpu.memory_space<vmem>>, vector<1x1024xf32>,
    %c0_11 = arith.constant 0 : index
    %c0_12 = arith.constant 0 : index
    %13 = vector.load %arg5[%c0_11, %c0_12] : memref<1x1024xf32, #tpu.memory_space<vmem>>, vector<1x1024xf32>
    %14 = arith.mulf %2, %2 : vector<2x1024xf32>
    %cst_13 = arith.constant dense<0.000000e+00> : vector<1024xf32>
    %15 = vector.multi_reduction <add>, %14, %cst_13 [0] : vector<2x1024xf32> to vector<1024xf32>
    %16 = vector.shape_cast %15 : vector<1024xf32> to vector<1x1024xf32>
    %17 = arith.addf %13, %16 : vector<1x1024xf32>
    %c0_14 = arith.constant 0 : index
    %c0_15 = arith.constant 0 : index
    %18 = vector.load %arg5[%c0_14, %c0_15] : memref<1x1024xf32, #tpu.memory_space<vmem>>, vector<1x1024xf32>
    tpu.vector_store %arg5[%c0_14, %c0_15], %17 {strides = array<i32>} : memref<1x1024xf32, #tpu.memory_space<vmem>>, vector<1x1024xf32>,
    return
  }
  func.func @transform_0(%arg0: i32) -> (i32, i32) {
    %c0_i32 = arith.constant 0 : i32
    %c0_i32_0 = arith.constant 0 : i32
    return %arg0, %c0_i32 : i32, i32
  }
  func.func @transform_1(%arg0: i32) -> (i32, i32) {
    %c0_i32 = arith.constant 0 : i32
    %c0_i32_0 = arith.constant 0 : i32
    %c0_i32_1 = arith.constant 0 : i32
    return %c0_i32, %c0_i32_0 : i32, i32
  }
  func.func @transform_2(%arg0: i32) -> (i32, i32) {
    %c0_i32 = arith.constant 0 : i32
    %c0_i32_0 = arith.constant 0 : i32
    return %arg0, %c0_i32 : i32, i32
  }
  func.func @transform_3(%arg0: i32) -> (i32, i32) {
    %c0_i32 = arith.constant 0 : i32
    %c0_i32_0 = arith.constant 0 : i32
    %c0_i32_1 = arith.constant 0 : i32
    return %c0_i32, %c0_i32_0 : i32, i32
  }
  func.func @transform_4(%arg0: i32) -> (i32, i32) {
    %c0_i32 = arith.constant 0 : i32
    %c0_i32_0 = arith.constant 0 : i32
    %c0_i32_1 = arith.constant 0 : i32
    return %c0_i32, %c0_i32_0 : i32, i32
  }
}

module attributes {stable_mosaic.version = 11 : i64} {
  func.func @_scale_shift_relu_kernel(%arg0: i32, %arg1: memref<2x1024xbf16, #tpu.memory_space<vmem>>, %arg2: memref<1x1024xf32, #tpu.memory_space<vmem>>, %arg3: memref<1x1024xf32, #tpu.memory_space<vmem>>, %arg4: memref<2x1024xbf16, #tpu.memory_space<vmem>>) attributes {dimension_semantics = [#tpu.dimension_semantics<parallel>], iteration_bounds = array<i64: 1>, scalar_prefetch = 0 : i64, scratch_operands = 0 : i64, tpu.core_type = #tpu.core_type<tc>, window_params = [{transform_indices = @transform_0, window_bounds = array<i64: 2, 1024>}, {pipeline_mode = #tpu.pipeline_mode<synchronous>, transform_indices = @transform_1, window_bounds = array<i64: 1, 1024>}, {pipeline_mode = #tpu.pipeline_mode<synchronous>, transform_indices = @transform_2, window_bounds = array<i64: 1, 1024>}, {transform_indices = @transform_3, window_bounds = array<i64: 2, 1024>}]} {
    %c0 = arith.constant 0 : index
    %c0_0 = arith.constant 0 : index
    %0 = vector.load %arg1[%c0, %c0_0] : memref<2x1024xbf16, #tpu.memory_space<vmem>>, vector<2x1024xbf16>
    %1 = arith.extf %0 : vector<2x1024xbf16> to vector<2x1024xf32>
    %c0_1 = arith.constant 0 : index
    %c0_2 = arith.constant 0 : index
    %2 = vector.load %arg2[%c0_1, %c0_2] : memref<1x1024xf32, #tpu.memory_space<vmem>>, vector<1x1024xf32>
    %3 = vector.broadcast %2 : vector<1x1024xf32> to vector<2x1024xf32>
    %4 = arith.mulf %1, %3 : vector<2x1024xf32>
    %c0_3 = arith.constant 0 : index
    %c0_4 = arith.constant 0 : index
    %5 = vector.load %arg3[%c0_3, %c0_4] : memref<1x1024xf32, #tpu.memory_space<vmem>>, vector<1x1024xf32>
    %6 = vector.broadcast %5 : vector<1x1024xf32> to vector<2x1024xf32>
    %7 = arith.addf %4, %6 : vector<2x1024xf32>
    %cst = arith.constant 0.000000e+00 : f32
    %8 = vector.broadcast %cst : f32 to vector<2x1024xf32>
    %9 = arith.maximumf %7, %8 : vector<2x1024xf32>
    %10 = arith.truncf %9 : vector<2x1024xf32> to vector<2x1024xbf16>
    %c0_5 = arith.constant 0 : index
    %c0_6 = arith.constant 0 : index
    %11 = vector.load %arg4[%c0_5, %c0_6] : memref<2x1024xbf16, #tpu.memory_space<vmem>>, vector<2x1024xbf16>
    tpu.vector_store %arg4[%c0_5, %c0_6], %10 {strides = array<i32>} : memref<2x1024xbf16, #tpu.memory_space<vmem>>, vector<2x1024xbf16>,
    return
  }
  func.func @transform_0(%arg0: i32) -> (i32, i32) {
    %c0_i32 = arith.constant 0 : i32
    %c0_i32_0 = arith.constant 0 : i32
    return %arg0, %c0_i32 : i32, i32
  }
  func.func @transform_1(%arg0: i32) -> (i32, i32) {
    %c0_i32 = arith.constant 0 : i32
    %c0_i32_0 = arith.constant 0 : i32
    %c0_i32_1 = arith.constant 0 : i32
    return %c0_i32, %c0_i32_0 : i32, i32
  }
  func.func @transform_2(%arg0: i32) -> (i32, i32) {
    %c0_i32 = arith.constant 0 : i32
    %c0_i32_0 = arith.constant 0 : i32
    %c0_i32_1 = arith.constant 0 : i32
    return %c0_i32, %c0_i32_0 : i32, i32
  }
  func.func @transform_3(%arg0: i32) -> (i32, i32) {
    %c0_i32 = arith.constant 0 : i32
    %c0_i32_0 = arith.constant 0 : i32
    return %arg0, %c0_i32 : i32, i32
  }
}

module attributes {stable_mosaic.version = 11 : i64} {
  func.func @_mm_stats_kernel(%arg0: i32, %arg1: memref<32x576xbf16, #tpu.memory_space<vmem>>, %arg2: memref<576x128xbf16, #tpu.memory_space<vmem>>, %arg3: memref<32x128xbf16, #tpu.memory_space<vmem>>, %arg4: memref<1x128xf32, #tpu.memory_space<vmem>>, %arg5: memref<1x128xf32, #tpu.memory_space<vmem>>) attributes {dimension_semantics = [#tpu.dimension_semantics<arbitrary>], iteration_bounds = array<i64: 1>, scalar_prefetch = 0 : i64, scratch_operands = 0 : i64, tpu.core_type = #tpu.core_type<tc>, window_params = [{transform_indices = @transform_0, window_bounds = array<i64: 32, 576>}, {pipeline_mode = #tpu.pipeline_mode<synchronous>, transform_indices = @transform_1, window_bounds = array<i64: 576, 128>}, {transform_indices = @transform_2, window_bounds = array<i64: 32, 128>}, {pipeline_mode = #tpu.pipeline_mode<synchronous>, transform_indices = @transform_3, window_bounds = array<i64: 1, 128>}, {pipeline_mode = #tpu.pipeline_mode<synchronous>, transform_indices = @transform_4, window_bounds = array<i64: 1, 128>}]} {
    %c0 = arith.constant 0 : index
    %c0_0 = arith.constant 0 : index
    %0 = vector.load %arg1[%c0, %c0_0] : memref<32x576xbf16, #tpu.memory_space<vmem>>, vector<32x576xbf16>
    %c0_1 = arith.constant 0 : index
    %c0_2 = arith.constant 0 : index
    %1 = vector.load %arg2[%c0_1, %c0_2] : memref<576x128xbf16, #tpu.memory_space<vmem>>, vector<576x128xbf16>
    %cst = arith.constant dense<0.000000e+00> : vector<32x128xf32>
    %2 = tpu.matmul %0, %1, %cst {dimension_numbers = #tpu.dot_dimension_numbers<[1], [0], [0], [1], [0, 0, 1, 1], [], []>} : vector<32x576xbf16>, vector<576x128xbf16>, vector<32x128xf32> -> vector<32x128xf32>
    %3 = arith.truncf %2 : vector<32x128xf32> to vector<32x128xbf16>
    %c0_3 = arith.constant 0 : index
    %c0_4 = arith.constant 0 : index
    %4 = vector.load %arg3[%c0_3, %c0_4] : memref<32x128xbf16, #tpu.memory_space<vmem>>, vector<32x128xbf16>
    tpu.vector_store %arg3[%c0_3, %c0_4], %3 {strides = array<i32>} : memref<32x128xbf16, #tpu.memory_space<vmem>>, vector<32x128xbf16>,
    %c0_i32 = arith.constant 0 : i32
    %5 = arith.cmpi eq, %arg0, %c0_i32 : i32
    %6 = arith.extui %5 : i1 to i32
    %c0_i32_5 = arith.constant 0 : i32
    %7 = arith.cmpi ne, %6, %c0_i32_5 : i32
    scf.if %7 {
      %cst_16 = arith.constant 0.000000e+00 : f32
      %19 = vector.broadcast %cst_16 : f32 to vector<1x128xf32>
      %c0_17 = arith.constant 0 : index
      %c0_18 = arith.constant 0 : index
      %20 = vector.load %arg4[%c0_17, %c0_18] : memref<1x128xf32, #tpu.memory_space<vmem>>, vector<1x128xf32>
      tpu.vector_store %arg4[%c0_17, %c0_18], %19 {strides = array<i32>} : memref<1x128xf32, #tpu.memory_space<vmem>>, vector<1x128xf32>,
      %cst_19 = arith.constant 0.000000e+00 : f32
      %21 = vector.broadcast %cst_19 : f32 to vector<1x128xf32>
      %c0_20 = arith.constant 0 : index
      %c0_21 = arith.constant 0 : index
      %22 = vector.load %arg5[%c0_20, %c0_21] : memref<1x128xf32, #tpu.memory_space<vmem>>, vector<1x128xf32>
      tpu.vector_store %arg5[%c0_20, %c0_21], %21 {strides = array<i32>} : memref<1x128xf32, #tpu.memory_space<vmem>>, vector<1x128xf32>,
    } else {
    }
    %c0_6 = arith.constant 0 : index
    %c0_7 = arith.constant 0 : index
    %8 = vector.load %arg4[%c0_6, %c0_7] : memref<1x128xf32, #tpu.memory_space<vmem>>, vector<1x128xf32>
    %cst_8 = arith.constant dense<0.000000e+00> : vector<128xf32>
    %9 = vector.multi_reduction <add>, %2, %cst_8 [0] : vector<32x128xf32> to vector<128xf32>
    %10 = vector.shape_cast %9 : vector<128xf32> to vector<1x128xf32>
    %11 = arith.addf %8, %10 : vector<1x128xf32>
    %c0_9 = arith.constant 0 : index
    %c0_10 = arith.constant 0 : index
    %12 = vector.load %arg4[%c0_9, %c0_10] : memref<1x128xf32, #tpu.memory_space<vmem>>, vector<1x128xf32>
    tpu.vector_store %arg4[%c0_9, %c0_10], %11 {strides = array<i32>} : memref<1x128xf32, #tpu.memory_space<vmem>>, vector<1x128xf32>,
    %c0_11 = arith.constant 0 : index
    %c0_12 = arith.constant 0 : index
    %13 = vector.load %arg5[%c0_11, %c0_12] : memref<1x128xf32, #tpu.memory_space<vmem>>, vector<1x128xf32>
    %14 = arith.mulf %2, %2 : vector<32x128xf32>
    %cst_13 = arith.constant dense<0.000000e+00> : vector<128xf32>
    %15 = vector.multi_reduction <add>, %14, %cst_13 [0] : vector<32x128xf32> to vector<128xf32>
    %16 = vector.shape_cast %15 : vector<128xf32> to vector<1x128xf32>
    %17 = arith.addf %13, %16 : vector<1x128xf32>
    %c0_14 = arith.constant 0 : index
    %c0_15 = arith.constant 0 : index
    %18 = vector.load %arg5[%c0_14, %c0_15] : memref<1x128xf32, #tpu.memory_space<vmem>>, vector<1x128xf32>
    tpu.vector_store %arg5[%c0_14, %c0_15], %17 {strides = array<i32>} : memref<1x128xf32, #tpu.memory_space<vmem>>, vector<1x128xf32>,
    return
  }
  func.func @transform_0(%arg0: i32) -> (i32, i32) {
    %c0_i32 = arith.constant 0 : i32
    %c0_i32_0 = arith.constant 0 : i32
    return %arg0, %c0_i32 : i32, i32
  }
  func.func @transform_1(%arg0: i32) -> (i32, i32) {
    %c0_i32 = arith.constant 0 : i32
    %c0_i32_0 = arith.constant 0 : i32
    %c0_i32_1 = arith.constant 0 : i32
    return %c0_i32, %c0_i32_0 : i32, i32
  }
  func.func @transform_2(%arg0: i32) -> (i32, i32) {
    %c0_i32 = arith.constant 0 : i32
    %c0_i32_0 = arith.constant 0 : i32
    return %arg0, %c0_i32 : i32, i32
  }
  func.func @transform_3(%arg0: i32) -> (i32, i32) {
    %c0_i32 = arith.constant 0 : i32
    %c0_i32_0 = arith.constant 0 : i32
    %c0_i32_1 = arith.constant 0 : i32
    return %c0_i32, %c0_i32_0 : i32, i32
  }
  func.func @transform_4(%arg0: i32) -> (i32, i32) {
    %c0_i32 = arith.constant 0 : i32
    %c0_i32_0 = arith.constant 0 : i32
    %c0_i32_1 = arith.constant 0 : i32
    return %c0_i32, %c0_i32_0 : i32, i32
  }
}

module attributes {stable_mosaic.version = 11 : i64} {
  func.func @_scale_shift_relu_kernel(%arg0: i32, %arg1: memref<32x128xbf16, #tpu.memory_space<vmem>>, %arg2: memref<1x128xf32, #tpu.memory_space<vmem>>, %arg3: memref<1x128xf32, #tpu.memory_space<vmem>>, %arg4: memref<32x128xbf16, #tpu.memory_space<vmem>>) attributes {dimension_semantics = [#tpu.dimension_semantics<parallel>], iteration_bounds = array<i64: 1>, scalar_prefetch = 0 : i64, scratch_operands = 0 : i64, tpu.core_type = #tpu.core_type<tc>, window_params = [{transform_indices = @transform_0, window_bounds = array<i64: 32, 128>}, {pipeline_mode = #tpu.pipeline_mode<synchronous>, transform_indices = @transform_1, window_bounds = array<i64: 1, 128>}, {pipeline_mode = #tpu.pipeline_mode<synchronous>, transform_indices = @transform_2, window_bounds = array<i64: 1, 128>}, {transform_indices = @transform_3, window_bounds = array<i64: 32, 128>}]} {
    %c0 = arith.constant 0 : index
    %c0_0 = arith.constant 0 : index
    %0 = vector.load %arg1[%c0, %c0_0] : memref<32x128xbf16, #tpu.memory_space<vmem>>, vector<32x128xbf16>
    %1 = arith.extf %0 : vector<32x128xbf16> to vector<32x128xf32>
    %c0_1 = arith.constant 0 : index
    %c0_2 = arith.constant 0 : index
    %2 = vector.load %arg2[%c0_1, %c0_2] : memref<1x128xf32, #tpu.memory_space<vmem>>, vector<1x128xf32>
    %3 = vector.broadcast %2 : vector<1x128xf32> to vector<32x128xf32>
    %4 = arith.mulf %1, %3 : vector<32x128xf32>
    %c0_3 = arith.constant 0 : index
    %c0_4 = arith.constant 0 : index
    %5 = vector.load %arg3[%c0_3, %c0_4] : memref<1x128xf32, #tpu.memory_space<vmem>>, vector<1x128xf32>
    %6 = vector.broadcast %5 : vector<1x128xf32> to vector<32x128xf32>
    %7 = arith.addf %4, %6 : vector<32x128xf32>
    %cst = arith.constant 0.000000e+00 : f32
    %8 = vector.broadcast %cst : f32 to vector<32x128xf32>
    %9 = arith.maximumf %7, %8 : vector<32x128xf32>
    %10 = arith.truncf %9 : vector<32x128xf32> to vector<32x128xbf16>
    %c0_5 = arith.constant 0 : index
    %c0_6 = arith.constant 0 : index
    %11 = vector.load %arg4[%c0_5, %c0_6] : memref<32x128xbf16, #tpu.memory_space<vmem>>, vector<32x128xbf16>
    tpu.vector_store %arg4[%c0_5, %c0_6], %10 {strides = array<i32>} : memref<32x128xbf16, #tpu.memory_space<vmem>>, vector<32x128xbf16>,
    return
  }
  func.func @transform_0(%arg0: i32) -> (i32, i32) {
    %c0_i32 = arith.constant 0 : i32
    %c0_i32_0 = arith.constant 0 : i32
    return %arg0, %c0_i32 : i32, i32
  }
  func.func @transform_1(%arg0: i32) -> (i32, i32) {
    %c0_i32 = arith.constant 0 : i32
    %c0_i32_0 = arith.constant 0 : i32
    %c0_i32_1 = arith.constant 0 : i32
    return %c0_i32, %c0_i32_0 : i32, i32
  }
  func.func @transform_2(%arg0: i32) -> (i32, i32) {
    %c0_i32 = arith.constant 0 : i32
    %c0_i32_0 = arith.constant 0 : i32
    %c0_i32_1 = arith.constant 0 : i32
    return %c0_i32, %c0_i32_0 : i32, i32
  }
  func.func @transform_3(%arg0: i32) -> (i32, i32) {
    %c0_i32 = arith.constant 0 : i32
    %c0_i32_0 = arith.constant 0 : i32
    return %arg0, %c0_i32 : i32, i32
  }
}

module attributes {stable_mosaic.version = 11 : i64} {
  func.func @_mm_stats_kernel(%arg0: i32, %arg1: memref<128x288xbf16, #tpu.memory_space<vmem>>, %arg2: memref<288x64xbf16, #tpu.memory_space<vmem>>, %arg3: memref<128x64xbf16, #tpu.memory_space<vmem>>, %arg4: memref<1x64xf32, #tpu.memory_space<vmem>>, %arg5: memref<1x64xf32, #tpu.memory_space<vmem>>) attributes {dimension_semantics = [#tpu.dimension_semantics<arbitrary>], iteration_bounds = array<i64: 1>, scalar_prefetch = 0 : i64, scratch_operands = 0 : i64, tpu.core_type = #tpu.core_type<tc>, window_params = [{transform_indices = @transform_0, window_bounds = array<i64: 128, 288>}, {pipeline_mode = #tpu.pipeline_mode<synchronous>, transform_indices = @transform_1, window_bounds = array<i64: 288, 64>}, {transform_indices = @transform_2, window_bounds = array<i64: 128, 64>}, {pipeline_mode = #tpu.pipeline_mode<synchronous>, transform_indices = @transform_3, window_bounds = array<i64: 1, 64>}, {pipeline_mode = #tpu.pipeline_mode<synchronous>, transform_indices = @transform_4, window_bounds = array<i64: 1, 64>}]} {
    %c0 = arith.constant 0 : index
    %c0_0 = arith.constant 0 : index
    %0 = vector.load %arg1[%c0, %c0_0] : memref<128x288xbf16, #tpu.memory_space<vmem>>, vector<128x288xbf16>
    %c0_1 = arith.constant 0 : index
    %c0_2 = arith.constant 0 : index
    %1 = vector.load %arg2[%c0_1, %c0_2] : memref<288x64xbf16, #tpu.memory_space<vmem>>, vector<288x64xbf16>
    %cst = arith.constant dense<0.000000e+00> : vector<128x64xf32>
    %2 = tpu.matmul %0, %1, %cst {dimension_numbers = #tpu.dot_dimension_numbers<[1], [0], [0], [1], [0, 0, 1, 1], [], []>} : vector<128x288xbf16>, vector<288x64xbf16>, vector<128x64xf32> -> vector<128x64xf32>
    %3 = arith.truncf %2 : vector<128x64xf32> to vector<128x64xbf16>
    %c0_3 = arith.constant 0 : index
    %c0_4 = arith.constant 0 : index
    %4 = vector.load %arg3[%c0_3, %c0_4] : memref<128x64xbf16, #tpu.memory_space<vmem>>, vector<128x64xbf16>
    tpu.vector_store %arg3[%c0_3, %c0_4], %3 {strides = array<i32>} : memref<128x64xbf16, #tpu.memory_space<vmem>>, vector<128x64xbf16>,
    %c0_i32 = arith.constant 0 : i32
    %5 = arith.cmpi eq, %arg0, %c0_i32 : i32
    %6 = arith.extui %5 : i1 to i32
    %c0_i32_5 = arith.constant 0 : i32
    %7 = arith.cmpi ne, %6, %c0_i32_5 : i32
    scf.if %7 {
      %cst_16 = arith.constant 0.000000e+00 : f32
      %19 = vector.broadcast %cst_16 : f32 to vector<1x64xf32>
      %c0_17 = arith.constant 0 : index
      %c0_18 = arith.constant 0 : index
      %20 = vector.load %arg4[%c0_17, %c0_18] : memref<1x64xf32, #tpu.memory_space<vmem>>, vector<1x64xf32>
      tpu.vector_store %arg4[%c0_17, %c0_18], %19 {strides = array<i32>} : memref<1x64xf32, #tpu.memory_space<vmem>>, vector<1x64xf32>,
      %cst_19 = arith.constant 0.000000e+00 : f32
      %21 = vector.broadcast %cst_19 : f32 to vector<1x64xf32>
      %c0_20 = arith.constant 0 : index
      %c0_21 = arith.constant 0 : index
      %22 = vector.load %arg5[%c0_20, %c0_21] : memref<1x64xf32, #tpu.memory_space<vmem>>, vector<1x64xf32>
      tpu.vector_store %arg5[%c0_20, %c0_21], %21 {strides = array<i32>} : memref<1x64xf32, #tpu.memory_space<vmem>>, vector<1x64xf32>,
    } else {
    }
    %c0_6 = arith.constant 0 : index
    %c0_7 = arith.constant 0 : index
    %8 = vector.load %arg4[%c0_6, %c0_7] : memref<1x64xf32, #tpu.memory_space<vmem>>, vector<1x64xf32>
    %cst_8 = arith.constant dense<0.000000e+00> : vector<64xf32>
    %9 = vector.multi_reduction <add>, %2, %cst_8 [0] : vector<128x64xf32> to vector<64xf32>
    %10 = vector.shape_cast %9 : vector<64xf32> to vector<1x64xf32>
    %11 = arith.addf %8, %10 : vector<1x64xf32>
    %c0_9 = arith.constant 0 : index
    %c0_10 = arith.constant 0 : index
    %12 = vector.load %arg4[%c0_9, %c0_10] : memref<1x64xf32, #tpu.memory_space<vmem>>, vector<1x64xf32>
    tpu.vector_store %arg4[%c0_9, %c0_10], %11 {strides = array<i32>} : memref<1x64xf32, #tpu.memory_space<vmem>>, vector<1x64xf32>,
    %c0_11 = arith.constant 0 : index
    %c0_12 = arith.constant 0 : index
    %13 = vector.load %arg5[%c0_11, %c0_12] : memref<1x64xf32, #tpu.memory_space<vmem>>, vector<1x64xf32>
    %14 = arith.mulf %2, %2 : vector<128x64xf32>
    %cst_13 = arith.constant dense<0.000000e+00> : vector<64xf32>
    %15 = vector.multi_reduction <add>, %14, %cst_13 [0] : vector<128x64xf32> to vector<64xf32>
    %16 = vector.shape_cast %15 : vector<64xf32> to vector<1x64xf32>
    %17 = arith.addf %13, %16 : vector<1x64xf32>
    %c0_14 = arith.constant 0 : index
    %c0_15 = arith.constant 0 : index
    %18 = vector.load %arg5[%c0_14, %c0_15] : memref<1x64xf32, #tpu.memory_space<vmem>>, vector<1x64xf32>
    tpu.vector_store %arg5[%c0_14, %c0_15], %17 {strides = array<i32>} : memref<1x64xf32, #tpu.memory_space<vmem>>, vector<1x64xf32>,
    return
  }
  func.func @transform_0(%arg0: i32) -> (i32, i32) {
    %c0_i32 = arith.constant 0 : i32
    %c0_i32_0 = arith.constant 0 : i32
    return %arg0, %c0_i32 : i32, i32
  }
  func.func @transform_1(%arg0: i32) -> (i32, i32) {
    %c0_i32 = arith.constant 0 : i32
    %c0_i32_0 = arith.constant 0 : i32
    %c0_i32_1 = arith.constant 0 : i32
    return %c0_i32, %c0_i32_0 : i32, i32
  }
  func.func @transform_2(%arg0: i32) -> (i32, i32) {
    %c0_i32 = arith.constant 0 : i32
    %c0_i32_0 = arith.constant 0 : i32
    return %arg0, %c0_i32 : i32, i32
  }
  func.func @transform_3(%arg0: i32) -> (i32, i32) {
    %c0_i32 = arith.constant 0 : i32
    %c0_i32_0 = arith.constant 0 : i32
    %c0_i32_1 = arith.constant 0 : i32
    return %c0_i32, %c0_i32_0 : i32, i32
  }
  func.func @transform_4(%arg0: i32) -> (i32, i32) {
    %c0_i32 = arith.constant 0 : i32
    %c0_i32_0 = arith.constant 0 : i32
    %c0_i32_1 = arith.constant 0 : i32
    return %c0_i32, %c0_i32_0 : i32, i32
  }
}

module attributes {stable_mosaic.version = 11 : i64} {
  func.func @_scale_shift_relu_kernel(%arg0: i32, %arg1: memref<128x64xbf16, #tpu.memory_space<vmem>>, %arg2: memref<1x64xf32, #tpu.memory_space<vmem>>, %arg3: memref<1x64xf32, #tpu.memory_space<vmem>>, %arg4: memref<128x64xbf16, #tpu.memory_space<vmem>>) attributes {dimension_semantics = [#tpu.dimension_semantics<parallel>], iteration_bounds = array<i64: 1>, scalar_prefetch = 0 : i64, scratch_operands = 0 : i64, tpu.core_type = #tpu.core_type<tc>, window_params = [{transform_indices = @transform_0, window_bounds = array<i64: 128, 64>}, {pipeline_mode = #tpu.pipeline_mode<synchronous>, transform_indices = @transform_1, window_bounds = array<i64: 1, 64>}, {pipeline_mode = #tpu.pipeline_mode<synchronous>, transform_indices = @transform_2, window_bounds = array<i64: 1, 64>}, {transform_indices = @transform_3, window_bounds = array<i64: 128, 64>}]} {
    %c0 = arith.constant 0 : index
    %c0_0 = arith.constant 0 : index
    %0 = vector.load %arg1[%c0, %c0_0] : memref<128x64xbf16, #tpu.memory_space<vmem>>, vector<128x64xbf16>
    %1 = arith.extf %0 : vector<128x64xbf16> to vector<128x64xf32>
    %c0_1 = arith.constant 0 : index
    %c0_2 = arith.constant 0 : index
    %2 = vector.load %arg2[%c0_1, %c0_2] : memref<1x64xf32, #tpu.memory_space<vmem>>, vector<1x64xf32>
    %3 = vector.broadcast %2 : vector<1x64xf32> to vector<128x64xf32>
    %4 = arith.mulf %1, %3 : vector<128x64xf32>
    %c0_3 = arith.constant 0 : index
    %c0_4 = arith.constant 0 : index
    %5 = vector.load %arg3[%c0_3, %c0_4] : memref<1x64xf32, #tpu.memory_space<vmem>>, vector<1x64xf32>
    %6 = vector.broadcast %5 : vector<1x64xf32> to vector<128x64xf32>
    %7 = arith.addf %4, %6 : vector<128x64xf32>
    %cst = arith.constant 0.000000e+00 : f32
    %8 = vector.broadcast %cst : f32 to vector<128x64xf32>
    %9 = arith.maximumf %7, %8 : vector<128x64xf32>
    %10 = arith.truncf %9 : vector<128x64xf32> to vector<128x64xbf16>
    %c0_5 = arith.constant 0 : index
    %c0_6 = arith.constant 0 : index
    %11 = vector.load %arg4[%c0_5, %c0_6] : memref<128x64xbf16, #tpu.memory_space<vmem>>, vector<128x64xbf16>
    tpu.vector_store %arg4[%c0_5, %c0_6], %10 {strides = array<i32>} : memref<128x64xbf16, #tpu.memory_space<vmem>>, vector<128x64xbf16>,
    return
  }
  func.func @transform_0(%arg0: i32) -> (i32, i32) {
    %c0_i32 = arith.constant 0 : i32
    %c0_i32_0 = arith.constant 0 : i32
    return %arg0, %c0_i32 : i32, i32
  }
  func.func @transform_1(%arg0: i32) -> (i32, i32) {
    %c0_i32 = arith.constant 0 : i32
    %c0_i32_0 = arith.constant 0 : i32
    %c0_i32_1 = arith.constant 0 : i32
    return %c0_i32, %c0_i32_0 : i32, i32
  }
  func.func @transform_2(%arg0: i32) -> (i32, i32) {
    %c0_i32 = arith.constant 0 : i32
    %c0_i32_0 = arith.constant 0 : i32
    %c0_i32_1 = arith.constant 0 : i32
    return %c0_i32, %c0_i32_0 : i32, i32
  }
  func.func @transform_3(%arg0: i32) -> (i32, i32) {
    %c0_i32 = arith.constant 0 : i32
    %c0_i32_0 = arith.constant 0 : i32
    return %arg0, %c0_i32 : i32, i32
  }
}

module attributes {stable_mosaic.version = 11 : i64} {
  func.func @_mm_stats_kernel(%arg0: i32, %arg1: memref<256x144xbf16, #tpu.memory_space<vmem>>, %arg2: memref<144x32xbf16, #tpu.memory_space<vmem>>, %arg3: memref<256x32xbf16, #tpu.memory_space<vmem>>, %arg4: memref<1x32xf32, #tpu.memory_space<vmem>>, %arg5: memref<1x32xf32, #tpu.memory_space<vmem>>) attributes {dimension_semantics = [#tpu.dimension_semantics<arbitrary>], iteration_bounds = array<i64: 2>, scalar_prefetch = 0 : i64, scratch_operands = 0 : i64, tpu.core_type = #tpu.core_type<tc>, window_params = [{transform_indices = @transform_0, window_bounds = array<i64: 256, 144>}, {pipeline_mode = #tpu.pipeline_mode<synchronous>, transform_indices = @transform_1, window_bounds = array<i64: 144, 32>}, {transform_indices = @transform_2, window_bounds = array<i64: 256, 32>}, {pipeline_mode = #tpu.pipeline_mode<synchronous>, transform_indices = @transform_3, window_bounds = array<i64: 1, 32>}, {pipeline_mode = #tpu.pipeline_mode<synchronous>, transform_indices = @transform_4, window_bounds = array<i64: 1, 32>}]} {
    %c0 = arith.constant 0 : index
    %c0_0 = arith.constant 0 : index
    %0 = vector.load %arg1[%c0, %c0_0] : memref<256x144xbf16, #tpu.memory_space<vmem>>, vector<256x144xbf16>
    %c0_1 = arith.constant 0 : index
    %c0_2 = arith.constant 0 : index
    %1 = vector.load %arg2[%c0_1, %c0_2] : memref<144x32xbf16, #tpu.memory_space<vmem>>, vector<144x32xbf16>
    %cst = arith.constant dense<0.000000e+00> : vector<256x32xf32>
    %2 = tpu.matmul %0, %1, %cst {dimension_numbers = #tpu.dot_dimension_numbers<[1], [0], [0], [1], [0, 0, 1, 1], [], []>} : vector<256x144xbf16>, vector<144x32xbf16>, vector<256x32xf32> -> vector<256x32xf32>
    %3 = arith.truncf %2 : vector<256x32xf32> to vector<256x32xbf16>
    %c0_3 = arith.constant 0 : index
    %c0_4 = arith.constant 0 : index
    %4 = vector.load %arg3[%c0_3, %c0_4] : memref<256x32xbf16, #tpu.memory_space<vmem>>, vector<256x32xbf16>
    tpu.vector_store %arg3[%c0_3, %c0_4], %3 {strides = array<i32>} : memref<256x32xbf16, #tpu.memory_space<vmem>>, vector<256x32xbf16>,
    %c0_i32 = arith.constant 0 : i32
    %5 = arith.cmpi eq, %arg0, %c0_i32 : i32
    %6 = arith.extui %5 : i1 to i32
    %c0_i32_5 = arith.constant 0 : i32
    %7 = arith.cmpi ne, %6, %c0_i32_5 : i32
    scf.if %7 {
      %cst_16 = arith.constant 0.000000e+00 : f32
      %19 = vector.broadcast %cst_16 : f32 to vector<1x32xf32>
      %c0_17 = arith.constant 0 : index
      %c0_18 = arith.constant 0 : index
      %20 = vector.load %arg4[%c0_17, %c0_18] : memref<1x32xf32, #tpu.memory_space<vmem>>, vector<1x32xf32>
      tpu.vector_store %arg4[%c0_17, %c0_18], %19 {strides = array<i32>} : memref<1x32xf32, #tpu.memory_space<vmem>>, vector<1x32xf32>,
      %cst_19 = arith.constant 0.000000e+00 : f32
      %21 = vector.broadcast %cst_19 : f32 to vector<1x32xf32>
      %c0_20 = arith.constant 0 : index
      %c0_21 = arith.constant 0 : index
      %22 = vector.load %arg5[%c0_20, %c0_21] : memref<1x32xf32, #tpu.memory_space<vmem>>, vector<1x32xf32>
      tpu.vector_store %arg5[%c0_20, %c0_21], %21 {strides = array<i32>} : memref<1x32xf32, #tpu.memory_space<vmem>>, vector<1x32xf32>,
    } else {
    }
    %c0_6 = arith.constant 0 : index
    %c0_7 = arith.constant 0 : index
    %8 = vector.load %arg4[%c0_6, %c0_7] : memref<1x32xf32, #tpu.memory_space<vmem>>, vector<1x32xf32>
    %cst_8 = arith.constant dense<0.000000e+00> : vector<32xf32>
    %9 = vector.multi_reduction <add>, %2, %cst_8 [0] : vector<256x32xf32> to vector<32xf32>
    %10 = vector.shape_cast %9 : vector<32xf32> to vector<1x32xf32>
    %11 = arith.addf %8, %10 : vector<1x32xf32>
    %c0_9 = arith.constant 0 : index
    %c0_10 = arith.constant 0 : index
    %12 = vector.load %arg4[%c0_9, %c0_10] : memref<1x32xf32, #tpu.memory_space<vmem>>, vector<1x32xf32>
    tpu.vector_store %arg4[%c0_9, %c0_10], %11 {strides = array<i32>} : memref<1x32xf32, #tpu.memory_space<vmem>>, vector<1x32xf32>,
    %c0_11 = arith.constant 0 : index
    %c0_12 = arith.constant 0 : index
    %13 = vector.load %arg5[%c0_11, %c0_12] : memref<1x32xf32, #tpu.memory_space<vmem>>, vector<1x32xf32>
    %14 = arith.mulf %2, %2 : vector<256x32xf32>
    %cst_13 = arith.constant dense<0.000000e+00> : vector<32xf32>
    %15 = vector.multi_reduction <add>, %14, %cst_13 [0] : vector<256x32xf32> to vector<32xf32>
    %16 = vector.shape_cast %15 : vector<32xf32> to vector<1x32xf32>
    %17 = arith.addf %13, %16 : vector<1x32xf32>
    %c0_14 = arith.constant 0 : index
    %c0_15 = arith.constant 0 : index
    %18 = vector.load %arg5[%c0_14, %c0_15] : memref<1x32xf32, #tpu.memory_space<vmem>>, vector<1x32xf32>
    tpu.vector_store %arg5[%c0_14, %c0_15], %17 {strides = array<i32>} : memref<1x32xf32, #tpu.memory_space<vmem>>, vector<1x32xf32>,
    return
  }
  func.func @transform_0(%arg0: i32) -> (i32, i32) {
    %c0_i32 = arith.constant 0 : i32
    %c0_i32_0 = arith.constant 0 : i32
    return %arg0, %c0_i32 : i32, i32
  }
  func.func @transform_1(%arg0: i32) -> (i32, i32) {
    %c0_i32 = arith.constant 0 : i32
    %c0_i32_0 = arith.constant 0 : i32
    %c0_i32_1 = arith.constant 0 : i32
    return %c0_i32, %c0_i32_0 : i32, i32
  }
  func.func @transform_2(%arg0: i32) -> (i32, i32) {
    %c0_i32 = arith.constant 0 : i32
    %c0_i32_0 = arith.constant 0 : i32
    return %arg0, %c0_i32 : i32, i32
  }
  func.func @transform_3(%arg0: i32) -> (i32, i32) {
    %c0_i32 = arith.constant 0 : i32
    %c0_i32_0 = arith.constant 0 : i32
    %c0_i32_1 = arith.constant 0 : i32
    return %c0_i32, %c0_i32_0 : i32, i32
  }
  func.func @transform_4(%arg0: i32) -> (i32, i32) {
    %c0_i32 = arith.constant 0 : i32
    %c0_i32_0 = arith.constant 0 : i32
    %c0_i32_1 = arith.constant 0 : i32
    return %c0_i32, %c0_i32_0 : i32, i32
  }
}

module attributes {stable_mosaic.version = 11 : i64} {
  func.func @_scale_shift_relu_kernel(%arg0: i32, %arg1: memref<512x32xbf16, #tpu.memory_space<vmem>>, %arg2: memref<1x32xf32, #tpu.memory_space<vmem>>, %arg3: memref<1x32xf32, #tpu.memory_space<vmem>>, %arg4: memref<512x32xbf16, #tpu.memory_space<vmem>>) attributes {dimension_semantics = [#tpu.dimension_semantics<parallel>], iteration_bounds = array<i64: 1>, scalar_prefetch = 0 : i64, scratch_operands = 0 : i64, tpu.core_type = #tpu.core_type<tc>, window_params = [{transform_indices = @transform_0, window_bounds = array<i64: 512, 32>}, {pipeline_mode = #tpu.pipeline_mode<synchronous>, transform_indices = @transform_1, window_bounds = array<i64: 1, 32>}, {pipeline_mode = #tpu.pipeline_mode<synchronous>, transform_indices = @transform_2, window_bounds = array<i64: 1, 32>}, {transform_indices = @transform_3, window_bounds = array<i64: 512, 32>}]} {
    %c0 = arith.constant 0 : index
    %c0_0 = arith.constant 0 : index
    %0 = vector.load %arg1[%c0, %c0_0] : memref<512x32xbf16, #tpu.memory_space<vmem>>, vector<512x32xbf16>
    %1 = arith.extf %0 : vector<512x32xbf16> to vector<512x32xf32>
    %c0_1 = arith.constant 0 : index
    %c0_2 = arith.constant 0 : index
    %2 = vector.load %arg2[%c0_1, %c0_2] : memref<1x32xf32, #tpu.memory_space<vmem>>, vector<1x32xf32>
    %3 = vector.broadcast %2 : vector<1x32xf32> to vector<512x32xf32>
    %4 = arith.mulf %1, %3 : vector<512x32xf32>
    %c0_3 = arith.constant 0 : index
    %c0_4 = arith.constant 0 : index
    %5 = vector.load %arg3[%c0_3, %c0_4] : memref<1x32xf32, #tpu.memory_space<vmem>>, vector<1x32xf32>
    %6 = vector.broadcast %5 : vector<1x32xf32> to vector<512x32xf32>
    %7 = arith.addf %4, %6 : vector<512x32xf32>
    %cst = arith.constant 0.000000e+00 : f32
    %8 = vector.broadcast %cst : f32 to vector<512x32xf32>
    %9 = arith.maximumf %7, %8 : vector<512x32xf32>
    %10 = arith.truncf %9 : vector<512x32xf32> to vector<512x32xbf16>
    %c0_5 = arith.constant 0 : index
    %c0_6 = arith.constant 0 : index
    %11 = vector.load %arg4[%c0_5, %c0_6] : memref<512x32xbf16, #tpu.memory_space<vmem>>, vector<512x32xbf16>
    tpu.vector_store %arg4[%c0_5, %c0_6], %10 {strides = array<i32>} : memref<512x32xbf16, #tpu.memory_space<vmem>>, vector<512x32xbf16>,
    return
  }
  func.func @transform_0(%arg0: i32) -> (i32, i32) {
    %c0_i32 = arith.constant 0 : i32
    %c0_i32_0 = arith.constant 0 : i32
    return %arg0, %c0_i32 : i32, i32
  }
  func.func @transform_1(%arg0: i32) -> (i32, i32) {
    %c0_i32 = arith.constant 0 : i32
    %c0_i32_0 = arith.constant 0 : i32
    %c0_i32_1 = arith.constant 0 : i32
    return %c0_i32, %c0_i32_0 : i32, i32
  }
  func.func @transform_2(%arg0: i32) -> (i32, i32) {
    %c0_i32 = arith.constant 0 : i32
    %c0_i32_0 = arith.constant 0 : i32
    %c0_i32_1 = arith.constant 0 : i32
    return %c0_i32, %c0_i32_0 : i32, i32
  }
  func.func @transform_3(%arg0: i32) -> (i32, i32) {
    %c0_i32 = arith.constant 0 : i32
    %c0_i32_0 = arith.constant 0 : i32
    return %arg0, %c0_i32 : i32, i32
  }
}

module attributes {stable_mosaic.version = 11 : i64} {
  func.func @_mm_tanh_kernel(%arg0: i32, %arg1: memref<256x72xbf16, #tpu.memory_space<vmem>>, %arg2: memref<72x12xbf16, #tpu.memory_space<vmem>>, %arg3: memref<256x12xf32, #tpu.memory_space<vmem>>) attributes {dimension_semantics = [#tpu.dimension_semantics<parallel>], iteration_bounds = array<i64: 8>, scalar_prefetch = 0 : i64, scratch_operands = 0 : i64, tpu.core_type = #tpu.core_type<tc>, window_params = [{transform_indices = @transform_0, window_bounds = array<i64: 256, 72>}, {pipeline_mode = #tpu.pipeline_mode<synchronous>, transform_indices = @transform_1, window_bounds = array<i64: 72, 12>}, {transform_indices = @transform_2, window_bounds = array<i64: 256, 12>}]} {
    %c0 = arith.constant 0 : index
    %c0_0 = arith.constant 0 : index
    %0 = vector.load %arg1[%c0, %c0_0] : memref<256x72xbf16, #tpu.memory_space<vmem>>, vector<256x72xbf16>
    %c0_1 = arith.constant 0 : index
    %c0_2 = arith.constant 0 : index
    %1 = vector.load %arg2[%c0_1, %c0_2] : memref<72x12xbf16, #tpu.memory_space<vmem>>, vector<72x12xbf16>
    %cst = arith.constant dense<0.000000e+00> : vector<256x12xf32>
    %2 = tpu.matmul %0, %1, %cst {dimension_numbers = #tpu.dot_dimension_numbers<[1], [0], [0], [1], [0, 0, 1, 1], [], []>} : vector<256x72xbf16>, vector<72x12xbf16>, vector<256x12xf32> -> vector<256x12xf32>
    %3 = math.tanh %2 : vector<256x12xf32>
    %c0_3 = arith.constant 0 : index
    %c0_4 = arith.constant 0 : index
    %4 = vector.load %arg3[%c0_3, %c0_4] : memref<256x12xf32, #tpu.memory_space<vmem>>, vector<256x12xf32>
    tpu.vector_store %arg3[%c0_3, %c0_4], %3 {strides = array<i32>} : memref<256x12xf32, #tpu.memory_space<vmem>>, vector<256x12xf32>,
    return
  }
  func.func @transform_0(%arg0: i32) -> (i32, i32) {
    %c0_i32 = arith.constant 0 : i32
    %c0_i32_0 = arith.constant 0 : i32
    return %arg0, %c0_i32 : i32, i32
  }
  func.func @transform_1(%arg0: i32) -> (i32, i32) {
    %c0_i32 = arith.constant 0 : i32
    %c0_i32_0 = arith.constant 0 : i32
    %c0_i32_1 = arith.constant 0 : i32
    return %c0_i32, %c0_i32_0 : i32, i32
  }
  func.func @transform_2(%arg0: i32) -> (i32, i32) {
    %c0_i32 = arith.constant 0 : i32
    %c0_i32_0 = arith.constant 0 : i32
    return %arg0, %c0_i32 : i32, i32
  }
}

</mosaic_0001>

<bundles_post_ra>
// kernel: tile.48
= control target key start
LH: loop header
LB: loop body
LE: loop exit
PB: predicated region body
PF: predicated region fallthrough
CT: control target
= control target key end

     0   :  { %s28_s0 = inlined_call_operand.vmem [shape: f32[64], index: 0, kind: input, shape index: {}]   ;;  %s29_s1 = inlined_call_operand.vmem [shape: f32[16,64], index: 1, kind: output, shape index: {}]  }
   0x1   :  { %v4_v0 = vld [vmem:[%s28_s0] ss:$0 sm:$0xff] }
   0x2   :  { %5 = vst [vmem:[%s29_s1] sm:$0xff] %v4_v0 }
   0x3   :  { %8 = vst [vmem:[%s29_s1 + $0x8] sm:$0xff] %v4_v0 }

// kernel: tile.49
= control target key start
LH: loop header
LB: loop body
LE: loop exit
PB: predicated region body
PF: predicated region fallthrough
CT: control target
= control target key end

     0   :  { %vm3_vm0 = vcmask 523264   ;;  %vm10_vm1 = vcmask 1048064   ;;  %s111_s0 = inlined_call_operand.vmem [shape: f32[16,64], index: 0, kind: input, shape index: {}]   ;;  %s112_s1 = inlined_call_operand.vmem [shape: f32[1,1024], index: 1, kind: output, shape index: {}]  }
   0x1   :  { %v61_v0 = vld [vmem:[%s111_s0 + $0x1] ss:$2 sm:$0xff]   ;;  %v2_v1 = vld [vmem:[%s111_s0] ss:$2 sm:$0xff]   ;;  %s70_s0 = smov 64  }
   0x2   :  { %8 = vrot.lane.b32.xlu0 %v61_v0, %s70_s0  ;;  %4 = vst.msk [vmem:[#allocation0] ss:$8 sm:$0xf] %vm3_vm0, %v2_v1  }
   0x3   :  { %5 = vst.msk [vmem:[#allocation0] ss:$8 sm:$0xf0] %vm3_vm0, %v2_v1  }
  0x74   :  { %v9_v2 = vpop.permute.xlu0 %8  }
  0x75   :  { %11 = vst.msk [vmem:[#allocation0] ss:$8 sm:$0xf] %vm10_vm1, %v9_v2  }
  0x76   :  { %12 = vst.msk [vmem:[#allocation0] ss:$8 sm:$0xf0] %vm10_vm1, %v9_v2  }
  0x7c   :  { %v15_v3 = vld [vmem:[#allocation0] sm:$0x1]  ;;  %v20_v4 = vld [vmem:[#allocation0 + $0x8] sm:$0x1]  ;;  %v26_v5 = vld [vmem:[#allocation0 + $0x10] sm:$0x1] }
  0x7d   :  { %18 = vst [vmem:[%s112_s1] sm:$0x1] %v15_v3  ;;  %v32_v6 = vld [vmem:[#allocation0 + $0x18] sm:$0x1]  ;;  %v38_v7 = vld [vmem:[#allocation0 + $0x20] sm:$0x1] }
  0x7e   :  { %62 = vst [vmem:[%s112_s1 + $0x1] sm:$0x1] %v20_v4  ;;  %v44_v8 = vld [vmem:[#allocation0 + $0x28] sm:$0x1]  ;;  %v50_v9 = vld [vmem:[#allocation0 + $0x30] sm:$0x1] }
  0x7f   :  { %63 = vst [vmem:[%s112_s1 + $0x2] sm:$0x1] %v26_v5  ;;  %v56_v10 = vld [vmem:[#allocation0 + $0x38] sm:$0x1] }
  0x80   :  { %64 = vst [vmem:[%s112_s1 + $0x3] sm:$0x1] %v32_v6 }
  0x81   :  { %65 = vst [vmem:[%s112_s1 + $0x4] sm:$0x1] %v38_v7 }
  0x82   :  { %66 = vst [vmem:[%s112_s1 + $0x5] sm:$0x1] %v44_v8 }
  0x83   :  { %67 = vst [vmem:[%s112_s1 + $0x6] sm:$0x1] %v50_v9 }
  0x84   :  { %68 = vst [vmem:[%s112_s1 + $0x7] sm:$0x1] %v56_v10 }

// kernel: lsun_decoder_forward.9
= control target key start
LH: loop header
LB: loop body
LE: loop exit
PB: predicated region body
PF: predicated region fallthrough
CT: control target
= control target key end

     0   :  { %10 = vsyncpa [#allocation3], 0  ;;  %s496_s18 = smov [#allocation2]   ;;  %s497_s20 = smov 512   ;;  %s606_s0 = inlined_call_operand.vmem [shape: bf16[2,16], index: 0, kind: input, shape index: {}]   ;;  %s607_s1 = inlined_call_operand.hbm [shape: bf16[16,1024], index: 1, kind: input, shape index: {}]   ;;  %s608_s2 = inlined_call_operand.vmem [shape: bf16[2,1024], index: 2, kind: output, shape index: {0}]   ;;  %s609_s3 = inlined_call_operand.vmem [shape: f32[1,1024], index: 3, kind: output, shape index: {1}]   ;;  %s610_s4 = inlined_call_operand.vmem [shape: f32[1,1024], index: 4, kind: output, shape index: {2}]  }
   0x1   :  { %s17_s17 = sshll.u32 %s607_s1, 4  ;;  %s19_s19 = sshll.u32 %s496_s18, 4  ;;  %s18_s17 = int_to_ptr.hbm [resolvable:$true] %s17_s17  ;;  %s20_s19 = int_to_ptr.vmem [resolvable:$true] %s19_s19 }
   0x2   :  { %s498_s21 = smov 32  }
   0x3   :  { %25 = dma.hbm_to_vmem [thread:$0]  %s18_s17, 1024, %s20_s19, [#allocation3], %s497_s20, %s497_s20, %s498_s21  }
   0x4   :  { %494 = dma.done.wait [#allocation3], 1024  }
   0x5   :  { %495 = vsyncadd [#allocation3], 4294966272  ;;  %vm80_vm0 = vcmask 130048   ;;  %v420_v0 = vld [vmem:[#allocation2] sm:$0xf]  ;;  %vm211_vm1 = vcmask 1041408  }
   0x6   :  { %v462_v1 = vld [vmem:[#allocation2 + $0x1c] sm:$0xf0]  ;;  %v458_v2 = vld [vmem:[#allocation2 + $0x4] sm:$0xf]  ;;  %v428_v5 = vld [vmem:[#allocation2 + $0x8] sm:$0xf] }
   0x7   :  { %v421_v3 = vor.u32 %v462_v1, %v420_v0  ;;  %v422_v4 = vld [vmem:[#allocation2 + $0x20] sm:$0xf0]  ;;  %v463_v6 = vld [vmem:[#allocation2 + $0x24] sm:$0xf0]  ;;  %v459_v9 = vld [vmem:[#allocation2 + $0xc] sm:$0xf] }
   0x8   :  { %v425_v7 = vor.u32 %v458_v2, %v422_v4  ;;  %v429_v8 = vor.u32 %v463_v6, %v428_v5  ;;  %v430_v10 = vld [vmem:[#allocation2 + $0x28] sm:$0xf0]  ;;  %v31_v11 = vld [vmem:[%s606_s0] sm:$0x1]  ;;  %v444_v13 = vld [vmem:[#allocation2 + $0x18] sm:$0xf] }
   0x9   :  { %91 = vmatpush.bf16.msra.mxu0 %v421_v3  ;;  %v433_v12 = vor.u32 %v459_v9, %v430_v10  ;;  %v465_v14 = vld [vmem:[#allocation2 + $0x34] sm:$0xf0]  ;;  %v461_v15 = vld [vmem:[#allocation2 + $0x1c] sm:$0xf]  ;;  %v436_v18 = vld [vmem:[#allocation2 + $0x10] sm:$0xf] }
   0xa   :  { %104 = vmatpush.bf16.msra.mxu1 %v425_v7  ;;  %117 = vmatpush.bf16.msra.mxu2 %v429_v8  ;;  %v445_v16 = vor.u32 %v465_v14, %v444_v13  ;;  %v446_v17 = vld [vmem:[#allocation2 + $0x38] sm:$0xf0]  ;;  %v464_v19 = vld [vmem:[#allocation2 + $0x2c] sm:$0xf0]  ;;  %v460_v22 = vld [vmem:[#allocation2 + $0x14] sm:$0xf] }
   0xb   :  { %130 = vmatpush.bf16.msra.mxu3 %v433_v12  ;;  %v449_v20 = vor.u32 %v461_v15, %v446_v17  ;;  %v437_v21 = vor.u32 %v464_v19, %v436_v18  ;;  %v438_v23 = vld [vmem:[#allocation2 + $0x30] sm:$0xf0]  ;;  %vm203_vm2 = vcmask 1040384   ;;  %vm207_vm3 = vcmask 1042434  }
   0xc   :  { %450 = vmatmul.msk.bf16.vlgmr.msra.gmra.mxu0 %vm80_vm0, %v31_v11  ;;  %v441_v24 = vor.u32 %v460_v22, %v438_v23  ;;  %vm213_vm4 = vcmask 1044484   ;;  %vm217_vm5 = vcmask 1046534   ;;  %vm221_vm6 = vcmask 1045508  }
   0xd   :  { %451 = vmatmul.msk.bf16.vlgmr.msra.gmra.mxu1 %vm80_vm0, %v31_v11  ;;  %452 = vmatmul.msk.bf16.vlgmr.msra.gmra.mxu2 %vm80_vm0, %v31_v11  ;;  %vm223_vm7 = vcmask 1043456  }
   0xe   :  { %169 = vmatpush.bf16.msrb.mxu2 %v445_v16  ;;  %453 = vmatmul.msk.bf16.vlgmr.msra.gmra.mxu3 %vm80_vm0, %v31_v11 }
   0xf   :  { %143 = vmatpush.bf16.msrb.mxu0 %v437_v21  ;;  %182 = vmatpush.bf16.msrb.mxu3 %v449_v20 }
  0x10   :  { %156 = vmatpush.bf16.msrb.mxu1 %v441_v24 }
  0x1c   :  { %454 = vmatmul.msk.bf16.vlgmr.msrb.gmra.mxu0 %vm80_vm0, %v31_v11 }
  0x1d   :  { %455 = vmatmul.msk.bf16.vlgmr.msrb.gmra.mxu1 %vm80_vm0, %v31_v11  ;;  %456 = vmatmul.msk.bf16.vlgmr.msrb.gmra.mxu2 %vm80_vm0, %v31_v11 }
  0x1e   :  { %457 = vmatmul.msk.bf16.vlgmr.msrb.gmra.mxu3 %vm80_vm0, %v31_v11 }
  0x89   :  { %v93_v25 = vpop.f32.mrf.mxu0 }
  0x8a   :  { %v106_v26 = vpop.f32.mrf.mxu1  ;;  %v234_v27 = vsel %vm211_vm1, %v93_v25, 0.0  ;;  %v316_v28 = vmul.f32 %v93_v25, %v93_v25 }
  0x8b   :  { %v241_v29 = vsel %vm211_vm1, %v106_v26, 0.0  ;;  %v317_v30 = vmul.f32 %v106_v26, %v106_v26  ;;  %v235_v31 = vrot.slane %v234_v27, 4  ;;  %v188_v43 = vpack.c.bf16 %v106_v26, %v93_v25 }
  0x8c   :  { %v324_v32 = vsel %vm211_vm1, %v316_v28, 0.0  ;;  %v242_v33 = vrot.slane %v241_v29, 4 }
  0x8d   :  { %v331_v35 = vsel %vm211_vm1, %v317_v30, 0.0  ;;  %v236_v38 = vadd.f32 %v235_v31, %v234_v27  ;;  %v325_v39 = vrot.slane %v324_v32, 4  ;;  %v196_v53 = vrot.slane %v188_v43, 3 }
  0x8e   :  { %v243_v41 = vadd.f32 %v242_v33, %v241_v29  ;;  %v332_v42 = vrot.slane %v331_v35, 4 }
  0x8f   :  { %v237_v45 = vrot.slane %v236_v38, 2  ;;  %v326_v46 = vadd.f32 %v325_v39, %v324_v32  ;;  %v206_v8 = vsel %vm203_vm2, %v188_v43, %v196_v53 }
  0x90   :  { %v119_v34 = vpop.f32.mrf.mxu2  ;;  %v244_v48 = vrot.slane %v243_v41, 2  ;;  %v333_v50 = vadd.f32 %v332_v42, %v331_v35 }
  0x91   :  { %v132_v36 = vpop.f32.mrf.mxu3  ;;  %v95_v37 = vpop.f32.mrf.mxu0  ;;  %v248_v44 = vsel %vm211_vm1, %v119_v34, 0.0  ;;  %v318_v47 = vmul.f32 %v119_v34, %v119_v34  ;;  %v544_v57 = vadd.f32 %v237_v45, %v236_v38  ;;  %v327_v58 = vrot.slane %v326_v46, 2 }
  0x92   :  { %v108_v40 = vpop.f32.mrf.mxu1  ;;  %v255_v49 = vsel %vm211_vm1, %v132_v36, 0.0  ;;  %v249_v51 = vrot.slane %v248_v44, 4  ;;  %v319_v54 = vmul.f32 %v132_v36, %v132_v36  ;;  %v547_v62 = vadd.f32 %v244_v48, %v243_v41 }
  0x93   :  { %v338_v59 = vsel %vm211_vm1, %v318_v47, 0.0  ;;  %v256_v60 = vrot.slane %v255_v49, 4  ;;  %v189_v63 = vpack.c.bf16 %v132_v36, %v119_v34  ;;  %v334_v2 = vrot.slane %v333_v50, 2 }
  0x94   :  { %v250_v3 = vadd.f32 %v249_v51, %v248_v44  ;;  %v339_v4 = vrot.slane %v338_v59, 4  ;;  %v345_v5 = vsel %vm211_vm1, %v319_v54, 0.0  ;;  %v239_v7 = vrot.slane %v544_v57, 1 }
  0x95   :  { %v257_v9 = vadd.f32 %v256_v60, %v255_v49  ;;  %v554_v11 = vadd.f32 %v327_v58, %v326_v46  ;;  %v246_v12 = vrot.slane %v547_v62, 1  ;;  %v197_v13 = vrot.slane %v189_v63, 6 }
  0x96   :  { %v198_v14 = vrot.slane %v189_v63, 1  ;;  %v557_v15 = vadd.f32 %v334_v2, %v333_v50  ;;  %v251_v16 = vrot.slane %v250_v3, 2  ;;  %v346_v17 = vrot.slane %v345_v5, 4 }
  0x97   :  { %v340_v20 = vadd.f32 %v339_v4, %v338_v59  ;;  %v258_v26 = vrot.slane %v257_v9, 2  ;;  %v329_v31 = vrot.slane %v554_v11, 1 }
  0x98   :  { %v121_v52 = vpop.f32.mrf.mxu2  ;;  %v210_v32 = vsel %vm207_vm3, %v197_v13, %v198_v14  ;;  %v252_v35 = vadd.f32 %v251_v16, %v250_v3  ;;  %v347_v36 = vadd.f32 %v346_v17, %v345_v5 }
  0x99   :  { %v134_v55 = vpop.f32.mrf.mxu3  ;;  %v145_v56 = vpop.f32.mrf.mxu0  ;;  %v341_v39 = vrot.slane %v340_v20, 2  ;;  %v259_v43 = vadd.f32 %v258_v26, %v257_v9  ;;  %v212_v47 = vsel %vm211_vm1, %v206_v8, %v210_v32  ;;  %v336_v32 = vrot.slane %v557_v15, 1 }
  0x9a   :  { %v158_v61 = vpop.f32.mrf.mxu1  ;;  %v262_v0 = vsel %vm211_vm1, %v145_v56, 0.0  ;;  %v320_v1 = vmul.f32 %v145_v56, %v145_v56  ;;  %v253_v51 = vrot.slane %v252_v35, 1  ;;  %v348_v52 = vrot.slane %v347_v36, 2 }
  0x9b   :  { %v263_v6 = vrot.slane %v262_v0, 4  ;;  %v269_v18 = vsel %vm211_vm1, %v158_v61, 0.0  ;;  %v190_v27 = vpack.c.bf16 %v158_v61, %v145_v56  ;;  %v321_v28 = vmul.f32 %v158_v61, %v158_v61 }
  0x9c   :  { %v352_v10 = vsel %vm211_vm1, %v320_v1, 0.0  ;;  %v270_v23 = vrot.slane %v269_v18, 4  ;;  %v342_v56 = vadd.f32 %v341_v39, %v340_v20  ;;  %v260_v63 = vrot.slane %v259_v43, 1 }
  0x9d   :  { %v264_v21 = vadd.f32 %v263_v6, %v262_v0  ;;  %v353_v22 = vrot.slane %v352_v10, 4  ;;  %v359_v37 = vsel %vm211_vm1, %v321_v28, 0.0  ;;  %v199_v44 = vrot.slane %v190_v27, 4 }
  0x9e   :  { %v271_v33 = vadd.f32 %v270_v23, %v269_v18  ;;  %v360_v42 = vrot.slane %v359_v37, 4  ;;  %v200_v45 = vrot.slane %v190_v27, 7  ;;  %v349_v8 = vadd.f32 %v348_v52, %v347_v36 }
  0x9f   :  { %v265_v40 = vrot.slane %v264_v21, 2  ;;  %v354_v41 = vadd.f32 %v353_v22, %v352_v10  ;;  %v343_v28 = vrot.slane %v342_v56, 1 }
  0xa0   :  { %v171_v19 = vpop.f32.mrf.mxu2  ;;  %v272_v48 = vrot.slane %v271_v33, 2  ;;  %v361_v49 = vadd.f32 %v360_v42, %v359_v37  ;;  %v216_v0 = vsel %vm213_vm4, %v199_v44, %v200_v45 }
  0xa1   :  { %v184_v24 = vpop.f32.mrf.mxu3  ;;  %v147_v25 = vpop.f32.mrf.mxu0  ;;  %v276_v29 = vsel %vm211_vm1, %v171_v19, 0.0  ;;  %v322_v38 = vmul.f32 %v171_v19, %v171_v19  ;;  %v266_v58 = vadd.f32 %v265_v40, %v264_v21  ;;  %v355_v59 = vrot.slane %v354_v41, 2 }
  0xa2   :  { %v160_v30 = vpop.f32.mrf.mxu1  ;;  %v277_v34 = vrot.slane %v276_v29, 4  ;;  %v191_v60 = vpack.c.bf16 %v184_v24, %v171_v19  ;;  %v362_v1 = vrot.slane %v361_v49, 2  ;;  %v273_v3 = vadd.f32 %v272_v48, %v271_v33 }
  0xa3   :  { %v366_v50 = vsel %vm211_vm1, %v322_v38, 0.0  ;;  %v283_v10 = vsel %vm211_vm1, %v184_v24, 0.0  ;;  %v323_v13 = vmul.f32 %v184_v24, %v184_v24  ;;  %v267_v14 = vrot.slane %v266_v58, 1 }
  0xa4   :  { %v278_v46 = vadd.f32 %v277_v34, %v276_v29  ;;  %v367_v54 = vrot.slane %v366_v50, 4  ;;  %v201_v5 = vrot.slane %v191_v60, 2  ;;  %v202_v6 = vrot.slane %v191_v60, 5 }
  0xa5   :  { %v356_v16 = vadd.f32 %v355_v59, %v354_v41  ;;  %v284_v18 = vrot.slane %v283_v10, 4  ;;  %v363_v19 = vadd.f32 %v362_v1, %v361_v49  ;;  %v373_v22 = vsel %vm211_vm1, %v323_v13, 0.0 }
  0xa6   :  { %v279_v53 = vrot.slane %v278_v46, 2  ;;  %v368_v2 = vadd.f32 %v367_v54, %v366_v50  ;;  %v220_v17 = vsel %vm217_vm5, %v201_v5, %v202_v6  ;;  %v274_v23 = vrot.slane %v273_v3, 1 }
  0xa7   :  { %v222_v21 = vsel %vm221_vm6, %v216_v0, %v220_v17  ;;  %v285_v27 = vadd.f32 %v284_v18, %v283_v10  ;;  %v247_v24 = vadd.f32 %v246_v12, %v547_v62  ;;  %v350_v29 = vrot.slane %v349_v8, 1 }
  0xa8   :  { %v173_v55 = vpop.f32.mrf.mxu2  ;;  %v280_v4 = vadd.f32 %v279_v53, %v278_v46  ;;  %v369_v9 = vrot.slane %v368_v2, 2  ;;  %v224_v26 = vsel %vm223_vm7, %v212_v47, %v222_v21  ;;  %v374_v30 = vrot.slane %v373_v22, 4 }
  0xa9   :  { %v186_v61 = vpop.f32.mrf.mxu3  ;;  %226 = vst [vmem:[%s608_s2] sm:$0xff] %v224_v26  ;;  %v254_v33 = vadd.f32 %v253_v51, %v252_v35  ;;  %v261_v34 = vadd.f32 %v260_v63, %v259_v43  ;;  %v286_v36 = vrot.slane %v285_v27, 2  ;;  %v357_v37 = vrot.slane %v356_v16, 1 }
  0xaa   :  { %v370_v20 = vadd.f32 %v369_v9, %v368_v2  ;;  %v281_v25 = vrot.slane %v280_v4, 1  ;;  %v364_v38 = vrot.slane %v363_v19, 1  ;;  %v375_v40 = vadd.f32 %v374_v30, %v373_v22 }
  0xab   :  { %v268_v41 = vadd.f32 %v267_v14, %v266_v58  ;;  %v275_v42 = vadd.f32 %v274_v23, %v273_v3  ;;  %v287_v62 = vadd.f32 %v286_v36, %v285_v27  ;;  %v298_v12 = vrot.slane %v247_v24, 7 }
  0xac   :  { %v371_v39 = vrot.slane %v370_v20, 1  ;;  %v282_v44 = vadd.f32 %v281_v25, %v280_v4  ;;  %v344_v45 = vadd.f32 %v343_v28, %v342_v56  ;;  %v351_v46 = vadd.f32 %v350_v29, %v349_v8 }
  0xad   :  { %v376_v47 = vrot.slane %v375_v40, 2  ;;  %v337_v48 = vadd.f32 %v336_v32, %v557_v15  ;;  %v299_v49 = vrot.slane %v254_v33, 6  ;;  %v300_v50 = vrot.slane %v261_v34, 5 }
  0xae   :  { %v288_v52 = vrot.slane %v287_v62, 1  ;;  %v358_v35 = vadd.f32 %v357_v37, %v356_v16  ;;  %v365_v43 = vadd.f32 %v364_v38, %v363_v19  ;;  %v372_v51 = vadd.f32 %v371_v39, %v370_v20 }
  0xaf   :  { %v377_v53 = vadd.f32 %v376_v47, %v375_v40  ;;  %v301_v54 = vrot.slane %v268_v41, 4  ;;  %v302_v55 = vrot.slane %v275_v42, 3  ;;  %v303_v59 = vrot.slane %v282_v44, 2 }
  0xb0   :  { %v289_v58 = vadd.f32 %v288_v52, %v287_v62  ;;  %v240_v60 = vadd.f32 %v239_v7, %v544_v57  ;;  %v389_v56 = vrot.slane %v344_v45, 6  ;;  %v390_v61 = vrot.slane %v351_v46, 5 }
  0xb1   :  { %v378_v63 = vrot.slane %v377_v53, 1  ;;  %v330_v15 = vadd.f32 %v329_v31, %v554_v11  ;;  %v388_v0 = vrot.slane %v337_v48, 7  ;;  %v306_v1 = vsel %vm207_vm3, %v299_v49, %v300_v50 }
  0xb2   :  { %v304_v2 = vrot.slane %v289_v58, 1  ;;  %v391_v3 = vrot.slane %v358_v35, 4  ;;  %v392_v4 = vrot.slane %v365_v43, 3  ;;  %v393_v5 = vrot.slane %v372_v51, 2 }
  0xb3   :  { %v379_v6 = vadd.f32 %v378_v63, %v377_v53  ;;  %v305_v8 = vsel %vm203_vm2, %v240_v60, %v298_v12  ;;  %v308_v9 = vsel %vm213_vm4, %v301_v54, %v302_v55  ;;  %v396_v10 = vsel %vm207_vm3, %v389_v56, %v390_v61 }
  0xb4   :  { %v309_v57 = vsel %vm217_vm5, %v303_v59, %v304_v2  ;;  %v307_v7 = vsel %vm211_vm1, %v305_v8, %v306_v1  ;;  %v395_v14 = vsel %vm203_vm2, %v330_v15, %v388_v0  ;;  %v398_v16 = vsel %vm213_vm4, %v391_v3, %v392_v4 }
  0xb5   :  { %v310_v11 = vsel %vm221_vm6, %v308_v9, %v309_v57  ;;  %v394_v31 = vrot.slane %v379_v6, 1  ;;  %v397_v18 = vsel %vm211_vm1, %v395_v14, %v396_v10 }
  0xb6   :  { %v311_v13 = vsel %vm223_vm7, %v307_v7, %v310_v11 }
  0xb7   :  { %v399_v17 = vsel %vm217_vm5, %v393_v5, %v394_v31  ;;  %314 = vst [vmem:[%s609_s3] sm:$0xff] %v311_v13 }
  0xb8   :  { %v400_v19 = vsel %vm221_vm6, %v398_v16, %v399_v17 }
  0xb9   :  { %v401_v20 = vsel %vm223_vm7, %v397_v18, %v400_v19 }
  0xba   :  { %404 = vst [vmem:[%s610_s4] sm:$0xff] %v401_v20 }
  0xbb   :  { %417 = vsyncpa [#allocation3], 1 }

// kernel: lsun_decoder_forward.10
= control target key start
LH: loop header
LB: loop body
LE: loop exit
PB: predicated region body
PF: predicated region fallthrough
CT: control target
= control target key end

     0   :  { %vm33_vm0 = vcmask 1041408   ;;  %vm35_vm1 = vcmask 1045508   ;;  %vm37_vm2 = vcmask 1043456   ;;  %vm110_vm3 = vcmask 1040384   ;;  %s182_s0 = inlined_call_operand.vmem [shape: bf16[2,1024], index: 0, kind: input, shape index: {}]   ;;  %s183_s1 = inlined_call_operand.vmem [shape: f32[1,1024], index: 1, kind: input, shape index: {}]   ;;  %s184_s2 = inlined_call_operand.vmem [shape: f32[1,1024], index: 2, kind: input, shape index: {}]   ;;  %s185_s3 = inlined_call_operand.vmem [shape: bf16[2,1024], index: 3, kind: output, shape index: {}]  }
   0x1   :  { %v14_v0 = vld [vmem:[%s182_s0] sm:$0xff]  ;;  %vm114_vm4 = vcmask 1042434   ;;  %vm119_vm5 = vcmask 1044484   ;;  %vm123_vm6 = vcmask 1046534  }
   0x2   :  { %v17_v1 = vld [vmem:[%s183_s1] sm:$0xff]  ;;  %v15_v3 = vunpack.c.l.bf16 %v14_v0  ;;  %v16_v14 = vunpack.c.h.bf16 %v14_v0 }
   0x3   :  { %v46_v2 = vld [vmem:[%s184_s2] sm:$0xff]  ;;  %v19_v4 = vperm.slane %v17_v1, 0  ;;  %v20_v5 = vperm.slane %v17_v1, 1  ;;  %v21_v6 = vperm.slane %v17_v1, 2  ;;  %v22_v7 = vperm.slane %v17_v1, 3 }
   0x4   :  { %v48_v8 = vperm.slane %v46_v2, 0  ;;  %v49_v9 = vperm.slane %v46_v2, 1  ;;  %v50_v10 = vperm.slane %v46_v2, 2  ;;  %v51_v13 = vperm.slane %v46_v2, 3 }
   0x5   :  { %v27_v11 = vrot.slane %v20_v5, 6  ;;  %v28_v12 = vrot.slane %v21_v6, 4  ;;  %v29_v15 = vrot.slane %v22_v7, 2  ;;  %v23_v18 = vperm.slane %v17_v1, 4 }
   0x6   :  { %v56_v16 = vrot.slane %v49_v9, 6  ;;  %v57_v17 = vrot.slane %v50_v10, 4  ;;  %v58_v20 = vrot.slane %v51_v13, 2  ;;  %v24_v21 = vperm.slane %v17_v1, 5 }
   0x7   :  { %v34_v19 = vsel %vm33_vm0, %v19_v4, %v27_v11  ;;  %v25_v22 = vperm.slane %v17_v1, 6  ;;  %v36_v23 = vsel %vm35_vm1, %v28_v12, %v29_v15  ;;  %v26_v25 = vperm.slane %v17_v1, 7 }
   0x8   :  { %v62_v24 = vsel %vm33_vm0, %v48_v8, %v56_v16  ;;  %v52_v26 = vperm.slane %v46_v2, 4  ;;  %v38_v27 = vsel %vm37_vm2, %v34_v19, %v36_v23  ;;  %v63_v28 = vsel %vm35_vm1, %v57_v17, %v58_v20 }
   0x9   :  { %v30_v29 = vrot.slane %v24_v21, 6  ;;  %v31_v30 = vrot.slane %v25_v22, 4  ;;  %v44_v31 = vmul.f32 %v38_v27, %v15_v3  ;;  %v64_v32 = vsel %vm37_vm2, %v62_v24, %v63_v28 }
   0xa   :  { %v32_v33 = vrot.slane %v26_v25, 2  ;;  %v53_v34 = vperm.slane %v46_v2, 5  ;;  %v54_v36 = vperm.slane %v46_v2, 6  ;;  %v55_v37 = vperm.slane %v46_v2, 7 }
   0xb   :  { %v39_v35 = vsel %vm33_vm0, %v23_v18, %v30_v29  ;;  %v70_v38 = vadd.f32 %v64_v32, %v44_v31 }
   0xc   :  { %v40_v39 = vsel %vm35_vm1, %v31_v30, %v32_v33  ;;  %v59_v40 = vrot.slane %v53_v34, 6  ;;  %v60_v42 = vrot.slane %v54_v36, 4  ;;  %v61_v43 = vrot.slane %v55_v37, 2 }
   0xd   :  { %v41_v41 = vsel %vm37_vm2, %v39_v35, %v40_v39  ;;  %v72_v44 = vmax.f32 %v70_v38, 0.0 }
   0xe   :  { %v45_v45 = vmul.f32 %v41_v41, %v16_v14  ;;  %v65_v46 = vsel %vm33_vm0, %v52_v26, %v59_v40  ;;  %v66_v47 = vsel %vm35_vm1, %v60_v42, %v61_v43 }
   0xf   :  { %76 = vst [vmem:[#allocation1] ss:$4 sm:$0xff] %v72_v44  ;;  %v67_v48 = vsel %vm37_vm2, %v65_v46, %v66_v47 }
  0x10   :  { %v71_v49 = vadd.f32 %v67_v48, %v45_v45 }
  0x12   :  { %v73_v50 = vmax.f32 %v71_v49, 0.0 }
  0x14   :  { %78 = vst [vmem:[#allocation1 + $0x20] ss:$4 sm:$0xff] %v73_v50 }
  0x16   :  { %v79_v51 = vld.sshfl [vmem:[#allocation1] sm:$0xff pattern:$0x73625140]  ;;  %v80_v52 = vld.sshfl [vmem:[#allocation1 + $0x8] sm:$0xff pattern:$0x73625140] }
  0x17   :  { %v81_v53 = vld.sshfl [vmem:[#allocation1 + $0x10] sm:$0xff pattern:$0x73625140]  ;;  %v82_v54 = vld.sshfl [vmem:[#allocation1 + $0x18] sm:$0xff pattern:$0x73625140]  ;;  %v95_v55 = vpack.c.bf16 %v80_v52, %v79_v51 }
  0x18   :  { %v96_v56 = vpack.c.bf16 %v82_v54, %v81_v53 }
  0x19   :  { %v103_v57 = vrot.slane %v95_v55, 3 }
  0x1a   :  { %v104_v58 = vrot.slane %v96_v56, 6  ;;  %v105_v59 = vrot.slane %v96_v56, 1 }
  0x1b   :  { %v83_v60 = vld.sshfl [vmem:[#allocation1 + $0x20] sm:$0xff pattern:$0x73625140]  ;;  %v84_v61 = vld.sshfl [vmem:[#allocation1 + $0x28] sm:$0xff pattern:$0x73625140]  ;;  %v113_v2 = vsel %vm110_vm3, %v95_v55, %v103_v57 }
  0x1c   :  { %v85_v62 = vld.sshfl [vmem:[#allocation1 + $0x30] sm:$0xff pattern:$0x73625140]  ;;  %v86_v63 = vld.sshfl [vmem:[#allocation1 + $0x38] sm:$0xff pattern:$0x73625140]  ;;  %v97_v0 = vpack.c.bf16 %v84_v61, %v83_v60  ;;  %v117_v3 = vsel %vm114_vm4, %v104_v58, %v105_v59 }
  0x1d   :  { %v98_v1 = vpack.c.bf16 %v86_v63, %v85_v62  ;;  %v118_v8 = vsel %vm33_vm0, %v113_v2, %v117_v3 }
  0x1e   :  { %v106_v4 = vrot.slane %v97_v0, 4  ;;  %v107_v5 = vrot.slane %v97_v0, 7 }
  0x1f   :  { %v108_v6 = vrot.slane %v98_v1, 2  ;;  %v109_v7 = vrot.slane %v98_v1, 5 }
  0x20   :  { %v122_v9 = vsel %vm119_vm5, %v106_v4, %v107_v5 }
  0x21   :  { %v126_v10 = vsel %vm123_vm6, %v108_v6, %v109_v7 }
  0x22   :  { %v127_v11 = vsel %vm35_vm1, %v122_v9, %v126_v10 }
  0x23   :  { %v128_v12 = vsel %vm37_vm2, %v118_v8, %v127_v11 }
  0x24   :  { %130 = vst [vmem:[%s185_s3] sm:$0xff] %v128_v12 }

// kernel: tile.58
= control target key start
LH: loop header
LB: loop body
LE: loop exit
PB: predicated region body
PF: predicated region fallthrough
CT: control target
= control target key end

     0   :  { %s22_s0 = inlined_call_operand.vmem [shape: f32[32], index: 0, kind: input, shape index: {}]   ;;  %s23_s1 = inlined_call_operand.vmem [shape: f32[4,32], index: 1, kind: output, shape index: {}]  }
   0x1   :  { %v4_v0 = vld [vmem:[%s22_s0] ss:$0 sm:$0xff] }
   0x2   :  { %5 = vst [vmem:[%s23_s1] sm:$0xf] %v4_v0 }

// kernel: tile.59
= control target key start
LH: loop header
LB: loop body
LE: loop exit
PB: predicated region body
PF: predicated region fallthrough
CT: control target
= control target key end

     0   :  { %s37_s8 = smov 32   ;;  %s38_s9 = smov 64   ;;  %vm7_vm0 = vcmask 261120   ;;  %vm13_vm1 = vcmask 1048320   ;;  %vm19_vm2 = vcmask 785920   ;;  %vm25_vm3 = vcmask 523520   ;;  %s55_s0 = inlined_call_operand.vmem [shape: f32[4,32], index: 0, kind: input, shape index: {}]   ;;  %s56_s1 = inlined_call_operand.vmem [shape: f32[1,128], index: 1, kind: output, shape index: {}]  }
   0x1   :  { %v4_v0 = vld [vmem:[%s55_s0] sm:$0xf]  ;;  %s36_s0 = smov 96  }
   0x2   :  { %5 = vst [vmem:[#allocation1] sm:$0xf] %v4_v0 }
   0x9   :  { %v10_v1 = vld [vmem:[#allocation1 + $0x3] sm:$0x1]   ;;  %v22_v2 = vld [vmem:[#allocation1 + $0x1] sm:$0x1]   ;;  %v16_v3 = vld [vmem:[#allocation1 + $0x2] sm:$0x1]  }
   0xa   :  { %11 = vrot.lane.b32.xlu0 %v10_v1, %s36_s0  ;;  %23 = vrot.lane.b32.xlu1 %v22_v2, %s37_s8  ;;  %v6_v4 = vld [vmem:[#allocation1] sm:$0x1]  }
   0xb   :  { %8 = vst.msk [vmem:[#allocation0] sm:$0x1] %vm7_vm0, %v6_v4  }
  0x12   :  { %17 = vrot.lane.b32.xlu0 %v16_v3, %s38_s9 }
  0x7c   :  { %v12_v5 = vpop.permute.xlu0 %11   ;;  %v24_v6 = vpop.permute.xlu1 %23  }
  0x7d   :  { %14 = vst.msk [vmem:[#allocation0] sm:$0x1] %vm13_vm1, %v12_v5  }
  0x84   :  { %v18_v7 = vpop.permute.xlu0 %17  }
  0x85   :  { %20 = vst.msk [vmem:[#allocation0] sm:$0x1] %vm19_vm2, %v18_v7  }
  0x86   :  { %26 = vst.msk [vmem:[#allocation0] sm:$0x1] %vm25_vm3, %v24_v6  }
  0x8d   :  { %v29_v8 = vld [vmem:[#allocation0] sm:$0x1] }
  0x8e   :  { %32 = vst [vmem:[%s56_s1] sm:$0x1] %v29_v8 }

// kernel: lsun_decoder_forward.12
= control target key start
LH: loop header
LB: loop body
LE: loop exit
PB: predicated region body
PF: predicated region fallthrough
CT: control target
= control target key end

     0   :  { %s114_s0 = inlined_call_operand.vmem [shape: bf16[32,128], index: 0, kind: input, shape index: {}]   ;;  %s115_s1 = inlined_call_operand.vmem [shape: f32[1,128], index: 1, kind: input, shape index: {}]   ;;  %s116_s2 = inlined_call_operand.vmem [shape: f32[1,128], index: 2, kind: input, shape index: {}]   ;;  %s117_s3 = inlined_call_operand.vmem [shape: bf16[32,128], index: 3, kind: output, shape index: {}]  }
   0x1   :  { %v55_v0 = vld [vmem:[%s114_s0] sm:$0xff]   ;;  %v72_v5 = vld [vmem:[%s114_s0 + $0x8] sm:$0xff]  }
   0x2   :  { %v74_v1 = vld [vmem:[%s115_s1] ss:$0 sm:$0xff]  ;;  %v56_v2 = vunpack.c.l.bf16 %v55_v0  ;;  %v57_v3 = vunpack.c.h.bf16 %v55_v0  ;;  %v60_v6 = vunpack.c.l.bf16 %v72_v5  ;;  %v61_v7 = vunpack.c.h.bf16 %v72_v5 }
   0x3   :  { %v75_v4 = vld [vmem:[%s116_s2] ss:$0 sm:$0xff] }
   0x4   :  { %v26_v8 = vmul.f32 %v74_v1, %v56_v2  ;;  %v27_v9 = vmul.f32 %v74_v1, %v57_v3  ;;  %v28_v10 = vmul.f32 %v74_v1, %v60_v6  ;;  %v29_v11 = vmul.f32 %v74_v1, %v61_v7 }
   0x6   :  { %v34_v12 = vadd.f32 %v75_v4, %v26_v8  ;;  %v35_v13 = vadd.f32 %v75_v4, %v27_v9  ;;  %v36_v14 = vadd.f32 %v75_v4, %v28_v10  ;;  %v37_v15 = vadd.f32 %v75_v4, %v29_v11 }
   0x8   :  { %v38_v16 = vmax.f32 %v34_v12, 0.0  ;;  %v39_v17 = vmax.f32 %v35_v13, 0.0  ;;  %v40_v18 = vmax.f32 %v36_v14, 0.0  ;;  %v41_v19 = vmax.f32 %v37_v15, 0.0 }
   0xa   :  { %v65_v20 = vpack.c.bf16 %v39_v17, %v38_v16  ;;  %v70_v21 = vpack.c.bf16 %v41_v19, %v40_v18 }
   0xc   :  { %66 = vst [vmem:[%s117_s3] sm:$0xff] %v65_v20  }
   0xd   :  { %73 = vst [vmem:[%s117_s3 + $0x8] sm:$0xff] %v70_v21  }

// kernel: lsun_decoder_forward.11
= control target key start
LH: loop header
LB: loop body
LE: loop exit
PB: predicated region body
PF: predicated region fallthrough
CT: control target
= control target key end

     0   :  { %10 = vsyncpa [#allocation3], 0  ;;  %s815_s18 = smov [#allocation2]   ;;  %s816_s20 = smov 64   ;;  %s931_s0 = inlined_call_operand.vmem [shape: bf16[32,576], index: 0, kind: input, shape index: {}]   ;;  %s932_s1 = inlined_call_operand.hbm [shape: bf16[576,128], index: 1, kind: input, shape index: {}]   ;;  %s933_s2 = inlined_call_operand.vmem [shape: bf16[32,128], index: 2, kind: output, shape index: {0}]   ;;  %s934_s3 = inlined_call_operand.vmem [shape: f32[1,128], index: 3, kind: output, shape index: {1}]   ;;  %s935_s4 = inlined_call_operand.vmem [shape: f32[1,128], index: 4, kind: output, shape index: {2}]  }
   0x1   :  { %s17_s17 = sshll.u32 %s932_s1, 4  ;;  %s19_s19 = sshll.u32 %s815_s18, 4  ;;  %s18_s17 = int_to_ptr.hbm [resolvable:$true] %s17_s17  ;;  %s20_s19 = int_to_ptr.vmem [resolvable:$true] %s19_s19 }
   0x2   :  { %s817_s21 = smov 4  }
   0x3   :  { %25 = dma.hbm_to_vmem [thread:$0]  %s18_s17, 4608, %s20_s19, [#allocation3], %s816_s20, %s816_s20, %s817_s21  }
   0x4   :  { %813 = dma.done.wait [#allocation3], 4608  }
   0x5   :  { %814 = vsyncadd [#allocation3], 4294962688  ;;  %v741_v0 = vld [vmem:[#allocation2 + $0x38] sm:$0xff]  ;;  %v740_v4 = vld [vmem:[#allocation2 + $0x30] sm:$0xff]  ;;  %vm381_vm0 = vcmask 523264  }
   0x6   :  { %v749_v1 = vld [vmem:[#allocation2 + $0x78] sm:$0xff]  ;;  %388 = vmatpush.bf16.msra.mxu0 %v741_v0  ;;  %v748_v5 = vld [vmem:[#allocation2 + $0x70] sm:$0xff]  ;;  %v739_v8 = vld [vmem:[#allocation2 + $0x28] sm:$0xff] }
   0x7   :  { %v757_v2 = vld [vmem:[#allocation2 + $0xb8] sm:$0xff]  ;;  %407 = vmatpush.bf16.msra.mxu1 %v749_v1  ;;  %v756_v6 = vld [vmem:[#allocation2 + $0xb0] sm:$0xff]  ;;  %v747_v9 = vld [vmem:[#allocation2 + $0x68] sm:$0xff] }
   0x8   :  { %v765_v3 = vld [vmem:[#allocation2 + $0xf8] sm:$0xff]  ;;  %426 = vmatpush.bf16.msra.mxu2 %v757_v2  ;;  %v764_v7 = vld [vmem:[#allocation2 + $0xf0] sm:$0xff]  ;;  %v755_v10 = vld [vmem:[#allocation2 + $0xa8] sm:$0xff] }
   0x9   :  { %445 = vmatpush.bf16.msra.mxu3 %v765_v3  ;;  %v763_v11 = vld [vmem:[#allocation2 + $0xe8] sm:$0xff]  ;;  %v738_v12 = vld [vmem:[#allocation2 + $0x20] sm:$0xff]  ;;  %v737_v16 = vld [vmem:[#allocation2 + $0x18] sm:$0xff] }
   0xa   :  { %389 = vmatpush.bf16.msra.mxu0 %v740_v4  ;;  %v746_v13 = vld [vmem:[#allocation2 + $0x60] sm:$0xff]  ;;  %v745_v17 = vld [vmem:[#allocation2 + $0x58] sm:$0xff]  ;;  %v736_v20 = vld [vmem:[#allocation2 + $0x10] sm:$0xff] }
   0xb   :  { %408 = vmatpush.bf16.msra.mxu1 %v748_v5  ;;  %v754_v14 = vld [vmem:[#allocation2 + $0xa0] sm:$0xff]  ;;  %v753_v18 = vld [vmem:[#allocation2 + $0x98] sm:$0xff]  ;;  %v744_v21 = vld [vmem:[#allocation2 + $0x50] sm:$0xff] }
   0xc   :  { %427 = vmatpush.bf16.msra.mxu2 %v756_v6  ;;  %v762_v15 = vld [vmem:[#allocation2 + $0xe0] sm:$0xff]  ;;  %v761_v19 = vld [vmem:[#allocation2 + $0xd8] sm:$0xff]  ;;  %v752_v22 = vld [vmem:[#allocation2 + $0x90] sm:$0xff] }
   0xd   :  { %446 = vmatpush.bf16.msra.mxu3 %v764_v7  ;;  %v760_v23 = vld [vmem:[#allocation2 + $0xd0] sm:$0xff]  ;;  %v735_v24 = vld [vmem:[#allocation2 + $0x8] sm:$0xff]  ;;  %v734_v28 = vld [vmem:[#allocation2] sm:$0xff] }
   0xe   :  { %390 = vmatpush.bf16.msra.mxu0 %v739_v8  ;;  %v743_v25 = vld [vmem:[#allocation2 + $0x48] sm:$0xff]  ;;  %v742_v29 = vld [vmem:[#allocation2 + $0x40] sm:$0xff]  ;;  %v726_v33 = vld [vmem:[%s931_s0 + $0x10] sm:$0xf0] }
   0xf   :  { %409 = vmatpush.bf16.msra.mxu1 %v747_v9  ;;  %v751_v26 = vld [vmem:[#allocation2 + $0x88] sm:$0xff]  ;;  %v750_v30 = vld [vmem:[#allocation2 + $0x80] sm:$0xff]  ;;  %v542_v35 = vld [vmem:[%s931_s0 + $0x14] sm:$0xf0] }
  0x10   :  { %428 = vmatpush.bf16.msra.mxu2 %v755_v10  ;;  %v759_v27 = vld [vmem:[#allocation2 + $0xc8] sm:$0xff]  ;;  %v758_v31 = vld [vmem:[#allocation2 + $0xc0] sm:$0xff]  ;;  %v727_v37 = vld [vmem:[%s931_s0 + $0x18] sm:$0xf0]  ;;  %v818_v10 = vmov 0.0  }
  0x11   :  { %447 = vmatpush.bf16.msra.mxu3 %v763_v11  ;;  %v540_v32 = vld [vmem:[%s931_s0] sm:$0xf]  ;;  %v724_v34 = vld [vmem:[%s931_s0 + $0x4] sm:$0xf]  ;;  %v548_v36 = vld [vmem:[%s931_s0 + $0x8] sm:$0xf] }
  0x12   :  { %391 = vmatpush.bf16.msra.mxu0 %v738_v12  ;;  %v725_v38 = vld [vmem:[%s931_s0 + $0xc] sm:$0xf]  ;;  %v550_v39 = vld [vmem:[%s931_s0 + $0x1c] sm:$0xf0]  ;;  %v769_v40 = vld [vmem:[#allocation2 + $0x118] sm:$0xff]  ;;  %v541_v41 = vor.u32 %v726_v33, %v540_v32  ;;  %v545_v42 = vor.u32 %v724_v34, %v542_v35  ;;  %v549_v43 = vor.u32 %v727_v37, %v548_v36  ;;  %495 = vst [vmem:[%s934_s3] sm:$0x1] %v818_v10 }
  0x13   :  { %410 = vmatpush.bf16.msra.mxu1 %v746_v13  ;;  %v553_v44 = vor.u32 %v725_v38, %v550_v39  ;;  %v768_v45 = vld [vmem:[#allocation2 + $0x110] sm:$0xff]  ;;  %v767_v46 = vld [vmem:[#allocation2 + $0x108] sm:$0xff]  ;;  %v766_v47 = vld [vmem:[#allocation2 + $0x100] sm:$0xff]  ;;  %496 = vst [vmem:[%s935_s4] sm:$0x1] %v818_v10 }
  0x14   :  { %429 = vmatpush.bf16.msra.mxu2 %v754_v14  ;;  %v560_v48 = vld [vmem:[%s931_s0 + $0x28] sm:$0xf]  ;;  %v731_v49 = vld [vmem:[%s931_s0 + $0x38] sm:$0xf0]  ;;  %v729_v50 = vld [vmem:[%s931_s0 + $0x2c] sm:$0xf] }
  0x15   :  { %448 = vmatpush.bf16.msra.mxu3 %v762_v15  ;;  %v562_v51 = vld [vmem:[%s931_s0 + $0x3c] sm:$0xf0]  ;;  %v568_v52 = vld [vmem:[%s931_s0 + $0x30] sm:$0xf]  ;;  %v732_v53 = vld [vmem:[%s931_s0 + $0x40] sm:$0xf0]  ;;  %v561_v56 = vor.u32 %v731_v49, %v560_v48 }
  0x16   :  { %392 = vmatpush.bf16.msra.mxu0 %v737_v16  ;;  %v730_v54 = vld [vmem:[%s931_s0 + $0x34] sm:$0xf]  ;;  %v570_v55 = vld [vmem:[%s931_s0 + $0x44] sm:$0xf0]  ;;  %v565_v57 = vor.u32 %v729_v50, %v562_v51  ;;  %v569_v58 = vor.u32 %v732_v53, %v568_v52  ;;  %v556_v60 = vld [vmem:[%s931_s0 + $0x10] sm:$0xf] }
  0x17   :  { %411 = vmatpush.bf16.msra.mxu1 %v745_v17  ;;  %v573_v59 = vor.u32 %v730_v54, %v570_v55  ;;  %v728_v61 = vld [vmem:[%s931_s0 + $0x20] sm:$0xf0]  ;;  %v576_v62 = vld [vmem:[%s931_s0 + $0x38] sm:$0xf]  ;;  %v733_v63 = vld [vmem:[%s931_s0 + $0x48] sm:$0xf0] }
  0x18   :  { %430 = vmatpush.bf16.msra.mxu2 %v753_v18  ;;  %v557_v0 = vor.u32 %v728_v61, %v556_v60  ;;  %v577_v1 = vor.u32 %v733_v63, %v576_v62 }
  0x19   :  { %449 = vmatpush.bf16.msra.mxu3 %v761_v19  ;;  %v497_v60 = vld [vmem:[%s934_s3] sm:$0x1] }
  0x1a   :  { %393 = vmatpush.bf16.msra.mxu0 %v736_v20  ;;  %v509_v63 = vld [vmem:[%s935_s4] sm:$0x1] }
  0x1b   :  { %412 = vmatpush.bf16.msra.mxu1 %v744_v21 }
  0x1c   :  { %431 = vmatpush.bf16.msra.mxu2 %v752_v22 }
  0x1d   :  { %450 = vmatpush.bf16.msra.mxu3 %v760_v23 }
  0x1e   :  { %394 = vmatpush.bf16.msra.mxu0 %v735_v24 }
  0x1f   :  { %413 = vmatpush.bf16.msra.mxu1 %v743_v25 }
  0x20   :  { %432 = vmatpush.bf16.msra.mxu2 %v751_v26 }
  0x21   :  { %451 = vmatpush.bf16.msra.mxu3 %v759_v27 }
  0x22   :  { %395 = vmatpush.bf16.msra.mxu0 %v734_v28 }
  0x23   :  { %414 = vmatpush.bf16.msra.mxu1 %v742_v29 }
  0x24   :  { %433 = vmatpush.bf16.msra.mxu2 %v750_v30 }
  0x25   :  { %452 = vmatpush.bf16.msra.mxu3 %v758_v31  ;;  %396 = vmatmul.bf16.vlgmr.msra.gmra.mxu0 %v541_v41 }
  0x26   :  { %468 = vmatpush.bf16.msrb.mxu0 %v769_v40  ;;  %415 = vmatmul.bf16.vlgmr.msra.gmra.mxu1 %v545_v42 }
  0x27   :  { %781 = vmatpush.bf16.msrb.mxu1 %v769_v40  ;;  %434 = vmatmul.bf16.vlgmr.msra.gmra.mxu2 %v549_v43 }
  0x28   :  { %453 = vmatmul.bf16.vlgmr.msra.gmra.mxu3 %v553_v44 }
  0x2a   :  { %469 = vmatpush.bf16.msrb.mxu0 %v768_v45 }
  0x2b   :  { %782 = vmatpush.bf16.msrb.mxu1 %v768_v45 }
  0x2e   :  { %470 = vmatpush.bf16.msrb.mxu0 %v767_v46 }
  0x2f   :  { %783 = vmatpush.bf16.msrb.mxu1 %v767_v46 }
  0x32   :  { %471 = vmatpush.bf16.msrb.mxu0 %v766_v47 }
  0x33   :  { %784 = vmatpush.bf16.msrb.mxu1 %v766_v47 }
  0x35   :  { %401 = vmatmul.bf16.gmra.mxu0 %v561_v56 }
  0x36   :  { %420 = vmatmul.bf16.gmra.mxu1 %v565_v57 }
  0x37   :  { %439 = vmatmul.bf16.gmra.mxu2 %v569_v58 }
  0x38   :  { %458 = vmatmul.bf16.gmra.mxu3 %v573_v59 }
  0x45   :  { %722 = vmatmul.msk.bf16.vlgmr.msrb.gmra.mxu0 %vm381_vm0, %v557_v0 }
  0x46   :  { %723 = vmatmul.msk.bf16.vlgmr.msrb.gmra.mxu1 %vm381_vm0, %v577_v1 }
  0xa2   :  { %v397_v2 = vpop.f32.mrf.mxu0 }
  0xa3   :  { %v416_v3 = vpop.f32.mrf.mxu1 }
  0xa4   :  { %v417_v17 = vadd.f32 %v416_v3, %v397_v2 }
  0xaa   :  { %v435_v4 = vpop.f32.mrf.mxu2  ;;  %v399_v6 = vpop.f32.mrf.mxu0 }
  0xab   :  { %v454_v5 = vpop.f32.mrf.mxu3  ;;  %v418_v7 = vpop.f32.mrf.mxu1  ;;  %v436_v19 = vadd.f32 %v435_v4, %v417_v17 }
  0xac   :  { %v419_v22 = vadd.f32 %v418_v7, %v399_v6 }
  0xad   :  { %v455_v28 = vadd.f32 %v454_v5, %v436_v19 }
  0xb2   :  { %v437_v8 = vpop.f32.mrf.mxu2  ;;  %v402_v11 = vpop.f32.mrf.mxu0 }
  0xb3   :  { %v456_v9 = vpop.f32.mrf.mxu3  ;;  %v421_v12 = vpop.f32.mrf.mxu1  ;;  %v438_v25 = vadd.f32 %v437_v8, %v419_v22 }
  0xb4   :  { %v422_v23 = vadd.f32 %v421_v12, %v402_v11 }
  0xb5   :  { %v457_v31 = vadd.f32 %v456_v9, %v438_v25 }
  0xba   :  { %v440_v13 = vpop.f32.mrf.mxu2  ;;  %v404_v14 = vpop.f32.mrf.mxu0 }
  0xbb   :  { %v423_v15 = vpop.f32.mrf.mxu1  ;;  %v459_v16 = vpop.f32.mrf.mxu3  ;;  %v441_v26 = vadd.f32 %v440_v13, %v422_v23 }
  0xbc   :  { %v424_v24 = vadd.f32 %v423_v15, %v404_v14 }
  0xbd   :  { %v460_v32 = vadd.f32 %v459_v16, %v441_v26 }
  0xc2   :  { %v442_v18 = vpop.f32.mrf.mxu2  ;;  %v473_v20 = vpop.f32.mrf.mxu0 }
  0xc3   :  { %v478_v21 = vpop.f32.mrf.mxu1  ;;  %v443_v27 = vadd.f32 %v442_v18, %v424_v24  ;;  %v461_v29 = vpop.f32.mrf.mxu3  ;;  %v474_v30 = vadd.f32 %v473_v20, %v455_v28 }
  0xc4   :  { %v479_v36 = vadd.f32 %v478_v21, %v460_v32 }
  0xc5   :  { %v462_v33 = vadd.f32 %v461_v29, %v443_v27  ;;  %v510_v39 = vmul.f32 %v474_v30, %v474_v30 }
  0xc6   :  { %v512_v44 = vmul.f32 %v479_v36, %v479_v36 }
  0xca   :  { %v475_v34 = vpop.f32.mrf.mxu0 }
  0xcb   :  { %v480_v35 = vpop.f32.mrf.mxu1  ;;  %v476_v37 = vadd.f32 %v475_v34, %v457_v31 }
  0xcc   :  { %v481_v38 = vadd.f32 %v480_v35, %v462_v33 }
  0xcd   :  { %v773_v40 = vpack.c.bf16 %v476_v37, %v474_v30  ;;  %v498_v41 = vadd.f32 %v476_v37, %v474_v30  ;;  %v511_v42 = vmul.f32 %v476_v37, %v476_v37 }
  0xce   :  { %v778_v43 = vpack.c.bf16 %v481_v38, %v479_v36  ;;  %v513_v48 = vmul.f32 %v481_v38, %v481_v38 }
  0xcf   :  { %774 = vst [vmem:[%s933_s2] sm:$0xff] %v773_v40   ;;  %v514_v45 = vadd.f32 %v511_v42, %v510_v39  ;;  %v499_v46 = vadd.f32 %v498_v41, %v479_v36 }
  0xd0   :  { %780 = vst [vmem:[%s933_s2 + $0x8] sm:$0xff] %v778_v43  }
  0xd1   :  { %v500_v47 = vadd.f32 %v499_v46, %v481_v38  ;;  %v515_v49 = vadd.f32 %v514_v45, %v512_v44 }
  0xd3   :  { %v501_v50 = vrot.slane %v500_v47, 4  ;;  %v516_v51 = vadd.f32 %v515_v49, %v513_v48 }
  0xd5   :  { %v502_v52 = vadd.f32 %v501_v50, %v500_v47  ;;  %v517_v53 = vrot.slane %v516_v51, 4 }
  0xd7   :  { %v503_v54 = vrot.slane %v502_v52, 2  ;;  %v518_v55 = vadd.f32 %v517_v53, %v516_v51 }
  0xd9   :  { %v504_v56 = vadd.f32 %v503_v54, %v502_v52  ;;  %v519_v57 = vrot.slane %v518_v55, 2 }
  0xdb   :  { %v505_v58 = vrot.slane %v504_v56, 1  ;;  %v520_v59 = vadd.f32 %v519_v57, %v518_v55 }
  0xdd   :  { %v506_v61 = vadd.f32 %v505_v58, %v504_v56  ;;  %v521_v62 = vrot.slane %v520_v59, 1 }
  0xdf   :  { %v507_v0 = vadd.f32 %v506_v61, %v497_v60  ;;  %v522_v1 = vadd.f32 %v521_v62, %v520_v59 }
  0xe1   :  { %508 = vst [vmem:[%s934_s3] sm:$0x1] %v507_v0  ;;  %v523_v2 = vadd.f32 %v522_v1, %v509_v63 }
  0xe3   :  { %524 = vst [vmem:[%s935_s4] sm:$0x1] %v523_v2 }
  0xe4   :  { %537 = vsyncpa [#allocation3], 1 }

// kernel: tile.68
= control target key start
LH: loop header
LB: loop body
LE: loop exit
PB: predicated region body
PF: predicated region fallthrough
CT: control target
= control target key end

     0   :  { %s22_s0 = inlined_call_operand.vmem [shape: f32[16], index: 0, kind: input, shape index: {}]   ;;  %s23_s1 = inlined_call_operand.vmem [shape: f32[4,16], index: 1, kind: output, shape index: {}]  }
   0x1   :  { %v4_v0 = vld [vmem:[%s22_s0] ss:$0 sm:$0xff] }
   0x2   :  { %5 = vst [vmem:[%s23_s1] sm:$0xf] %v4_v0 }

// kernel: tile.69
= control target key start
LH: loop header
LB: loop body
LE: loop exit
PB: predicated region body
PF: predicated region fallthrough
CT: control target
= control target key end

     0   :  { %s37_s8 = smov 16   ;;  %s38_s9 = smov 32   ;;  %vm7_vm0 = vcmask 130048   ;;  %vm13_vm1 = vcmask 523648   ;;  %vm19_vm2 = vcmask 392448   ;;  %vm25_vm3 = vcmask 261248   ;;  %s55_s0 = inlined_call_operand.vmem [shape: f32[4,16], index: 0, kind: input, shape index: {}]   ;;  %s56_s1 = inlined_call_operand.vmem [shape: f32[1,64], index: 1, kind: output, shape index: {}]  }
   0x1   :  { %v4_v0 = vld [vmem:[%s55_s0] sm:$0xf]  ;;  %s36_s0 = smov 48  }
   0x2   :  { %5 = vst [vmem:[#allocation1] sm:$0xf] %v4_v0 }
   0x9   :  { %v10_v1 = vld [vmem:[#allocation1 + $0x3] sm:$0x1]   ;;  %v22_v2 = vld [vmem:[#allocation1 + $0x1] sm:$0x1]   ;;  %v16_v3 = vld [vmem:[#allocation1 + $0x2] sm:$0x1]  }
   0xa   :  { %11 = vrot.lane.b32.xlu0 %v10_v1, %s36_s0  ;;  %23 = vrot.lane.b32.xlu1 %v22_v2, %s37_s8  ;;  %v6_v4 = vld [vmem:[#allocation1] sm:$0x1]  }
   0xb   :  { %8 = vst.msk [vmem:[#allocation0] sm:$0x1] %vm7_vm0, %v6_v4  }
  0x12   :  { %17 = vrot.lane.b32.xlu0 %v16_v3, %s38_s9 }
  0x7c   :  { %v12_v5 = vpop.permute.xlu0 %11   ;;  %v24_v6 = vpop.permute.xlu1 %23  }
  0x7d   :  { %14 = vst.msk [vmem:[#allocation0] sm:$0x1] %vm13_vm1, %v12_v5  }
  0x84   :  { %v18_v7 = vpop.permute.xlu0 %17  }
  0x85   :  { %20 = vst.msk [vmem:[#allocation0] sm:$0x1] %vm19_vm2, %v18_v7  }
  0x86   :  { %26 = vst.msk [vmem:[#allocation0] sm:$0x1] %vm25_vm3, %v24_v6  }
  0x8d   :  { %v29_v8 = vld [vmem:[#allocation0] sm:$0x1] }
  0x8e   :  { %32 = vst [vmem:[%s56_s1] sm:$0x1] %v29_v8 }

// kernel: lsun_decoder_forward.13
= control target key start
LH: loop header
LB: loop body
LE: loop exit
PB: predicated region body
PF: predicated region fallthrough
CT: control target
= control target key end

     0   :  { %vm311_vm0 = vcmask 261120   ;;  %vm499_vm1 = vcmask 519168   ;;  %vm524_vm2 = vcmask 523264   ;;  %vm520_vm3 = vcmask 516096   ;;  %s1236_s1 = inlined_call_operand.vmem [shape: bf16[288,64], index: 1, kind: input, shape index: {}]   ;;  %s1237_s0 = inlined_call_operand.vmem [shape: bf16[128,288], index: 0, kind: input, shape index: {}]   ;;  %s1238_s2 = inlined_call_operand.vmem [shape: bf16[128,64], index: 2, kind: output, shape index: {0}]   ;;  %s1239_s3 = inlined_call_operand.vmem [shape: f32[1,64], index: 3, kind: output, shape index: {1}]   ;;  %s1240_s4 = inlined_call_operand.vmem [shape: f32[1,64], index: 4, kind: output, shape index: {2}]  }
   0x1   :  { %v840_v0 = vld [vmem:[%s1236_s1 + $0x38] sm:$0xff]  ;;  %v850_v2 = vld [vmem:[%s1236_s1 + $0x88] sm:$0xff]  ;;  %v839_v3 = vld [vmem:[%s1236_s1 + $0x30] sm:$0xff] }
   0x2   :  { %v848_v1 = vld [vmem:[%s1236_s1 + $0x78] sm:$0xff]  ;;  %336 = vmatpush.bf16.msra.mxu0 %v840_v0  ;;  %851 = vmatpush.bf16.msra.mxu3 %v840_v0  ;;  %v847_v4 = vld [vmem:[%s1236_s1 + $0x70] sm:$0xff]  ;;  %v849_v5 = vld [vmem:[%s1236_s1 + $0x80] sm:$0xff] }
   0x3   :  { %385 = vmatpush.bf16.msra.mxu1 %v848_v1  ;;  %440 = vmatpush.bf16.msra.mxu2 %v850_v2  ;;  %v643_v6 = vld [vmem:[%s1237_s0 + $0x8] sm:$0xf]  ;;  %v811_v7 = vld [vmem:[%s1237_s0 + $0x10] sm:$0xf0]  ;;  %v837_v11 = vld [vmem:[%s1236_s1 + $0x20] sm:$0xff] }
   0x4   :  { %v644_v8 = vor.u32 %v811_v7, %v643_v6  ;;  %v838_v9 = vld [vmem:[%s1236_s1 + $0x28] sm:$0xff]  ;;  %v845_v12 = vld [vmem:[%s1236_s1 + $0x60] sm:$0xff]  ;;  %v836_v13 = vld [vmem:[%s1236_s1 + $0x18] sm:$0xff] }
   0x5   :  { %v846_v10 = vld [vmem:[%s1236_s1 + $0x68] sm:$0xff]  ;;  %v844_v14 = vld [vmem:[%s1236_s1 + $0x58] sm:$0xff]  ;;  %v835_v15 = vld [vmem:[%s1236_s1 + $0x10] sm:$0xff] }
   0x6   :  { %337 = vmatpush.bf16.msra.mxu0 %v839_v3  ;;  %852 = vmatpush.bf16.msra.mxu3 %v839_v3  ;;  %v843_v16 = vld [vmem:[%s1236_s1 + $0x50] sm:$0xff]  ;;  %v655_v17 = vld [vmem:[%s1237_s0 + $0x20] sm:$0xf]  ;;  %v814_v18 = vld [vmem:[%s1237_s0 + $0x28] sm:$0xf0] }
   0x7   :  { %386 = vmatpush.bf16.msra.mxu1 %v847_v4  ;;  %441 = vmatpush.bf16.msra.mxu2 %v849_v5  ;;  %v656_v19 = vor.u32 %v814_v18, %v655_v17  ;;  %v834_v20 = vld [vmem:[%s1236_s1 + $0x8] sm:$0xff]  ;;  %v833_v22 = vld [vmem:[%s1236_s1] sm:$0xff]  ;;  %v707_v26 = vld [vmem:[%s1237_s0 + $0x90] sm:$0xf] }
   0x8   :  { %v842_v21 = vld [vmem:[%s1236_s1 + $0x48] sm:$0xff]  ;;  %v841_v23 = vld [vmem:[%s1236_s1 + $0x40] sm:$0xff]  ;;  %v828_v27 = vld [vmem:[%s1237_s0 + $0x98] sm:$0xf0] }
   0x9   :  { %v635_v24 = vld [vmem:[%s1237_s0] sm:$0xf]  ;;  %v810_v25 = vld [vmem:[%s1237_s0 + $0x8] sm:$0xf0]  ;;  %v809_v28 = vld [vmem:[%s1237_s0 + $0x4] sm:$0xf]  ;;  %v708_v31 = vor.u32 %v828_v27, %v707_v26 }
   0xa   :  { %801 = vmatmul.msk.bf16.vlgmr.msra.gmra.mxu2 %vm311_vm0, %v644_v8  ;;  %338 = vmatpush.bf16.msra.mxu0 %v838_v9  ;;  %v637_v29 = vld [vmem:[%s1237_s0 + $0xc] sm:$0xf0]  ;;  %v636_v30 = vor.u32 %v810_v25, %v635_v24  ;;  %v667_v33 = vld [vmem:[%s1237_s0 + $0x38] sm:$0xf]  ;;  %v817_v34 = vld [vmem:[%s1237_s0 + $0x40] sm:$0xf0] }
   0xb   :  { %853 = vmatpush.bf16.msra.mxu3 %v838_v9  ;;  %387 = vmatpush.bf16.msra.mxu1 %v846_v10  ;;  %v640_v32 = vor.u32 %v809_v28, %v637_v29  ;;  %v668_v35 = vor.u32 %v817_v34, %v667_v33  ;;  %v647_v36 = vld [vmem:[%s1237_s0 + $0x18] sm:$0xf]  ;;  %v813_v37 = vld [vmem:[%s1237_s0 + $0x20] sm:$0xf0]  ;;  %v719_v38 = vld [vmem:[%s1237_s0 + $0xa8] sm:$0xf] }
   0xc   :  { %v831_v39 = vld [vmem:[%s1237_s0 + $0xb0] sm:$0xf0]  ;;  %v812_v40 = vld [vmem:[%s1237_s0 + $0x1c] sm:$0xf]  ;;  %v649_v41 = vld [vmem:[%s1237_s0 + $0x24] sm:$0xf0]  ;;  %v648_v42 = vor.u32 %v813_v37, %v647_v36 }
   0xd   :  { %v720_v43 = vor.u32 %v831_v39, %v719_v38  ;;  %v652_v44 = vor.u32 %v812_v40, %v649_v41  ;;  %v679_v45 = vld [vmem:[%s1237_s0 + $0x50] sm:$0xf]  ;;  %v820_v46 = vld [vmem:[%s1237_s0 + $0x58] sm:$0xf0]  ;;  %v815_v50 = vld [vmem:[%s1237_s0 + $0x34] sm:$0xf] }
   0xe   :  { %339 = vmatpush.bf16.msra.mxu0 %v837_v11  ;;  %v680_v47 = vor.u32 %v820_v46, %v679_v45  ;;  %v659_v48 = vld [vmem:[%s1237_s0 + $0x30] sm:$0xf]  ;;  %v816_v49 = vld [vmem:[%s1237_s0 + $0x38] sm:$0xf0]  ;;  %v661_v51 = vld [vmem:[%s1237_s0 + $0x3c] sm:$0xf0] }
   0xf   :  { %854 = vmatpush.bf16.msra.mxu3 %v837_v11  ;;  %388 = vmatpush.bf16.msra.mxu1 %v845_v12  ;;  %v827_v52 = vld [vmem:[%s1237_s0 + $0x94] sm:$0xf]  ;;  %v709_v53 = vld [vmem:[%s1237_s0 + $0x9c] sm:$0xf0]  ;;  %v660_v54 = vor.u32 %v816_v49, %v659_v48  ;;  %v664_v55 = vor.u32 %v815_v50, %v661_v51  ;;  %v691_v57 = vld [vmem:[%s1237_s0 + $0x68] sm:$0xf] }
  0x10   :  { %v712_v56 = vor.u32 %v827_v52, %v709_v53  ;;  %v823_v58 = vld [vmem:[%s1237_s0 + $0x70] sm:$0xf0]  ;;  %v671_v60 = vld [vmem:[%s1237_s0 + $0x48] sm:$0xf]  ;;  %v818_v62 = vld [vmem:[%s1237_s0 + $0x4c] sm:$0xf] }
  0x11   :  { %v692_v59 = vor.u32 %v823_v58, %v691_v57  ;;  %v819_v61 = vld [vmem:[%s1237_s0 + $0x50] sm:$0xf0]  ;;  %v673_v63 = vld [vmem:[%s1237_s0 + $0x54] sm:$0xf0]  ;;  %v830_v0 = vld [vmem:[%s1237_s0 + $0xac] sm:$0xf] }
  0x12   :  { %340 = vmatpush.bf16.msra.mxu0 %v836_v13  ;;  %v672_v2 = vor.u32 %v819_v61, %v671_v60  ;;  %v676_v3 = vor.u32 %v818_v62, %v673_v63  ;;  %v703_v5 = vld [vmem:[%s1237_s0 + $0x80] sm:$0xf]  ;;  %v826_v6 = vld [vmem:[%s1237_s0 + $0x88] sm:$0xf0]  ;;  %v685_v11 = vld [vmem:[%s1237_s0 + $0x6c] sm:$0xf0] }
  0x13   :  { %855 = vmatpush.bf16.msra.mxu3 %v836_v13  ;;  %389 = vmatpush.bf16.msra.mxu1 %v844_v14  ;;  %v704_v7 = vor.u32 %v826_v6, %v703_v5  ;;  %v683_v8 = vld [vmem:[%s1237_s0 + $0x60] sm:$0xf]  ;;  %v822_v9 = vld [vmem:[%s1237_s0 + $0x68] sm:$0xf0]  ;;  %v695_v17 = vld [vmem:[%s1237_s0 + $0x78] sm:$0xf] }
  0x14   :  { %v825_v18 = vld [vmem:[%s1237_s0 + $0x80] sm:$0xf0]  ;;  %v832_v24 = vld [vmem:[%s1237_s0 + $0xb8] sm:$0xf0] }
  0x16   :  { %341 = vmatpush.bf16.msra.mxu0 %v835_v15 }
  0x17   :  { %856 = vmatpush.bf16.msra.mxu3 %v835_v15  ;;  %390 = vmatpush.bf16.msra.mxu1 %v843_v16  ;;  %v829_v15 = vld [vmem:[%s1237_s0 + $0xa0] sm:$0xf0] }
  0x1a   :  { %802 = vmatmul.msk.bf16.gmra.mxu2 %vm311_vm0, %v656_v19  ;;  %342 = vmatpush.bf16.msra.mxu0 %v834_v20  ;;  %v824_v19 = vld [vmem:[%s1237_s0 + $0x7c] sm:$0xf] }
  0x1b   :  { %857 = vmatpush.bf16.msra.mxu3 %v834_v20  ;;  %391 = vmatpush.bf16.msra.mxu1 %v842_v21  ;;  %v697_v20 = vld [vmem:[%s1237_s0 + $0x84] sm:$0xf0] }
  0x1e   :  { %343 = vmatpush.bf16.msra.mxu0 %v833_v22 }
  0x1f   :  { %858 = vmatpush.bf16.msra.mxu3 %v833_v22  ;;  %392 = vmatpush.bf16.msra.mxu1 %v841_v23  ;;  %v700_v22 = vor.u32 %v824_v19, %v697_v20 }
  0x21   :  { %344 = vmatmul.bf16.vlgmr.msra.gmra.mxu0 %v636_v30 }
  0x22   :  { %374 = vmatmul.bf16.vlgmr.msra.gmra.mxu3 %v708_v31  ;;  %393 = vmatmul.bf16.vlgmr.msra.gmra.mxu1 %v640_v32 }
  0x23   :  { %859 = vmatpush.bf16.msrb.mxu3 %v848_v1  ;;  %v721_v1 = vld [vmem:[%s1237_s0 + $0xb4] sm:$0xf0] }
  0x27   :  { %860 = vmatpush.bf16.msrb.mxu3 %v847_v4  ;;  %v724_v4 = vor.u32 %v830_v0, %v721_v1 }
  0x2a   :  { %803 = vmatmul.msk.bf16.gmra.mxu2 %vm311_vm0, %v668_v35 }
  0x2b   :  { %861 = vmatpush.bf16.msrb.mxu3 %v846_v10  ;;  %v821_v10 = vld [vmem:[%s1237_s0 + $0x64] sm:$0xf] }
  0x2c   :  { %v688_v13 = vor.u32 %v821_v10, %v685_v11 }
  0x2f   :  { %862 = vmatpush.bf16.msrb.mxu3 %v845_v12  ;;  %v684_v12 = vor.u32 %v822_v9, %v683_v8 }
  0x31   :  { %349 = vmatmul.bf16.gmra.mxu0 %v648_v42 }
  0x32   :  { %379 = vmatmul.bf16.gmra.mxu3 %v720_v43  ;;  %398 = vmatmul.bf16.gmra.mxu1 %v652_v44 }
  0x33   :  { %863 = vmatpush.bf16.msrb.mxu3 %v844_v14  ;;  %v715_v14 = vld [vmem:[%s1237_s0 + $0x98] sm:$0xf] }
  0x37   :  { %864 = vmatpush.bf16.msrb.mxu3 %v843_v16  ;;  %v716_v16 = vor.u32 %v829_v15, %v715_v14 }
  0x3a   :  { %804 = vmatmul.msk.bf16.gmra.mxu2 %vm311_vm0, %v680_v47 }
  0x3b   :  { %865 = vmatpush.bf16.msrb.mxu3 %v842_v21  ;;  %v696_v21 = vor.u32 %v825_v18, %v695_v17 }
  0x3f   :  { %866 = vmatpush.bf16.msrb.mxu3 %v841_v23  ;;  %v727_v23 = vld [vmem:[%s1237_s0 + $0xb0] sm:$0xf] }
  0x40   :  { %v728_v25 = vor.u32 %v832_v24, %v727_v23 }
  0x41   :  { %354 = vmatmul.bf16.gmra.mxu0 %v660_v54 }
  0x42   :  { %403 = vmatmul.bf16.gmra.mxu1 %v664_v55  ;;  %423 = vmatmul.bf16.vlgmr.msrb.gmra.mxu3 %v712_v56 }
  0x4a   :  { %805 = vmatmul.msk.bf16.gmra.mxu2 %vm311_vm0, %v692_v59 }
  0x51   :  { %359 = vmatmul.bf16.gmra.mxu0 %v672_v2 }
  0x52   :  { %408 = vmatmul.bf16.gmra.mxu1 %v676_v3  ;;  %428 = vmatmul.bf16.gmra.mxu3 %v724_v4 }
  0x5a   :  { %806 = vmatmul.msk.bf16.gmra.mxu2 %vm311_vm0, %v704_v7 }
  0x61   :  { %364 = vmatmul.bf16.gmra.mxu0 %v684_v12 }
  0x62   :  { %413 = vmatmul.bf16.gmra.mxu1 %v688_v13 }
  0x6a   :  { %807 = vmatmul.msk.bf16.gmra.mxu2 %vm311_vm0, %v716_v16 }
  0x71   :  { %369 = vmatmul.bf16.gmra.mxu0 %v696_v21 }
  0x72   :  { %418 = vmatmul.bf16.gmra.mxu1 %v700_v22 }
  0x7a   :  { %808 = vmatmul.msk.bf16.gmra.mxu2 %vm311_vm0, %v728_v25 }
  0x8d   :  { %v443_v26 = vpop.f32.mrf.mxu2 }
  0x95   :  { %v445_v27 = vpop.f32.mrf.mxu2 }
  0x9d   :  { %v448_v28 = vpop.f32.mrf.mxu2 }
  0x9e   :  { %v345_v29 = vpop.f32.mrf.mxu0 }
  0x9f   :  { %v394_v30 = vpop.f32.mrf.mxu1 }
  0xa0   :  { %v395_v31 = vadd.f32 %v394_v30, %v345_v29 }
  0xa2   :  { %v444_v32 = vadd.f32 %v443_v26, %v395_v31 }
  0xa4   :  { %v483_v33 = vpack.c.bf16 %v444_v32, %v444_v32  ;;  %v566_v38 = vmul.f32 %v444_v32, %v444_v32  ;;  %v525_v40 = vsel %vm524_vm2, %v444_v32, 0.0 }
  0xa5   :  { %v450_v34 = vpop.f32.mrf.mxu2  ;;  %v375_v59 = vpop.f32.mrf.mxu3 }
  0xa6   :  { %500 = vst.msk [vmem:[%s1238_s2] sm:$0xf] %vm499_vm1, %v483_v33  ;;  %v347_v35 = vpop.f32.mrf.mxu0  ;;  %v582_v46 = vsel %vm524_vm2, %v566_v38, 0.0 }
  0xa7   :  { %v396_v36 = vpop.f32.mrf.mxu1 }
  0xa8   :  { %v397_v37 = vadd.f32 %v396_v36, %v347_v35 }
  0xaa   :  { %v446_v39 = vadd.f32 %v445_v27, %v397_v37 }
  0xac   :  { %v484_v41 = vpack.c.bf16 %v446_v39, %v446_v39  ;;  %v526_v42 = vsel %vm524_vm2, %v446_v39, 0.0  ;;  %v567_v43 = vmul.f32 %v446_v39, %v446_v39 }
  0xad   :  { %v1106_v44 = vadd.f32 %v526_v42, %v525_v40  ;;  %v453_v45 = vpop.f32.mrf.mxu2  ;;  %v1124_v3 = vpop.f32.mrf.mxu3 }
  0xae   :  { %501 = vst.msk [vmem:[%s1238_s2 + $0x4] sm:$0xf] %vm499_vm1, %v484_v41  ;;  %v583_v47 = vsel %vm524_vm2, %v567_v43, 0.0  ;;  %v350_v48 = vpop.f32.mrf.mxu0 }
  0xaf   :  { %v1114_v49 = vadd.f32 %v583_v47, %v582_v46  ;;  %v399_v50 = vpop.f32.mrf.mxu1 }
  0xb0   :  { %v400_v51 = vadd.f32 %v399_v50, %v350_v48 }
  0xb2   :  { %v449_v52 = vadd.f32 %v448_v28, %v400_v51 }
  0xb4   :  { %v485_v53 = vpack.c.bf16 %v449_v52, %v449_v52  ;;  %v568_v31 = vmul.f32 %v449_v52, %v449_v52  ;;  %v528_v35 = vsel %vm524_vm2, %v449_v52, 0.0 }
  0xb5   :  { %v455_v54 = vpop.f32.mrf.mxu2  ;;  %v1134_v12 = vpop.f32.mrf.mxu3  ;;  %v529_v42 = vadd.f32 %v528_v35, %v1106_v44 }
  0xb6   :  { %502 = vst.msk [vmem:[%s1238_s2 + $0x8] sm:$0xf] %vm499_vm1, %v485_v53  ;;  %v352_v55 = vpop.f32.mrf.mxu0  ;;  %v585_v38 = vsel %vm524_vm2, %v568_v31, 0.0 }
  0xb7   :  { %v401_v56 = vpop.f32.mrf.mxu1  ;;  %v586_v44 = vadd.f32 %v585_v38, %v1114_v49 }
  0xb8   :  { %v402_v57 = vadd.f32 %v401_v56, %v352_v55 }
  0xba   :  { %v451_v58 = vadd.f32 %v450_v34, %v402_v57 }
  0xbc   :  { %v486_v60 = vpack.c.bf16 %v451_v58, %v451_v58  ;;  %v569_v36 = vmul.f32 %v451_v58, %v451_v58  ;;  %v530_v39 = vsel %vm524_vm2, %v451_v58, 0.0 }
  0xbd   :  { %v458_v61 = vpop.f32.mrf.mxu2  ;;  %v1140_v21 = vpop.f32.mrf.mxu3  ;;  %v531_v51 = vadd.f32 %v530_v39, %v529_v42 }
  0xbe   :  { %503 = vst.msk [vmem:[%s1238_s2 + $0xc] sm:$0xf] %vm499_vm1, %v486_v60  ;;  %v355_v62 = vpop.f32.mrf.mxu0  ;;  %v587_v46 = vsel %vm524_vm2, %v569_v36, 0.0 }
  0xbf   :  { %v404_v63 = vpop.f32.mrf.mxu1 }
  0xc0   :  { %v405_v0 = vadd.f32 %v404_v63, %v355_v62 }
  0xc2   :  { %v454_v1 = vadd.f32 %v453_v45, %v405_v0  ;;  %v868_v45 = vmov 0.0  }
  0xc3   :  { %521 = vst.msk [vmem:[%s1239_s3] sm:$0x1] %vm520_vm3, %v868_v45 }
  0xc4   :  { %v487_v2 = vpack.c.bf16 %v454_v1, %v454_v1  ;;  %v570_v40 = vmul.f32 %v454_v1, %v454_v1  ;;  %v532_v47 = vsel %vm524_vm2, %v454_v1, 0.0  ;;  %522 = vst.msk [vmem:[%s1240_s4] sm:$0x1] %vm520_vm3, %v868_v45 }
  0xc5   :  { %v460_v4 = vpop.f32.mrf.mxu2  ;;  %v424_v29 = vpop.f32.mrf.mxu3  ;;  %v533_v60 = vadd.f32 %v532_v47, %v531_v51 }
  0xc6   :  { %504 = vst.msk [vmem:[%s1238_s2 + $0x10] sm:$0xf] %vm499_vm1, %v487_v2  ;;  %v357_v5 = vpop.f32.mrf.mxu0  ;;  %v425_v48 = vadd.f32 %v424_v29, %v375_v59  ;;  %v588_v59 = vadd.f32 %v587_v46, %v586_v44 }
  0xc7   :  { %v406_v6 = vpop.f32.mrf.mxu1 }
  0xc8   :  { %v407_v7 = vadd.f32 %v406_v6, %v357_v5 }
  0xca   :  { %v456_v8 = vadd.f32 %v455_v54, %v407_v7  ;;  %v589_v54 = vsel %vm524_vm2, %v570_v40, 0.0 }
  0xcb   :  { %v590_v2 = vadd.f32 %v589_v54, %v588_v59 }
  0xcc   :  { %v488_v9 = vpack.c.bf16 %v456_v8, %v456_v8  ;;  %v571_v43 = vmul.f32 %v456_v8, %v456_v8  ;;  %v534_v55 = vsel %vm524_vm2, %v456_v8, 0.0 }
  0xcd   :  { %v463_v10 = vpop.f32.mrf.mxu2  ;;  %v426_v52 = vpop.f32.mrf.mxu3 }
  0xce   :  { %505 = vst.msk [vmem:[%s1238_s2 + $0x14] sm:$0xf] %vm499_vm1, %v488_v9  ;;  %v360_v11 = vpop.f32.mrf.mxu0 }
  0xcf   :  { %v409_v13 = vpop.f32.mrf.mxu1 }
  0xd0   :  { %v410_v14 = vadd.f32 %v409_v13, %v360_v11 }
  0xd2   :  { %v459_v15 = vadd.f32 %v458_v61, %v410_v14  ;;  %v591_v61 = vsel %vm524_vm2, %v571_v43, 0.0 }
  0xd3   :  { %v592_v9 = vadd.f32 %v591_v61, %v590_v2 }
  0xd4   :  { %v489_v16 = vpack.c.bf16 %v459_v15, %v459_v15  ;;  %v572_v56 = vmul.f32 %v459_v15, %v459_v15  ;;  %v536_v62 = vsel %vm524_vm2, %v459_v15, 0.0 }
  0xd5   :  { %v465_v17 = vpop.f32.mrf.mxu2 }
  0xd6   :  { %506 = vst.msk [vmem:[%s1238_s2 + $0x18] sm:$0xf] %vm499_vm1, %v489_v16  ;;  %v362_v18 = vpop.f32.mrf.mxu0  ;;  %v593_v5 = vsel %vm524_vm2, %v572_v56, 0.0 }
  0xd7   :  { %v411_v19 = vpop.f32.mrf.mxu1 }
  0xd8   :  { %v412_v20 = vadd.f32 %v411_v19, %v362_v18 }
  0xda   :  { %v461_v22 = vadd.f32 %v460_v4, %v412_v20  ;;  %v535_v4 = vadd.f32 %v534_v55, %v533_v60 }
  0xdc   :  { %v490_v23 = vpack.c.bf16 %v461_v22, %v461_v22  ;;  %v573_v63 = vmul.f32 %v461_v22, %v461_v22  ;;  %v538_v6 = vsel %vm524_vm2, %v461_v22, 0.0  ;;  %v537_v11 = vadd.f32 %v536_v62, %v535_v4 }
  0xdd   :  { %v468_v24 = vpop.f32.mrf.mxu2 }
  0xde   :  { %507 = vst.msk [vmem:[%s1238_s2 + $0x1c] sm:$0xf] %vm499_vm1, %v490_v23  ;;  %v365_v25 = vpop.f32.mrf.mxu0  ;;  %v595_v13 = vsel %vm524_vm2, %v573_v63, 0.0  ;;  %v539_v18 = vadd.f32 %v538_v6, %v537_v11 }
  0xdf   :  { %v414_v26 = vpop.f32.mrf.mxu1 }
  0xe0   :  { %v415_v27 = vadd.f32 %v414_v26, %v365_v25  ;;  %v429_v25 = vpop.f32.mrf.mxu3 }
  0xe1   :  { %v430_v38 = vadd.f32 %v429_v25, %v1134_v12 }
  0xe2   :  { %v464_v28 = vadd.f32 %v463_v10, %v415_v27  ;;  %v427_v10 = vadd.f32 %v426_v52, %v1124_v3 }
  0xe4   :  { %v491_v30 = vpack.c.bf16 %v464_v28, %v464_v28  ;;  %v574_v7 = vmul.f32 %v464_v28, %v464_v28  ;;  %v540_v14 = vsel %vm524_vm2, %v464_v28, 0.0 }
  0xe5   :  { %v1146_v32 = vpop.f32.mrf.mxu2  ;;  %v541_v27 = vadd.f32 %v540_v14, %v539_v18 }
  0xe6   :  { %508 = vst.msk [vmem:[%s1238_s2 + $0x20] sm:$0xf] %vm499_vm1, %v491_v30  ;;  %v367_v33 = vpop.f32.mrf.mxu0  ;;  %v597_v20 = vsel %vm524_vm2, %v574_v7, 0.0 }
  0xe7   :  { %v416_v34 = vpop.f32.mrf.mxu1 }
  0xe8   :  { %v417_v37 = vadd.f32 %v416_v34, %v367_v33  ;;  %v431_v55 = vpop.f32.mrf.mxu3 }
  0xe9   :  { %v432_v59 = vadd.f32 %v431_v55, %v1140_v21 }
  0xea   :  { %v466_v41 = vadd.f32 %v465_v17, %v417_v37  ;;  %v594_v17 = vadd.f32 %v593_v5, %v592_v9 }
  0xec   :  { %v492_v50 = vpack.c.bf16 %v466_v41, %v466_v41  ;;  %v575_v15 = vmul.f32 %v466_v41, %v466_v41  ;;  %v542_v22 = vsel %vm524_vm2, %v466_v41, 0.0  ;;  %v596_v26 = vadd.f32 %v595_v13, %v594_v17 }
  0xed   :  { %v473_v53 = vpop.f32.mrf.mxu2  ;;  %v543_v35 = vadd.f32 %v542_v22, %v541_v27 }
  0xee   :  { %509 = vst.msk [vmem:[%s1238_s2 + $0x24] sm:$0xf] %vm499_vm1, %v492_v50  ;;  %v474_v57 = vadd.f32 %v473_v53, %v425_v48  ;;  %v370_v58 = vpop.f32.mrf.mxu0  ;;  %v599_v29 = vsel %vm524_vm2, %v575_v15, 0.0  ;;  %v598_v34 = vadd.f32 %v597_v20, %v596_v26  ;;  %v523_v20 = vld [vmem:[%s1239_s3] sm:$0x1] }
  0xef   :  { %v419_v49 = vpop.f32.mrf.mxu1 }
  0xf0   :  { %v495_v0 = vpack.c.bf16 %v474_v57, %v474_v57  ;;  %v420_v1 = vadd.f32 %v419_v49, %v370_v58  ;;  %v600_v39 = vadd.f32 %v599_v29, %v598_v34  ;;  %v578_v41 = vmul.f32 %v474_v57, %v474_v57 }
  0xf1   :  { %v548_v50 = vsel %vm524_vm2, %v474_v57, 0.0 }
  0xf2   :  { %512 = vst.msk [vmem:[%s1238_s2 + $0x30] sm:$0xf] %vm499_vm1, %v495_v0  ;;  %v469_v8 = vadd.f32 %v468_v24, %v420_v1  ;;  %v605_v52 = vsel %vm524_vm2, %v578_v41, 0.0 }
  0xf4   :  { %v493_v16 = vpack.c.bf16 %v469_v8, %v469_v8  ;;  %v576_v3 = vmul.f32 %v469_v8, %v469_v8  ;;  %v544_v30 = vsel %vm524_vm2, %v469_v8, 0.0 }
  0xf5   :  { %v475_v19 = vpop.f32.mrf.mxu2  ;;  %v545_v40 = vadd.f32 %v544_v30, %v543_v35 }
  0xf6   :  { %510 = vst.msk [vmem:[%s1238_s2 + $0x28] sm:$0xf] %vm499_vm1, %v493_v16  ;;  %v476_v23 = vadd.f32 %v475_v19, %v427_v10  ;;  %v372_v24 = vpop.f32.mrf.mxu0  ;;  %v601_v36 = vsel %vm524_vm2, %v576_v3, 0.0 }
  0xf7   :  { %v421_v28 = vpop.f32.mrf.mxu1  ;;  %v602_v46 = vadd.f32 %v601_v36, %v600_v39 }
  0xf8   :  { %v496_v31 = vpack.c.bf16 %v476_v23, %v476_v23  ;;  %v422_v33 = vadd.f32 %v421_v28, %v372_v24  ;;  %v579_v53 = vmul.f32 %v476_v23, %v476_v23  ;;  %v550_v58 = vsel %vm524_vm2, %v476_v23, 0.0  ;;  %v565_v23 = vld [vmem:[%s1240_s4] sm:$0x1] }
  0xfa   :  { %513 = vst.msk [vmem:[%s1238_s2 + $0x34] sm:$0xf] %vm499_vm1, %v496_v31  ;;  %v471_v37 = vadd.f32 %v1146_v32, %v422_v33  ;;  %v607_v60 = vsel %vm524_vm2, %v579_v53, 0.0 }
  0xfc   :  { %v494_v42 = vpack.c.bf16 %v471_v37, %v471_v37  ;;  %v546_v43 = vsel %vm524_vm2, %v471_v37, 0.0  ;;  %v577_v45 = vmul.f32 %v471_v37, %v471_v37 }
  0xfd   :  { %v547_v47 = vadd.f32 %v546_v43, %v545_v40  ;;  %v478_v48 = vpop.f32.mrf.mxu2 }
  0xfe   :  { %511 = vst.msk [vmem:[%s1238_s2 + $0x2c] sm:$0xf] %vm499_vm1, %v494_v42  ;;  %v603_v32 = vsel %vm524_vm2, %v577_v45, 0.0  ;;  %v479_v12 = vadd.f32 %v478_v48, %v430_v38 }
  0xff   :  { %v604_v44 = vadd.f32 %v603_v32, %v602_v46  ;;  %v549_v51 = vadd.f32 %v548_v50, %v547_v47 }
 0x100   :  { %v497_v54 = vpack.c.bf16 %v479_v12, %v479_v12  ;;  %v580_v61 = vmul.f32 %v479_v12, %v479_v12  ;;  %v552_v63 = vsel %vm524_vm2, %v479_v12, 0.0 }
 0x101   :  { %v606_v56 = vadd.f32 %v605_v52, %v604_v44  ;;  %v551_v57 = vadd.f32 %v550_v58, %v549_v51 }
 0x102   :  { %514 = vst.msk [vmem:[%s1238_s2 + $0x38] sm:$0xf] %vm499_vm1, %v497_v54  ;;  %v609_v2 = vsel %vm524_vm2, %v580_v61, 0.0 }
 0x103   :  { %v608_v49 = vadd.f32 %v607_v60, %v606_v56  ;;  %v553_v1 = vadd.f32 %v552_v63, %v551_v57 }
 0x105   :  { %v480_v62 = vpop.f32.mrf.mxu2  ;;  %v610_v7 = vadd.f32 %v609_v2, %v608_v49 }
 0x106   :  { %v481_v0 = vadd.f32 %v480_v62, %v432_v59 }
 0x108   :  { %v498_v4 = vpack.c.bf16 %v481_v0, %v481_v0  ;;  %v554_v5 = vsel %vm524_vm2, %v481_v0, 0.0  ;;  %v581_v6 = vmul.f32 %v481_v0, %v481_v0 }
 0x109   :  { %v555_v8 = vadd.f32 %v554_v5, %v553_v1 }
 0x10a   :  { %515 = vst.msk [vmem:[%s1238_s2 + $0x3c] sm:$0xf] %vm499_vm1, %v498_v4  ;;  %v611_v21 = vsel %vm524_vm2, %v581_v6, 0.0 }
 0x10b   :  { %v556_v9 = vrot.slane %v555_v8, 4  ;;  %v612_v10 = vadd.f32 %v611_v21, %v610_v7 }
 0x10d   :  { %v557_v11 = vadd.f32 %v556_v9, %v555_v8  ;;  %v613_v13 = vrot.slane %v612_v10, 4 }
 0x10f   :  { %v558_v14 = vrot.slane %v557_v11, 2  ;;  %v614_v15 = vadd.f32 %v613_v13, %v612_v10 }
 0x111   :  { %v559_v16 = vadd.f32 %v558_v14, %v557_v11  ;;  %v615_v17 = vrot.slane %v614_v15, 2 }
 0x113   :  { %v560_v18 = vrot.slane %v559_v16, 1  ;;  %v616_v19 = vadd.f32 %v615_v17, %v614_v15 }
 0x115   :  { %v561_v22 = vadd.f32 %v560_v18, %v559_v16  ;;  %v617_v3 = vrot.slane %v616_v19, 1 }
 0x117   :  { %v562_v24 = vadd.f32 %v561_v22, %v523_v20  ;;  %v618_v25 = vadd.f32 %v617_v3, %v616_v19 }
 0x119   :  { %564 = vst.msk [vmem:[%s1239_s3] sm:$0x1] %vm520_vm3, %v562_v24  ;;  %v619_v26 = vadd.f32 %v618_v25, %v565_v23 }
 0x11b   :  { %620 = vst.msk [vmem:[%s1240_s4] sm:$0x1] %vm520_vm3, %v619_v26 }

// kernel: lsun_decoder_forward.14
= control target key start
LH: loop header
LB: loop body
LE: loop exit
PB: predicated region body
PF: predicated region fallthrough
CT: control target
= control target key end

     0   :  { %vm118_vm0 = vcmask 519168   ;;  %s330_s0 = inlined_call_operand.vmem [shape: bf16[128,64], index: 0, kind: input, shape index: {}]   ;;  %s331_s1 = inlined_call_operand.vmem [shape: f32[1,64], index: 1, kind: input, shape index: {}]   ;;  %s332_s2 = inlined_call_operand.vmem [shape: f32[1,64], index: 2, kind: input, shape index: {}]   ;;  %s333_s3 = inlined_call_operand.vmem [shape: bf16[128,64], index: 3, kind: output, shape index: {}]  }
   0x1   :  { %v140_v0 = vld [vmem:[%s330_s0] sm:$0xff]   ;;  %v171_v5 = vld [vmem:[%s330_s0 + $0x8] sm:$0xff]   ;;  %v172_v8 = vld [vmem:[%s330_s0 + $0x10] sm:$0xff]  }
   0x2   :  { %v206_v1 = vld [vmem:[%s331_s1] ss:$0 sm:$0xff]  ;;  %v141_v2 = vunpack.c.l.bf16 %v140_v0  ;;  %v142_v4 = vunpack.c.h.bf16 %v140_v0  ;;  %v145_v6 = vunpack.c.l.bf16 %v171_v5  ;;  %v146_v7 = vunpack.c.h.bf16 %v171_v5  ;;  %v173_v9 = vld [vmem:[%s330_s0 + $0x18] sm:$0xff]   ;;  %v175_v39 = vld [vmem:[%s330_s0 + $0x28] sm:$0xff]  }
   0x3   :  { %v211_v3 = vld [vmem:[%s332_s2] ss:$0 sm:$0xff]  ;;  %v149_v12 = vunpack.c.l.bf16 %v172_v8  ;;  %v150_v13 = vunpack.c.h.bf16 %v172_v8  ;;  %v153_v16 = vunpack.c.l.bf16 %v173_v9  ;;  %v154_v17 = vunpack.c.h.bf16 %v173_v9  ;;  %v176_v44 = vld [vmem:[%s330_s0 + $0x30] sm:$0xff]   ;;  %v177_v49 = vld [vmem:[%s330_s0 + $0x38] sm:$0xff]  }
   0x4   :  { %v50_v10 = vmul.f32 %v206_v1, %v141_v2  ;;  %v51_v11 = vmul.f32 %v206_v1, %v142_v4  ;;  %v52_v14 = vmul.f32 %v206_v1, %v145_v6  ;;  %v53_v15 = vmul.f32 %v206_v1, %v146_v7  ;;  %v174_v34 = vld [vmem:[%s330_s0 + $0x20] sm:$0xff]  }
   0x5   :  { %v54_v20 = vmul.f32 %v206_v1, %v149_v12  ;;  %v55_v21 = vmul.f32 %v206_v1, %v150_v13  ;;  %v56_v24 = vmul.f32 %v206_v1, %v153_v16  ;;  %v57_v25 = vmul.f32 %v206_v1, %v154_v17 }
   0x6   :  { %v70_v18 = vadd.f32 %v211_v3, %v50_v10  ;;  %v71_v19 = vadd.f32 %v211_v3, %v51_v11  ;;  %v72_v22 = vadd.f32 %v211_v3, %v52_v14  ;;  %v73_v23 = vadd.f32 %v211_v3, %v53_v15 }
   0x7   :  { %v74_v28 = vadd.f32 %v211_v3, %v54_v20  ;;  %v75_v29 = vadd.f32 %v211_v3, %v55_v21  ;;  %v76_v32 = vadd.f32 %v211_v3, %v56_v24  ;;  %v77_v33 = vadd.f32 %v211_v3, %v57_v25 }
   0x8   :  { %v86_v26 = vmax.f32 %v70_v18, 0.0  ;;  %v87_v27 = vmax.f32 %v71_v19, 0.0  ;;  %v88_v30 = vmax.f32 %v72_v22, 0.0  ;;  %v89_v31 = vmax.f32 %v73_v23, 0.0 }
   0x9   :  { %v90_v37 = vmax.f32 %v74_v28, 0.0  ;;  %v91_v38 = vmax.f32 %v75_v29, 0.0  ;;  %v92_v42 = vmax.f32 %v76_v32, 0.0  ;;  %v93_v43 = vmax.f32 %v77_v33, 0.0 }
   0xa   :  { %v102_v35 = vpack.c.bf16 %v86_v26, %v86_v26  ;;  %v103_v36 = vpack.c.bf16 %v87_v27, %v87_v27  ;;  %v104_v40 = vpack.c.bf16 %v88_v30, %v88_v30  ;;  %v105_v41 = vpack.c.bf16 %v89_v31, %v89_v31 }
   0xb   :  { %v106_v45 = vpack.c.bf16 %v90_v37, %v90_v37  ;;  %v107_v46 = vpack.c.bf16 %v91_v38, %v91_v38  ;;  %v157_v47 = vunpack.c.l.bf16 %v174_v34  ;;  %v158_v48 = vunpack.c.h.bf16 %v174_v34 }
   0xc   :  { %119 = vst.msk [vmem:[%s333_s3] sm:$0xf] %vm118_vm0, %v102_v35  ;;  %v108_v50 = vpack.c.bf16 %v92_v42, %v92_v42  ;;  %v109_v51 = vpack.c.bf16 %v93_v43, %v93_v43  ;;  %v161_v52 = vunpack.c.l.bf16 %v175_v39  ;;  %v162_v53 = vunpack.c.h.bf16 %v175_v39 }
   0xd   :  { %120 = vst.msk [vmem:[%s333_s3 + $0x4] sm:$0xf] %vm118_vm0, %v103_v36  ;;  %v58_v54 = vmul.f32 %v206_v1, %v157_v47  ;;  %v59_v55 = vmul.f32 %v206_v1, %v158_v48  ;;  %v165_v56 = vunpack.c.l.bf16 %v176_v44  ;;  %v166_v57 = vunpack.c.h.bf16 %v176_v44 }
   0xe   :  { %121 = vst.msk [vmem:[%s333_s3 + $0x8] sm:$0xf] %vm118_vm0, %v104_v40  ;;  %v60_v58 = vmul.f32 %v206_v1, %v161_v52  ;;  %v61_v59 = vmul.f32 %v206_v1, %v162_v53  ;;  %v169_v60 = vunpack.c.l.bf16 %v177_v49  ;;  %v170_v61 = vunpack.c.h.bf16 %v177_v49 }
   0xf   :  { %122 = vst.msk [vmem:[%s333_s3 + $0xc] sm:$0xf] %vm118_vm0, %v105_v41  ;;  %v78_v62 = vadd.f32 %v211_v3, %v58_v54  ;;  %v79_v63 = vadd.f32 %v211_v3, %v59_v55  ;;  %v62_v0 = vmul.f32 %v206_v1, %v165_v56  ;;  %v63_v2 = vmul.f32 %v206_v1, %v166_v57 }
  0x10   :  { %123 = vst.msk [vmem:[%s333_s3 + $0x10] sm:$0xf] %vm118_vm0, %v106_v45  ;;  %v80_v4 = vadd.f32 %v211_v3, %v60_v58  ;;  %v81_v5 = vadd.f32 %v211_v3, %v61_v59  ;;  %v64_v6 = vmul.f32 %v206_v1, %v169_v60  ;;  %v65_v7 = vmul.f32 %v206_v1, %v170_v61 }
  0x11   :  { %124 = vst.msk [vmem:[%s333_s3 + $0x14] sm:$0xf] %vm118_vm0, %v107_v46  ;;  %v94_v8 = vmax.f32 %v78_v62, 0.0  ;;  %v95_v9 = vmax.f32 %v79_v63, 0.0  ;;  %v82_v10 = vadd.f32 %v211_v3, %v62_v0  ;;  %v83_v11 = vadd.f32 %v211_v3, %v63_v2 }
  0x12   :  { %125 = vst.msk [vmem:[%s333_s3 + $0x18] sm:$0xf] %vm118_vm0, %v108_v50  ;;  %v96_v12 = vmax.f32 %v80_v4, 0.0  ;;  %v97_v13 = vmax.f32 %v81_v5, 0.0  ;;  %v84_v1 = vadd.f32 %v211_v3, %v64_v6  ;;  %v85_v14 = vadd.f32 %v211_v3, %v65_v7 }
  0x13   :  { %126 = vst.msk [vmem:[%s333_s3 + $0x1c] sm:$0xf] %vm118_vm0, %v109_v51  ;;  %v110_v15 = vpack.c.bf16 %v94_v8, %v94_v8  ;;  %v111_v16 = vpack.c.bf16 %v95_v9, %v95_v9  ;;  %v98_v17 = vmax.f32 %v82_v10, 0.0  ;;  %v99_v18 = vmax.f32 %v83_v11, 0.0 }
  0x14   :  { %v112_v19 = vpack.c.bf16 %v96_v12, %v96_v12  ;;  %v113_v20 = vpack.c.bf16 %v97_v13, %v97_v13  ;;  %v100_v21 = vmax.f32 %v84_v1, 0.0  ;;  %v101_v22 = vmax.f32 %v85_v14, 0.0 }
  0x15   :  { %127 = vst.msk [vmem:[%s333_s3 + $0x20] sm:$0xf] %vm118_vm0, %v110_v15  ;;  %v114_v23 = vpack.c.bf16 %v98_v17, %v98_v17  ;;  %v115_v3 = vpack.c.bf16 %v99_v18, %v99_v18 }
  0x16   :  { %128 = vst.msk [vmem:[%s333_s3 + $0x24] sm:$0xf] %vm118_vm0, %v111_v16  ;;  %v116_v24 = vpack.c.bf16 %v100_v21, %v100_v21  ;;  %v117_v25 = vpack.c.bf16 %v101_v22, %v101_v22 }
  0x17   :  { %129 = vst.msk [vmem:[%s333_s3 + $0x28] sm:$0xf] %vm118_vm0, %v112_v19 }
  0x18   :  { %130 = vst.msk [vmem:[%s333_s3 + $0x2c] sm:$0xf] %vm118_vm0, %v113_v20 }
  0x19   :  { %131 = vst.msk [vmem:[%s333_s3 + $0x30] sm:$0xf] %vm118_vm0, %v114_v23 }
  0x1a   :  { %132 = vst.msk [vmem:[%s333_s3 + $0x34] sm:$0xf] %vm118_vm0, %v115_v3 }
  0x1b   :  { %133 = vst.msk [vmem:[%s333_s3 + $0x38] sm:$0xf] %vm118_vm0, %v116_v24 }
  0x1c   :  { %134 = vst.msk [vmem:[%s333_s3 + $0x3c] sm:$0xf] %vm118_vm0, %v117_v25 }

// kernel: tile.78
= control target key start
LH: loop header
LB: loop body
LE: loop exit
PB: predicated region body
PF: predicated region fallthrough
CT: control target
= control target key end

     0   :  { %s22_s0 = inlined_call_operand.vmem [shape: f32[8], index: 0, kind: input, shape index: {}]   ;;  %s23_s1 = inlined_call_operand.vmem [shape: f32[4,8], index: 1, kind: output, shape index: {}]  }
   0x1   :  { %v4_v0 = vld [vmem:[%s22_s0] ss:$0 sm:$0xff] }
   0x2   :  { %5 = vst [vmem:[%s23_s1] sm:$0xf] %v4_v0 }

// kernel: tile.79
= control target key start
LH: loop header
LB: loop body
LE: loop exit
PB: predicated region body
PF: predicated region fallthrough
CT: control target
= control target key end

     0   :  { %s37_s8 = smov 8   ;;  %s38_s9 = smov 16   ;;  %vm7_vm0 = vcmask 64512   ;;  %vm13_vm1 = vcmask 261312   ;;  %vm19_vm2 = vcmask 195712   ;;  %vm25_vm3 = vcmask 130112   ;;  %s55_s0 = inlined_call_operand.vmem [shape: f32[4,8], index: 0, kind: input, shape index: {}]   ;;  %s56_s1 = inlined_call_operand.vmem [shape: f32[1,32], index: 1, kind: output, shape index: {}]  }
   0x1   :  { %v4_v0 = vld [vmem:[%s55_s0] sm:$0xf]  ;;  %s36_s0 = smov 24  }
   0x2   :  { %5 = vst [vmem:[#allocation1] sm:$0xf] %v4_v0 }
   0x9   :  { %v10_v1 = vld [vmem:[#allocation1 + $0x3] sm:$0x1]   ;;  %v22_v2 = vld [vmem:[#allocation1 + $0x1] sm:$0x1]   ;;  %v16_v3 = vld [vmem:[#allocation1 + $0x2] sm:$0x1]  }
   0xa   :  { %11 = vrot.lane.b32.xlu0 %v10_v1, %s36_s0  ;;  %23 = vrot.lane.b32.xlu1 %v22_v2, %s37_s8  ;;  %v6_v4 = vld [vmem:[#allocation1] sm:$0x1]  }
   0xb   :  { %8 = vst.msk [vmem:[#allocation0] sm:$0x1] %vm7_vm0, %v6_v4  }
  0x12   :  { %17 = vrot.lane.b32.xlu0 %v16_v3, %s38_s9 }
  0x7c   :  { %v12_v5 = vpop.permute.xlu0 %11   ;;  %v24_v6 = vpop.permute.xlu1 %23  }
  0x7d   :  { %14 = vst.msk [vmem:[#allocation0] sm:$0x1] %vm13_vm1, %v12_v5  }
  0x84   :  { %v18_v7 = vpop.permute.xlu0 %17  }
  0x85   :  { %20 = vst.msk [vmem:[#allocation0] sm:$0x1] %vm19_vm2, %v18_v7  }
  0x86   :  { %26 = vst.msk [vmem:[#allocation0] sm:$0x1] %vm25_vm3, %v24_v6  }
  0x8d   :  { %v29_v8 = vld [vmem:[#allocation0] sm:$0x1] }
  0x8e   :  { %32 = vst [vmem:[%s56_s1] sm:$0x1] %v29_v8 }

// kernel: lsun_decoder_forward.15
= control target key start
LH: loop header
LB: loop body
LE: loop exit
PB: predicated region body
PF: predicated region fallthrough
CT: control target
= control target key end

     0   :  { %s1280_s15 = smov 0   ;;  %s1792_s0 = inlined_call_operand.vmem [shape: bf16[512,144], index: 0, kind: input, shape index: {}]   ;;  %s1793_s1 = inlined_call_operand.vmem [shape: bf16[144,32], index: 1, kind: input, shape index: {}]   ;;  %s1794_s2 = inlined_call_operand.vmem [shape: bf16[512,32], index: 2, kind: output, shape index: {0}]   ;;  %s1795_s3 = inlined_call_operand.vmem [shape: f32[1,32], index: 3, kind: output, shape index: {1}]   ;;  %s1796_s4 = inlined_call_operand.vmem [shape: f32[1,32], index: 4, kind: output, shape index: {2}]  }
   0x1 LB: > { %s993_s16 = sadd.s32 4294967295, %s1252_s15   ;;  %p997_p0 = scmp.ge.s32.totalorder %s1252_s15, 1  ;;  %s1252_s15 = sphi %s1280_s15, %s15_s15  }
   0x2   : > { %p159_p1 = scmp.lt.s32.totalorder %s1252_s15, 3 }
   0x4   : > { %p160_p2 = pnand %p997_p0, %p159_p1 }
   0x5   : > { %s998_s21 = sshll.u32 (!%p160_p2), %s993_s16, 5  ;;  %p1183_p4 = scmp.ne.s32.totalorder (!%p160_p2), %s993_s16, 0 }
   0x6   : > { %163 = sbr.rel (%p160_p2) target bundleno = 385 (0x181), region = 28  ;;  %p187_p3 = scmp.lt.s32.totalorder (!%p160_p2), %s998_s21, 63 }
   0xb   : > { %v1226_v0 = vld [vmem:[%s1793_s1 + $0x38] sm:$0xff]  ;;  %v1227_v1 = vld [vmem:[%s1793_s1 + $0x40] sm:$0xff]  ;;  %v1225_v2 = vld [vmem:[%s1793_s1 + $0x30] sm:$0xff]  ;;  %s1798_s21 = smov (!%p187_p3, %s998_s21), 63  ;;  %vm448_vm0 = vcmask 130048   ;;  %vm707_vm1 = vcmask 257024  }
   0xc   : > { %497 = vmatpush.bf16.msra.mxu0 %v1226_v0  ;;  %1228 = vmatpush.bf16.msra.mxu2 %v1226_v0  ;;  %s1186_s24 = sshll.u32 %s1798_s21, 3  ;;  %v1224_v3 = vld [vmem:[%s1793_s1 + $0x28] sm:$0xff]  ;;  %v1223_v7 = vld [vmem:[%s1793_s1 + $0x20] sm:$0xff]  ;;  %v1222_v11 = vld [vmem:[%s1793_s1 + $0x18] sm:$0xff]  ;;  %s1002_s14 = sshll.u32 %s1798_s21, 2 }
   0xd   : > { %593 = vmatpush.bf16.msra.mxu1 %v1227_v1  ;;  %1236 = vmatpush.bf16.msra.mxu3 %v1227_v1  ;;  %s1305_s27 = scalar_lea.vmem %s1792_s0, %s1186_s24  ;;  %v1221_v12 = vld [vmem:[%s1793_s1 + $0x10] sm:$0xff]  ;;  %v1220_v16 = vld [vmem:[%s1793_s1 + $0x8] sm:$0xff]  ;;  %v1219_v20 = vld [vmem:[%s1793_s1] sm:$0xff]  ;;  %s1411_s19 = scalar_lea.vmem %s1794_s2, %s1002_s14 }
   0xe   : > { %v1187_v4 = vld [vmem:[%s1305_s27 + $0x4] sm:$0xf]  ;;  %v1007_v5 = vld [vmem:[%s1305_s27 + $0x8] sm:$0xf0]  ;;  %v1205_v8 = vld [vmem:[%s1305_s27 + $0x94] sm:$0xf] }
   0xf   : > { %v1010_v6 = vor.u32 %v1187_v4, %v1007_v5  ;;  %v1079_v9 = vld [vmem:[%s1305_s27 + $0x98] sm:$0xf0]  ;;  %v1189_v13 = vld [vmem:[%s1305_s27 + $0x14] sm:$0xf]  ;;  %v1207_v17 = vld [vmem:[%s1305_s27 + $0xa4] sm:$0xf] }
  0x10   : > { %498 = vmatpush.bf16.msra.mxu0 %v1225_v2  ;;  %1229 = vmatpush.bf16.msra.mxu2 %v1225_v2  ;;  %v1082_v10 = vor.u32 %v1205_v8, %v1079_v9  ;;  %v1015_v14 = vld [vmem:[%s1305_s27 + $0x18] sm:$0xf0]  ;;  %v1087_v18 = vld [vmem:[%s1305_s27 + $0xa8] sm:$0xf0]  ;;  %v1005_v21 = vld [vmem:[%s1305_s27] sm:$0xf] }
  0x11   : > { %1167 = vmatmul.msk.bf16.vlgmr.msra.gmra.mxu1 %vm448_vm0, %v1010_v6  ;;  %v1018_v15 = vor.u32 %v1189_v13, %v1015_v14  ;;  %v1090_v19 = vor.u32 %v1207_v17, %v1087_v18  ;;  %v1188_v22 = vld [vmem:[%s1305_s27 + $0x4] sm:$0xf0]  ;;  %v1069_v23 = vld [vmem:[%s1305_s27 + $0x80] sm:$0xf]  ;;  %v1191_v27 = vld [vmem:[%s1305_s27 + $0x24] sm:$0xf] }
  0x12   : > { %1176 = vmatmul.msk.bf16.vlgmr.msra.gmra.mxu3 %vm448_vm0, %v1082_v10  ;;  %v1204_v24 = vld [vmem:[%s1305_s27 + $0x84] sm:$0xf0]  ;;  %v1006_v25 = vor.u32 %v1188_v22, %v1005_v21  ;;  %v1023_v28 = vld [vmem:[%s1305_s27 + $0x28] sm:$0xf0]  ;;  %v1209_v30 = vld [vmem:[%s1305_s27 + $0xb4] sm:$0xf] }
  0x13   : > { %v1070_v26 = vor.u32 %v1204_v24, %v1069_v23  ;;  %v1026_v29 = vor.u32 %v1191_v27, %v1023_v28  ;;  %v1095_v31 = vld [vmem:[%s1305_s27 + $0xb8] sm:$0xf0]  ;;  %v1013_v33 = vld [vmem:[%s1305_s27 + $0x10] sm:$0xf]  ;;  %v1190_v34 = vld [vmem:[%s1305_s27 + $0x14] sm:$0xf0] }
  0x14   : > { %499 = vmatpush.bf16.msra.mxu0 %v1224_v3  ;;  %1230 = vmatpush.bf16.msra.mxu2 %v1224_v3  ;;  %v1098_v32 = vor.u32 %v1209_v30, %v1095_v31  ;;  %v1077_v35 = vld [vmem:[%s1305_s27 + $0x90] sm:$0xf]  ;;  %v1206_v36 = vld [vmem:[%s1305_s27 + $0x94] sm:$0xf0]  ;;  %v1014_v37 = vor.u32 %v1190_v34, %v1013_v33  ;;  %v1193_v39 = vld [vmem:[%s1305_s27 + $0x34] sm:$0xf] }
  0x15   : > { %v1078_v38 = vor.u32 %v1206_v36, %v1077_v35  ;;  %v1031_v40 = vld [vmem:[%s1305_s27 + $0x38] sm:$0xf0]  ;;  %v1211_v42 = vld [vmem:[%s1305_s27 + $0xc4] sm:$0xf]  ;;  %v1103_v43 = vld [vmem:[%s1305_s27 + $0xc8] sm:$0xf0] }
  0x16   : > { %v1034_v41 = vor.u32 %v1193_v39, %v1031_v40  ;;  %v1106_v44 = vor.u32 %v1211_v42, %v1103_v43  ;;  %v1021_v45 = vld [vmem:[%s1305_s27 + $0x20] sm:$0xf]  ;;  %v1192_v46 = vld [vmem:[%s1305_s27 + $0x24] sm:$0xf0]  ;;  %v1195_v51 = vld [vmem:[%s1305_s27 + $0x44] sm:$0xf] }
  0x17   : > { %v1085_v47 = vld [vmem:[%s1305_s27 + $0xa0] sm:$0xf]  ;;  %v1208_v48 = vld [vmem:[%s1305_s27 + $0xa4] sm:$0xf0]  ;;  %v1022_v49 = vor.u32 %v1192_v46, %v1021_v45  ;;  %v1039_v52 = vld [vmem:[%s1305_s27 + $0x48] sm:$0xf0] }
  0x18   : > { %500 = vmatpush.bf16.msra.mxu0 %v1223_v7  ;;  %1231 = vmatpush.bf16.msra.mxu2 %v1223_v7  ;;  %v1086_v50 = vor.u32 %v1208_v48, %v1085_v47  ;;  %v1042_v53 = vor.u32 %v1195_v51, %v1039_v52  ;;  %v1213_v54 = vld [vmem:[%s1305_s27 + $0xd4] sm:$0xf]  ;;  %v1111_v55 = vld [vmem:[%s1305_s27 + $0xd8] sm:$0xf0]  ;;  %v1029_v57 = vld [vmem:[%s1305_s27 + $0x30] sm:$0xf] }
  0x19   : > { %v1114_v56 = vor.u32 %v1213_v54, %v1111_v55  ;;  %v1194_v58 = vld [vmem:[%s1305_s27 + $0x34] sm:$0xf0]  ;;  %v1093_v59 = vld [vmem:[%s1305_s27 + $0xb0] sm:$0xf]  ;;  %v1197_v63 = vld [vmem:[%s1305_s27 + $0x54] sm:$0xf] }
  0x1a   : > { %v1210_v60 = vld [vmem:[%s1305_s27 + $0xb4] sm:$0xf0]  ;;  %v1030_v61 = vor.u32 %v1194_v58, %v1029_v57  ;;  %v1047_v0 = vld [vmem:[%s1305_s27 + $0x58] sm:$0xf0]  ;;  %v1215_v2 = vld [vmem:[%s1305_s27 + $0xe4] sm:$0xf] }
  0x1b   : > { %v1094_v62 = vor.u32 %v1210_v60, %v1093_v59  ;;  %v1050_v1 = vor.u32 %v1197_v63, %v1047_v0  ;;  %v1119_v3 = vld [vmem:[%s1305_s27 + $0xe8] sm:$0xf0]  ;;  %v1037_v5 = vld [vmem:[%s1305_s27 + $0x40] sm:$0xf]  ;;  %v1196_v6 = vld [vmem:[%s1305_s27 + $0x44] sm:$0xf0] }
  0x1c   : > { %501 = vmatpush.bf16.msra.mxu0 %v1222_v11  ;;  %1232 = vmatpush.bf16.msra.mxu2 %v1222_v11  ;;  %v1122_v4 = vor.u32 %v1215_v2, %v1119_v3  ;;  %v1101_v7 = vld [vmem:[%s1305_s27 + $0xc0] sm:$0xf]  ;;  %v1212_v8 = vld [vmem:[%s1305_s27 + $0xc4] sm:$0xf0]  ;;  %v1038_v9 = vor.u32 %v1196_v6, %v1037_v5  ;;  %v1199_v11 = vld [vmem:[%s1305_s27 + $0x64] sm:$0xf] }
  0x1d   : > { %v1102_v10 = vor.u32 %v1212_v8, %v1101_v7  ;;  %v1217_v14 = vld [vmem:[%s1305_s27 + $0xf4] sm:$0xf]  ;;  %v1045_v17 = vld [vmem:[%s1305_s27 + $0x50] sm:$0xf]  ;;  %v1198_v18 = vld [vmem:[%s1305_s27 + $0x54] sm:$0xf0] }
  0x1e   : > { %v1046_v21 = vor.u32 %v1198_v18, %v1045_v17  ;;  %v1201_v23 = vld [vmem:[%s1305_s27 + $0x74] sm:$0xf]  ;;  %v1063_v24 = vld [vmem:[%s1305_s27 + $0x78] sm:$0xf0]  ;;  %v1200_v27 = vld [vmem:[%s1305_s27 + $0x64] sm:$0xf0] }
  0x1f   : > { %v1117_v28 = vld [vmem:[%s1305_s27 + $0xe0] sm:$0xf]  ;;  %v1071_v33 = vld [vmem:[%s1305_s27 + $0x88] sm:$0xf0]  ;;  %v1061_v36 = vld [vmem:[%s1305_s27 + $0x70] sm:$0xf] }
  0x20   : > { %502 = vmatpush.bf16.msra.mxu0 %v1221_v12  ;;  %1233 = vmatpush.bf16.msra.mxu2 %v1221_v12  ;;  %v1055_v12 = vld [vmem:[%s1305_s27 + $0x68] sm:$0xf0]  ;;  %v1218_v39 = vld [vmem:[%s1305_s27 + $0xf4] sm:$0xf0] }
  0x21   : > { %1168 = vmatmul.msk.bf16.gmra.mxu1 %vm448_vm0, %v1018_v15  ;;  %v1058_v13 = vor.u32 %v1199_v11, %v1055_v12  ;;  %v1127_v15 = vld [vmem:[%s1305_s27 + $0xf8] sm:$0xf0] }
  0x22   : > { %1177 = vmatmul.msk.bf16.gmra.mxu3 %vm448_vm0, %v1090_v19  ;;  %v1109_v19 = vld [vmem:[%s1305_s27 + $0xd0] sm:$0xf] }
  0x24   : > { %503 = vmatpush.bf16.msra.mxu0 %v1220_v16  ;;  %1234 = vmatpush.bf16.msra.mxu2 %v1220_v16  ;;  %v1130_v16 = vor.u32 %v1217_v14, %v1127_v15 }
  0x28   : > { %504 = vmatpush.bf16.msra.mxu0 %v1219_v20  ;;  %1235 = vmatpush.bf16.msra.mxu2 %v1219_v20  ;;  %v1214_v20 = vld [vmem:[%s1305_s27 + $0xd4] sm:$0xf0] }
  0x29   : > { %v1110_v22 = vor.u32 %v1214_v20, %v1109_v19 }
  0x2b   : > { %505 = vmatmul.bf16.vlgmr.msra.gmra.mxu0 %v1006_v25  ;;  %545 = vmatmul.bf16.vlgmr.msra.gmra.mxu2 %v1070_v26  ;;  %v1066_v25 = vor.u32 %v1201_v23, %v1063_v24  ;;  %v1053_v26 = vld [vmem:[%s1305_s27 + $0x60] sm:$0xf] }
  0x2c   : > { %v1054_v30 = vor.u32 %v1200_v27, %v1053_v26 }
  0x31   : > { %1169 = vmatmul.msk.bf16.gmra.mxu1 %vm448_vm0, %v1026_v29  ;;  %v1216_v29 = vld [vmem:[%s1305_s27 + $0xe4] sm:$0xf0] }
  0x32   : > { %1178 = vmatmul.msk.bf16.gmra.mxu3 %vm448_vm0, %v1098_v32  ;;  %v1118_v31 = vor.u32 %v1216_v29, %v1117_v28  ;;  %v1203_v32 = vld [vmem:[%s1305_s27 + $0x84] sm:$0xf] }
  0x33   : > { %v1074_v34 = vor.u32 %v1203_v32, %v1071_v33 }
  0x3b   : > { %510 = vmatmul.bf16.gmra.mxu0 %v1014_v37  ;;  %550 = vmatmul.bf16.gmra.mxu2 %v1078_v38  ;;  %v1202_v37 = vld [vmem:[%s1305_s27 + $0x74] sm:$0xf0]  ;;  %v1125_v38 = vld [vmem:[%s1305_s27 + $0xf0] sm:$0xf] }
  0x3c   : > { %v1062_v40 = vor.u32 %v1202_v37, %v1061_v36 }
  0x41   : > { %1170 = vmatmul.msk.bf16.gmra.mxu1 %vm448_vm0, %v1034_v41  ;;  %v1126_v41 = vor.u32 %v1218_v39, %v1125_v38 }
  0x42   : > { %1179 = vmatmul.msk.bf16.gmra.mxu3 %vm448_vm0, %v1106_v44 }
  0x4b   : > { %515 = vmatmul.bf16.gmra.mxu0 %v1022_v49  ;;  %555 = vmatmul.bf16.gmra.mxu2 %v1086_v50 }
  0x51   : > { %1171 = vmatmul.msk.bf16.gmra.mxu1 %vm448_vm0, %v1042_v53 }
  0x52   : > { %1180 = vmatmul.msk.bf16.gmra.mxu3 %vm448_vm0, %v1114_v56 }
  0x5b   : > { %520 = vmatmul.bf16.gmra.mxu0 %v1030_v61  ;;  %560 = vmatmul.bf16.gmra.mxu2 %v1094_v62 }
  0x61   : > { %1172 = vmatmul.msk.bf16.gmra.mxu1 %vm448_vm0, %v1050_v1 }
  0x62   : > { %1181 = vmatmul.msk.bf16.gmra.mxu3 %vm448_vm0, %v1122_v4 }
  0x6b   : > { %525 = vmatmul.bf16.gmra.mxu0 %v1038_v9  ;;  %565 = vmatmul.bf16.gmra.mxu2 %v1102_v10 }
  0x71   : > { %1173 = vmatmul.msk.bf16.gmra.mxu1 %vm448_vm0, %v1058_v13 }
  0x72   : > { %1182 = vmatmul.msk.bf16.gmra.mxu3 %vm448_vm0, %v1130_v16 }
  0x7b   : > { %530 = vmatmul.bf16.gmra.mxu0 %v1046_v21  ;;  %570 = vmatmul.bf16.gmra.mxu2 %v1110_v22 }
  0x81   : > { %1174 = vmatmul.msk.bf16.gmra.mxu1 %vm448_vm0, %v1066_v25 }
  0x8b   : > { %535 = vmatmul.bf16.gmra.mxu0 %v1054_v30  ;;  %575 = vmatmul.bf16.gmra.mxu2 %v1118_v31 }
  0x8e   : > { %v595_v35 = vpop.f32.mrf.mxu1 }
  0x91   : > { %1175 = vmatmul.msk.bf16.gmra.mxu1 %vm448_vm0, %v1074_v34 }
  0x95   : > { %v640_v44 = vpop.f32.mrf.mxu3 }
  0x96   : > { %v597_v42 = vpop.f32.mrf.mxu1 }
  0x9b   : > { %540 = vmatmul.bf16.gmra.mxu0 %v1062_v40  ;;  %580 = vmatmul.bf16.gmra.mxu2 %v1126_v41 }
  0x9d   : > { %v642_v50 = vpop.f32.mrf.mxu3 }
  0x9e   : > { %v600_v43 = vpop.f32.mrf.mxu1 }
  0xa5   : > { %v645_v59 = vpop.f32.mrf.mxu3 }
  0xa6   : > { %v602_v47 = vpop.f32.mrf.mxu1 }
  0xa8   : > { %v506_v45 = vpop.f32.mrf.mxu0 }
  0xa9   : > { %v1406_v46 = vadd.f32 %v595_v35, %v506_v45 }
  0xab   : > { %v675_v48 = vpack.c.bf16 %v1406_v46, %v1406_v46 }
  0xad   : > { %708 = vst.msk [vmem:[%s1411_s19] sm:$0xf] %vm707_vm1, %v675_v48  ;;  %v647_v4 = vpop.f32.mrf.mxu3 }
  0xae   : > { %v1417_v49 = vpop.f32.mrf.mxu2  ;;  %v605_v53 = vpop.f32.mrf.mxu1 }
  0xb0   : > { %v508_v51 = vpop.f32.mrf.mxu0 }
  0xb1   : > { %v1419_v52 = vadd.f32 %v597_v42, %v508_v51 }
  0xb3   : > { %v676_v54 = vpack.c.bf16 %v1419_v52, %v1419_v52 }
  0xb5   : > { %709 = vst.msk [vmem:[%s1411_s19 + $0x4] sm:$0xf] %vm707_vm1, %v676_v54  ;;  %v650_v12 = vpop.f32.mrf.mxu3 }
  0xb6   : > { %v1425_v55 = vpop.f32.mrf.mxu2  ;;  %v607_v58 = vpop.f32.mrf.mxu1 }
  0xb8   : > { %v511_v56 = vpop.f32.mrf.mxu0 }
  0xb9   : > { %v1427_v57 = vadd.f32 %v600_v43, %v511_v56 }
  0xbb   : > { %v677_v60 = vpack.c.bf16 %v1427_v57, %v1427_v57 }
  0xbd   : > { %710 = vst.msk [vmem:[%s1411_s19 + $0x8] sm:$0xf] %vm707_vm1, %v677_v60  ;;  %v652_v21 = vpop.f32.mrf.mxu3 }
  0xbe   : > { %v551_v61 = vpop.f32.mrf.mxu2  ;;  %v610_v1 = vpop.f32.mrf.mxu1 }
  0xbf   : > { %v1433_v62 = vadd.f32 %v640_v44, %v551_v61 }
  0xc0   : > { %v513_v63 = vpop.f32.mrf.mxu0 }
  0xc1   : > { %v1435_v0 = vadd.f32 %v602_v47, %v513_v63  ;;  %v693_v2 = vpack.c.bf16 %v1433_v62, %v1433_v62 }
  0xc3   : > { %v678_v3 = vpack.c.bf16 %v1435_v0, %v1435_v0  ;;  %726 = vst.msk [vmem:[%s1411_s19 + $0x48] sm:$0xf] %vm707_vm1, %v693_v2 }
  0xc5   : > { %711 = vst.msk [vmem:[%s1411_s19 + $0xc] sm:$0xf] %vm707_vm1, %v678_v3  ;;  %v655_v33 = vpop.f32.mrf.mxu3 }
  0xc6   : > { %v553_v5 = vpop.f32.mrf.mxu2  ;;  %v612_v9 = vpop.f32.mrf.mxu1 }
  0xc7   : > { %v1445_v6 = vadd.f32 %v642_v50, %v553_v5 }
  0xc8   : > { %v516_v7 = vpop.f32.mrf.mxu0 }
  0xc9   : > { %v1447_v8 = vadd.f32 %v605_v53, %v516_v7  ;;  %v694_v10 = vpack.c.bf16 %v1445_v6, %v1445_v6 }
  0xcb   : > { %v679_v11 = vpack.c.bf16 %v1447_v8, %v1447_v8  ;;  %727 = vst.msk [vmem:[%s1411_s19 + $0x4c] sm:$0xf] %vm707_vm1, %v694_v10 }
  0xcd   : > { %712 = vst.msk [vmem:[%s1411_s19 + $0x10] sm:$0xf] %vm707_vm1, %v679_v11  ;;  %v657_v43 = vpop.f32.mrf.mxu3 }
  0xce   : > { %v556_v13 = vpop.f32.mrf.mxu2  ;;  %v615_v17 = vpop.f32.mrf.mxu1 }
  0xcf   : > { %v1457_v14 = vadd.f32 %v645_v59, %v556_v13 }
  0xd0   : > { %v518_v15 = vpop.f32.mrf.mxu0 }
  0xd1   : > { %v1459_v16 = vadd.f32 %v607_v58, %v518_v15  ;;  %v695_v18 = vpack.c.bf16 %v1457_v14, %v1457_v14 }
  0xd3   : > { %v680_v19 = vpack.c.bf16 %v1459_v16, %v1459_v16  ;;  %728 = vst.msk [vmem:[%s1411_s19 + $0x50] sm:$0xf] %vm707_vm1, %v695_v18 }
  0xd5   : > { %713 = vst.msk [vmem:[%s1411_s19 + $0x14] sm:$0xf] %vm707_vm1, %v680_v19  ;;  %v660_v54 = vpop.f32.mrf.mxu3 }
  0xd6   : > { %v558_v20 = vpop.f32.mrf.mxu2  ;;  %v617_v25 = vpop.f32.mrf.mxu1 }
  0xd7   : > { %v1469_v22 = vadd.f32 %v647_v4, %v558_v20 }
  0xd8   : > { %v521_v23 = vpop.f32.mrf.mxu0 }
  0xd9   : > { %v1471_v24 = vadd.f32 %v610_v1, %v521_v23  ;;  %v696_v26 = vpack.c.bf16 %v1469_v22, %v1469_v22 }
  0xdb   : > { %v681_v27 = vpack.c.bf16 %v1471_v24, %v1471_v24  ;;  %729 = vst.msk [vmem:[%s1411_s19 + $0x54] sm:$0xf] %vm707_vm1, %v696_v26 }
  0xdd   : > { %714 = vst.msk [vmem:[%s1411_s19 + $0x18] sm:$0xf] %vm707_vm1, %v681_v27  ;;  %v662_v3 = vpop.f32.mrf.mxu3 }
  0xde   : > { %v561_v28 = vpop.f32.mrf.mxu2  ;;  %v620_v32 = vpop.f32.mrf.mxu1 }
  0xdf   : > { %v1481_v29 = vadd.f32 %v650_v12, %v561_v28 }
  0xe0   : > { %v523_v30 = vpop.f32.mrf.mxu0 }
  0xe1   : > { %v1483_v31 = vadd.f32 %v612_v9, %v523_v30  ;;  %v697_v34 = vpack.c.bf16 %v1481_v29, %v1481_v29 }
  0xe3   : > { %v682_v35 = vpack.c.bf16 %v1483_v31, %v1483_v31  ;;  %730 = vst.msk [vmem:[%s1411_s19 + $0x58] sm:$0xf] %vm707_vm1, %v697_v34 }
  0xe5   : > { %715 = vst.msk [vmem:[%s1411_s19 + $0x1c] sm:$0xf] %vm707_vm1, %v682_v35 }
  0xe6   : > { %v563_v36 = vpop.f32.mrf.mxu2  ;;  %v622_v40 = vpop.f32.mrf.mxu1 }
  0xe7   : > { %v1493_v37 = vadd.f32 %v652_v21, %v563_v36 }
  0xe8   : > { %v526_v38 = vpop.f32.mrf.mxu0 }
  0xe9   : > { %v1495_v39 = vadd.f32 %v615_v17, %v526_v38  ;;  %v698_v41 = vpack.c.bf16 %v1493_v37, %v1493_v37  ;;  %v665_v17 = vpop.f32.mrf.mxu3 }
  0xeb   : > { %v683_v42 = vpack.c.bf16 %v1495_v39, %v1495_v39  ;;  %731 = vst.msk [vmem:[%s1411_s19 + $0x5c] sm:$0xf] %vm707_vm1, %v698_v41 }
  0xed   : > { %716 = vst.msk [vmem:[%s1411_s19 + $0x20] sm:$0xf] %vm707_vm1, %v683_v42 }
  0xee   : > { %v566_v44 = vpop.f32.mrf.mxu2  ;;  %v625_v50 = vpop.f32.mrf.mxu1 }
  0xef   : > { %v1505_v45 = vadd.f32 %v655_v33, %v566_v44 }
  0xf0   : > { %v528_v47 = vpop.f32.mrf.mxu0 }
  0xf1   : > { %v1507_v48 = vadd.f32 %v617_v25, %v528_v47  ;;  %v699_v51 = vpack.c.bf16 %v1505_v45, %v1505_v45  ;;  %v667_v33 = vpop.f32.mrf.mxu3 }
  0xf3   : > { %v684_v53 = vpack.c.bf16 %v1507_v48, %v1507_v48  ;;  %732 = vst.msk [vmem:[%s1411_s19 + $0x60] sm:$0xf] %vm707_vm1, %v699_v51 }
  0xf5   : > { %717 = vst.msk [vmem:[%s1411_s19 + $0x24] sm:$0xf] %vm707_vm1, %v684_v53 }
  0xf6   : > { %v568_v56 = vpop.f32.mrf.mxu2  ;;  %v627_v61 = vpop.f32.mrf.mxu1 }
  0xf7   : > { %v1517_v58 = vadd.f32 %v657_v43, %v568_v56 }
  0xf8   : > { %v531_v59 = vpop.f32.mrf.mxu0 }
  0xf9   : > { %v1519_v60 = vadd.f32 %v620_v32, %v531_v59  ;;  %v700_v63 = vpack.c.bf16 %v1517_v58, %v1517_v58 }
  0xfb   : > { %v685_v1 = vpack.c.bf16 %v1519_v60, %v1519_v60  ;;  %733 = vst.msk [vmem:[%s1411_s19 + $0x64] sm:$0xf] %vm707_vm1, %v700_v63 }
  0xfd   : > { %718 = vst.msk [vmem:[%s1411_s19 + $0x28] sm:$0xf] %vm707_vm1, %v685_v1 }
  0xfe   : > { %v571_v2 = vpop.f32.mrf.mxu2  ;;  %v630_v9 = vpop.f32.mrf.mxu1 }
  0xff   : > { %v1529_v4 = vadd.f32 %v660_v54, %v571_v2 }
 0x100   : > { %v533_v5 = vpop.f32.mrf.mxu0 }
 0x101   : > { %v1531_v7 = vadd.f32 %v622_v40, %v533_v5  ;;  %v701_v10 = vpack.c.bf16 %v1529_v4, %v1529_v4 }
 0x103   : > { %v686_v11 = vpack.c.bf16 %v1531_v7, %v1531_v7  ;;  %734 = vst.msk [vmem:[%s1411_s19 + $0x68] sm:$0xf] %vm707_vm1, %v701_v10 }
 0x105   : > { %719 = vst.msk [vmem:[%s1411_s19 + $0x2c] sm:$0xf] %vm707_vm1, %v686_v11 }
 0x106   : > { %v573_v12 = vpop.f32.mrf.mxu2  ;;  %v632_v19 = vpop.f32.mrf.mxu1 }
 0x107   : > { %v1541_v13 = vadd.f32 %v662_v3, %v573_v12 }
 0x108   : > { %v536_v15 = vpop.f32.mrf.mxu0 }
 0x109   : > { %v1543_v18 = vadd.f32 %v625_v50, %v536_v15  ;;  %v702_v20 = vpack.c.bf16 %v1541_v13, %v1541_v13  ;;  %v670_v50 = vpop.f32.mrf.mxu3 }
 0x10b   : > { %v687_v21 = vpack.c.bf16 %v1543_v18, %v1543_v18  ;;  %735 = vst.msk [vmem:[%s1411_s19 + $0x6c] sm:$0xf] %vm707_vm1, %v702_v20 }
 0x10d   : > { %720 = vst.msk [vmem:[%s1411_s19 + $0x30] sm:$0xf] %vm707_vm1, %v687_v21 }
 0x10e   : > { %v576_v23 = vpop.f32.mrf.mxu2  ;;  %v635_v28 = vpop.f32.mrf.mxu1 }
 0x10f   : > { %v1553_v25 = vadd.f32 %v665_v17, %v576_v23  ;;  %v1560_v32 = vadd.f32 %v635_v28, %v1417_v49 }
 0x110   : > { %v538_v26 = vpop.f32.mrf.mxu0 }
 0x111   : > { %v1555_v27 = vadd.f32 %v627_v61, %v538_v26  ;;  %v703_v30 = vpack.c.bf16 %v1553_v25, %v1553_v25  ;;  %v691_v35 = vpack.c.bf16 %v1560_v32, %v1560_v32  ;;  %v672_v61 = vpop.f32.mrf.mxu3 }
 0x113   : > { %v688_v34 = vpack.c.bf16 %v1555_v27, %v1555_v27  ;;  %736 = vst.msk [vmem:[%s1411_s19 + $0x70] sm:$0xf] %vm707_vm1, %v703_v30 }
 0x114   : > { %724 = vst.msk [vmem:[%s1411_s19 + $0x40] sm:$0xf] %vm707_vm1, %v691_v35 }
 0x115   : > { %721 = vst.msk [vmem:[%s1411_s19 + $0x34] sm:$0xf] %vm707_vm1, %v688_v34 }
 0x116   : > { %v578_v36 = vpop.f32.mrf.mxu2  ;;  %v637_v41 = vpop.f32.mrf.mxu1 }
 0x117   : > { %v1572_v38 = vadd.f32 %v667_v33, %v578_v36  ;;  %v1579_v43 = vadd.f32 %v637_v41, %v1425_v55 }
 0x118   : > { %v541_v49 = vpop.f32.mrf.mxu0 }
 0x119   : > { %v1574_v40 = vadd.f32 %v630_v9, %v541_v49  ;;  %v704_v42 = vpack.c.bf16 %v1572_v38, %v1572_v38  ;;  %v692_v47 = vpack.c.bf16 %v1579_v43, %v1579_v43 }
 0x11b   : > { %v689_v44 = vpack.c.bf16 %v1574_v40, %v1574_v40  ;;  %737 = vst.msk [vmem:[%s1411_s19 + $0x74] sm:$0xf] %vm707_vm1, %v704_v42 }
 0x11c   : > { %725 = vst.msk [vmem:[%s1411_s19 + $0x44] sm:$0xf] %vm707_vm1, %v692_v47 }
 0x11d   : > { %722 = vst.msk [vmem:[%s1411_s19 + $0x38] sm:$0xf] %vm707_vm1, %v689_v44 }
 0x11e   : > { %v581_v51 = vpop.f32.mrf.mxu2 }
 0x11f   : > { %v1591_v53 = vadd.f32 %v670_v50, %v581_v51 }
 0x120   : > { %v543_v54 = vpop.f32.mrf.mxu0 }
 0x121   : > { %v1593_v55 = vadd.f32 %v632_v19, %v543_v54  ;;  %v705_v56 = vpack.c.bf16 %v1591_v53, %v1591_v53 }
 0x123   : > { %v690_v59 = vpack.c.bf16 %v1593_v55, %v1593_v55  ;;  %738 = vst.msk [vmem:[%s1411_s19 + $0x78] sm:$0xf] %vm707_vm1, %v705_v56 }
 0x125   : > { %723 = vst.msk [vmem:[%s1411_s19 + $0x3c] sm:$0xf] %vm707_vm1, %v690_v59 }
 0x126   : > { %v583_v63 = vpop.f32.mrf.mxu2 }
 0x127   : > { %v1603_v1 = vadd.f32 %v672_v61, %v583_v63  ;;  %743 = sbr.rel (%p1183_p4) target bundleno = 303 (0x12f), region = 32 }
 0x129   : > { %v706_v2 = vpack.c.bf16 %v1603_v1, %v1603_v1 }
 0x12b   : > { %739 = vst.msk [vmem:[%s1411_s19 + $0x7c] sm:$0xf] %vm707_vm1, %v706_v2 }
 0x12c   : > { %vm744_vm2 = vcmask 253952   ;;  %v1254_v3 = vmov 0.0  }
 0x12d   : > { %745 = vst.msk [vmem:[%s1795_s3] sm:$0x1] %vm744_vm2, %v1254_v3 }
 0x12e   : > { %746 = vst.msk [vmem:[%s1796_s4] sm:$0x1] %vm744_vm2, %v1254_v3 }
 0x12f PF: > { %vm748_vm3 = vcmask 261120   ;;  %v822_v26 = vmul.f32 %v1406_v46, %v1406_v46  ;;  %v823_v28 = vmul.f32 %v1419_v52, %v1419_v52  ;;  %v824_v33 = vmul.f32 %v1427_v57, %v1427_v57 }
 0x130   : > { %v749_v5 = vsel %vm748_vm3, %v1406_v46, 0.0  ;;  %v750_v9 = vsel %vm748_vm3, %v1419_v52, 0.0  ;;  %v752_v10 = vsel %vm748_vm3, %v1427_v57, 0.0  ;;  %v754_v12 = vsel %vm748_vm3, %v1435_v0, 0.0 }
 0x131   : > { %v751_v11 = vadd.f32 %v750_v9, %v749_v5  ;;  %v756_v17 = vsel %vm748_vm3, %v1447_v8, 0.0  ;;  %v758_v20 = vsel %vm748_vm3, %v1459_v16, 0.0  ;;  %v760_v23 = vsel %vm748_vm3, %v1471_v24, 0.0 }
 0x132   : > { %v762_v34 = vsel %vm748_vm3, %v1483_v31, 0.0  ;;  %v825_v35 = vmul.f32 %v1435_v0, %v1435_v0  ;;  %v764_v49 = vsel %vm748_vm3, %v1495_v39, 0.0  ;;  %v826_v46 = vmul.f32 %v1447_v8, %v1447_v8 }
 0x133   : > { %v753_v15 = vadd.f32 %v752_v10, %v751_v11  ;;  %v854_v41 = vsel %vm748_vm3, %v822_v26, 0.0  ;;  %v855_v52 = vsel %vm748_vm3, %v823_v28, 0.0  ;;  %v857_v57 = vsel %vm748_vm3, %v824_v33, 0.0 }
 0x134   : > { %v856_v44 = vadd.f32 %v855_v52, %v854_v41  ;;  %v766_v47 = vsel %vm748_vm3, %v1507_v48, 0.0  ;;  %v827_v0 = vmul.f32 %v1459_v16, %v1459_v16  ;;  %v859_v50 = vsel %vm748_vm3, %v825_v35, 0.0 }
 0x135   : > { %v755_v19 = vadd.f32 %v754_v12, %v753_v15  ;;  %v768_v8 = vsel %vm748_vm3, %v1519_v60, 0.0  ;;  %v828_v56 = vmul.f32 %v1471_v24, %v1471_v24  ;;  %v861_v59 = vsel %vm748_vm3, %v826_v46, 0.0 }
 0x136   : > { %v858_v54 = vadd.f32 %v857_v57, %v856_v44  ;;  %v770_v2 = vsel %vm748_vm3, %v1531_v7, 0.0  ;;  %v829_v16 = vmul.f32 %v1483_v31, %v1483_v31  ;;  %v863_v3 = vsel %vm748_vm3, %v827_v0, 0.0 }
 0x137   : > { %v757_v21 = vadd.f32 %v756_v17, %v755_v19  ;;  %v772_v10 = vsel %vm748_vm3, %v1543_v18, 0.0  ;;  %v830_v24 = vmul.f32 %v1495_v39, %v1495_v39  ;;  %v865_v11 = vsel %vm748_vm3, %v828_v56, 0.0 }
 0x138   : > { %v860_v63 = vadd.f32 %v859_v50, %v858_v54  ;;  %v774_v17 = vsel %vm748_vm3, %v1555_v27, 0.0  ;;  %v831_v31 = vmul.f32 %v1507_v48, %v1507_v48  ;;  %v867_v19 = vsel %vm748_vm3, %v829_v16, 0.0 }
 0x139   : > { %v759_v30 = vadd.f32 %v758_v20, %v757_v21  ;;  %v832_v39 = vmul.f32 %v1519_v60, %v1519_v60  ;;  %v869_v26 = vsel %vm748_vm3, %v830_v24, 0.0  ;;  %v778_v33 = vsel %vm748_vm3, %v1593_v55, 0.0 }
 0x13a   : > { %v862_v9 = vadd.f32 %v861_v59, %v860_v63  ;;  %v833_v48 = vmul.f32 %v1531_v7, %v1531_v7  ;;  %v834_v60 = vmul.f32 %v1543_v18, %v1543_v18  ;;  %v835_v7 = vmul.f32 %v1555_v27, %v1555_v27 }
 0x13b   : > { %v761_v36 = vadd.f32 %v760_v23, %v759_v30  ;;  %v776_v23 = vsel %vm748_vm3, %v1574_v40, 0.0  ;;  %v873_v46 = vsel %vm748_vm3, %v832_v39, 0.0  ;;  %v784_v0 = vsel %vm748_vm3, %v1433_v62, 0.0 }
 0x13c   : > { %v864_v15 = vadd.f32 %v863_v3, %v862_v9  ;;  %v875_v44 = vsel %vm748_vm3, %v833_v48, 0.0  ;;  %v836_v18 = vmul.f32 %v1574_v40, %v1574_v40  ;;  %v877_v50 = vsel %vm748_vm3, %v834_v60, 0.0 }
 0x13d   : > { %v763_v42 = vadd.f32 %v762_v34, %v761_v36  ;;  %v871_v34 = vsel %vm748_vm3, %v831_v31, 0.0  ;;  %v837_v27 = vmul.f32 %v1593_v55, %v1593_v55  ;;  %v879_v56 = vsel %vm748_vm3, %v835_v7, 0.0 }
 0x13e   : > { %v866_v21 = vadd.f32 %v865_v11, %v864_v15  ;;  %v788_v63 = vsel %vm748_vm3, %v1457_v14, 0.0  ;;  %v838_v40 = vmul.f32 %v1560_v32, %v1560_v32  ;;  %v839_v55 = vmul.f32 %v1579_v43, %v1579_v43 }
 0x13f   : > { %v765_v51 = vadd.f32 %v764_v49, %v763_v42  ;;  %v780_v49 = vsel %vm748_vm3, %v1560_v32, 0.0  ;;  %v782_v42 = vsel %vm748_vm3, %v1579_v43, 0.0  ;;  %v883_v9 = vsel %vm748_vm3, %v837_v27, 0.0 }
 0x140   : > { %v868_v30 = vadd.f32 %v867_v19, %v866_v21  ;;  %v792_v11 = vsel %vm748_vm3, %v1481_v29, 0.0  ;;  %v840_v32 = vmul.f32 %v1433_v62, %v1433_v62  ;;  %v794_v31 = vsel %vm748_vm3, %v1493_v37, 0.0 }
 0x141   : > { %v767_v61 = vadd.f32 %v766_v47, %v765_v51  ;;  %v841_v43 = vmul.f32 %v1445_v6, %v1445_v6  ;;  %v887_v19 = vsel %vm748_vm3, %v839_v55, 0.0  ;;  %v842_v62 = vmul.f32 %v1457_v14, %v1457_v14 }
 0x142   : > { %v870_v36 = vadd.f32 %v869_v26, %v868_v30  ;;  %v889_v39 = vsel %vm748_vm3, %v840_v32, 0.0  ;;  %v798_v30 = vsel %vm748_vm3, %v1517_v58, 0.0  ;;  %v844_v14 = vmul.f32 %v1481_v29, %v1481_v29 }
 0x143   : > { %v769_v5 = vadd.f32 %v768_v8, %v767_v61  ;;  %v786_v8 = vsel %vm748_vm3, %v1445_v6, 0.0  ;;  %v843_v6 = vmul.f32 %v1469_v22, %v1469_v22  ;;  %v804_v7 = vsel %vm748_vm3, %v1553_v25, 0.0 }
 0x144   : > { %v872_v52 = vadd.f32 %v871_v34, %v870_v36  ;;  %v893_v36 = vsel %vm748_vm3, %v842_v62, 0.0  ;;  %v846_v29 = vmul.f32 %v1505_v45, %v1505_v45  ;;  %vm819_vm4 = vcmask 253952  }
 0x145   : > { %v771_v12 = vadd.f32 %v770_v2, %v769_v5  ;;  %v881_v2 = vsel %vm748_vm3, %v836_v18, 0.0  ;;  %v790_v5 = vsel %vm748_vm3, %v1469_v22, 0.0  ;;  %v845_v22 = vmul.f32 %v1493_v37, %v1493_v37 }
 0x146   : > { %v874_v47 = vadd.f32 %v873_v46, %v872_v52  ;;  %v802_v46 = vsel %vm748_vm3, %v1541_v13, 0.0  ;;  %v847_v37 = vmul.f32 %v1517_v58, %v1517_v58  ;;  %v849_v58 = vmul.f32 %v1541_v13, %v1541_v13 }
 0x147   : > { %v773_v20 = vadd.f32 %v772_v10, %v771_v12  ;;  %v885_v12 = vsel %vm748_vm3, %v838_v40, 0.0  ;;  %v899_v18 = vsel %vm748_vm3, %v845_v22, 0.0  ;;  %v852_v13 = vmul.f32 %v1591_v53, %v1591_v53 }
 0x148   : > { %v876_v54 = vadd.f32 %v875_v44, %v874_v47  ;;  %v897_v44 = vsel %vm748_vm3, %v844_v14, 0.0  ;;  %v907_v55 = vsel %vm748_vm3, %v849_v58, 0.0 }
 0x149   : > { %v775_v28 = vadd.f32 %v774_v17, %v773_v20 }
 0x14a   : > { %v878_v61 = vadd.f32 %v877_v50, %v876_v54  ;;  %v808_v54 = vsel %vm748_vm3, %v1591_v53, 0.0  ;;  %v747_v53 = vld [vmem:[%s1795_s3] sm:$0x1] }
 0x14b   : > { %v777_v35 = vadd.f32 %v776_v23, %v775_v28  ;;  %v796_v23 = vsel %vm748_vm3, %v1505_v45, 0.0  ;;  %v848_v45 = vmul.f32 %v1529_v4, %v1529_v4 }
 0x14c   : > { %v880_v3 = vadd.f32 %v879_v56, %v878_v61  ;;  %v903_v61 = vsel %vm748_vm3, %v847_v37, 0.0 }
 0x14d   : > { %v779_v41 = vadd.f32 %v778_v33, %v777_v35  ;;  %v891_v33 = vsel %vm748_vm3, %v841_v43, 0.0  ;;  %v800_v35 = vsel %vm748_vm3, %v1529_v4, 0.0 }
 0x14e   : > { %v882_v24 = vadd.f32 %v881_v2, %v880_v3  ;;  %v850_v2 = vmul.f32 %v1553_v25, %v1553_v25  ;;  %v853_v25 = vmul.f32 %v1603_v1, %v1603_v1 }
 0x14f   : > { %v781_v57 = vadd.f32 %v780_v49, %v779_v41  ;;  %v895_v41 = vsel %vm748_vm3, %v843_v6, 0.0 }
 0x150   : > { %v884_v17 = vadd.f32 %v883_v9, %v882_v24  ;;  %v909_v24 = vsel %vm748_vm3, %v850_v2, 0.0 }
 0x151   : > { %v783_v51 = vadd.f32 %v782_v42, %v781_v57 }
 0x152   : > { %v886_v21 = vadd.f32 %v885_v12, %v884_v17 }
 0x153   : > { %v785_v59 = vadd.f32 %v784_v0, %v783_v51  ;;  %v806_v0 = vsel %vm748_vm3, %v1572_v38, 0.0 }
 0x154   : > { %v888_v28 = vadd.f32 %v887_v19, %v886_v21  ;;  %v915_v19 = vsel %vm748_vm3, %v853_v25, 0.0 }
 0x155   : > { %v787_v16 = vadd.f32 %v786_v8, %v785_v59  ;;  %v901_v8 = vsel %vm748_vm3, %v846_v29, 0.0  ;;  %v810_v59 = vsel %vm748_vm3, %v1603_v1, 0.0 }
 0x156   : > { %v890_v34 = vadd.f32 %v889_v39, %v888_v28 }
 0x157   : > { %v789_v10 = vadd.f32 %v788_v63, %v787_v16  ;;  %v905_v16 = vsel %vm748_vm3, %v848_v45, 0.0 }
 0x158   : > { %v892_v60 = vadd.f32 %v891_v33, %v890_v34  ;;  %v821_v33 = vld [vmem:[%s1796_s4] sm:$0x1] }
 0x159   : > { %v791_v15 = vadd.f32 %v790_v5, %v789_v10  ;;  %v851_v5 = vmul.f32 %v1572_v38, %v1572_v38  ;;  %v913_v38 = vsel %vm748_vm3, %v852_v13, 0.0 }
 0x15a   : > { %v894_v42 = vadd.f32 %v893_v36, %v892_v60 }
 0x15b   : > { %v793_v20 = vadd.f32 %v792_v11, %v791_v15  ;;  %v911_v12 = vsel %vm748_vm3, %v851_v5, 0.0 }
 0x15c   : > { %v896_v47 = vadd.f32 %v895_v41, %v894_v42 }
 0x15d   : > { %v795_v26 = vadd.f32 %v794_v31, %v793_v20 }
 0x15e   : > { %v898_v51 = vadd.f32 %v897_v44, %v896_v47 }
 0x15f   : > { %v797_v48 = vadd.f32 %v796_v23, %v795_v26 }
 0x160   : > { %v900_v56 = vadd.f32 %v899_v18, %v898_v51 }
 0x161   : > { %v799_v49 = vadd.f32 %v798_v30, %v797_v48 }
 0x162   : > { %v902_v40 = vadd.f32 %v901_v8, %v900_v56 }
 0x163   : > { %v801_v52 = vadd.f32 %v800_v35, %v799_v49 }
 0x164   : > { %v904_v3 = vadd.f32 %v903_v61, %v902_v40 }
 0x165   : > { %v803_v57 = vadd.f32 %v802_v46, %v801_v52 }
 0x166   : > { %v906_v10 = vadd.f32 %v905_v16, %v904_v3 }
 0x167   : > { %v805_v50 = vadd.f32 %v804_v7, %v803_v57 }
 0x168   : > { %v908_v32 = vadd.f32 %v907_v55, %v906_v10 }
 0x169   : > { %v807_v27 = vadd.f32 %v806_v0, %v805_v50 }
 0x16a   : > { %v910_v17 = vadd.f32 %v909_v24, %v908_v32 }
 0x16b   : > { %v809_v63 = vadd.f32 %v808_v54, %v807_v27 }
 0x16c   : > { %v912_v43 = vadd.f32 %v911_v12, %v910_v17 }
 0x16d   : > { %v811_v4 = vadd.f32 %v810_v59, %v809_v63 }
 0x16e   : > { %v914_v21 = vadd.f32 %v913_v38, %v912_v43 }
 0x16f   : > { %v812_v9 = vrot.slane %v811_v4, 4 }
 0x170   : > { %v916_v62 = vadd.f32 %v915_v19, %v914_v21 }
 0x171   : > { %v813_v11 = vadd.f32 %v812_v9, %v811_v4 }
 0x172   : > { %v917_v39 = vrot.slane %v916_v62, 4 }
 0x173   : > { %v814_v15 = vrot.slane %v813_v11, 2 }
 0x174   : > { %v918_v26 = vadd.f32 %v917_v39, %v916_v62 }
 0x175   : > { %v815_v31 = vadd.f32 %v814_v15, %v813_v11 }
 0x176   : > { %v919_v28 = vrot.slane %v918_v26, 2 }
 0x177   : > { %v816_v20 = vrot.slane %v815_v31, 1 }
 0x178   : > { %v920_v30 = vadd.f32 %v919_v28, %v918_v26 }
 0x179   : > { %v817_v23 = vadd.f32 %v816_v20, %v815_v31 }
 0x17a   : > { %v921_v6 = vrot.slane %v920_v30, 1 }
 0x17b   : > { %v818_v1 = vadd.f32 %v817_v23, %v747_v53 }
 0x17c   : > { %v922_v48 = vadd.f32 %v921_v6, %v920_v30 }
 0x17d   : > { %820 = vst.msk [vmem:[%s1795_s3] sm:$0x1] %vm819_vm4, %v818_v1 }
 0x17e   : > { %v923_v34 = vadd.f32 %v922_v48, %v821_v33 }
 0x180   : > { %924 = vst.msk [vmem:[%s1796_s4] sm:$0x1] %vm819_vm4, %v923_v34 }
 0x181 PF: > { %s15_s15 = sadd.s32 1, %s1252_s15  }
 0x182   : > { %p12_p5 = scmp.ge.s32.totalorder %s15_s15, 4  }
 0x184   :  { %14 = sbr.rel (!%p12_p5) target bundleno = 1 (0x1), region = 78 }

// kernel: lsun_decoder_forward.16
= control target key start
LH: loop header
LB: loop body
LE: loop exit
PB: predicated region body
PF: predicated region fallthrough
CT: control target
= control target key end

     0   :  { %vm406_vm0 = vcmask 257024   ;;  %s1146_s0 = inlined_call_operand.vmem [shape: bf16[512,32], index: 0, kind: input, shape index: {}]   ;;  %s1147_s1 = inlined_call_operand.vmem [shape: f32[1,32], index: 1, kind: input, shape index: {}]   ;;  %s1148_s2 = inlined_call_operand.vmem [shape: f32[1,32], index: 2, kind: input, shape index: {}]   ;;  %s1149_s3 = inlined_call_operand.vmem [shape: bf16[512,32], index: 3, kind: output, shape index: {}]  }
   0x1   :  { %v476_v0 = vld [vmem:[%s1146_s0] sm:$0xff]   ;;  %v603_v5 = vld [vmem:[%s1146_s0 + $0x8] sm:$0xff]   ;;  %v604_v8 = vld [vmem:[%s1146_s0 + $0x10] sm:$0xff]  }
   0x2   :  { %v662_v1 = vld [vmem:[%s1147_s1] ss:$0 sm:$0xff]  ;;  %v477_v2 = vunpack.c.l.bf16 %v476_v0  ;;  %v478_v4 = vunpack.c.h.bf16 %v476_v0  ;;  %v481_v6 = vunpack.c.l.bf16 %v603_v5  ;;  %v482_v7 = vunpack.c.h.bf16 %v603_v5  ;;  %v605_v9 = vld [vmem:[%s1146_s0 + $0x18] sm:$0xff]   ;;  %v607_v39 = vld [vmem:[%s1146_s0 + $0x28] sm:$0xff]  }
   0x3   :  { %v667_v3 = vld [vmem:[%s1148_s2] ss:$0 sm:$0xff]  ;;  %v485_v12 = vunpack.c.l.bf16 %v604_v8  ;;  %v486_v13 = vunpack.c.h.bf16 %v604_v8  ;;  %v489_v16 = vunpack.c.l.bf16 %v605_v9  ;;  %v490_v17 = vunpack.c.h.bf16 %v605_v9  ;;  %v608_v44 = vld [vmem:[%s1146_s0 + $0x30] sm:$0xff]   ;;  %v609_v49 = vld [vmem:[%s1146_s0 + $0x38] sm:$0xff]  }
   0x4   :  { %v146_v10 = vmul.f32 %v662_v1, %v477_v2  ;;  %v147_v11 = vmul.f32 %v662_v1, %v478_v4  ;;  %v148_v14 = vmul.f32 %v662_v1, %v481_v6  ;;  %v149_v15 = vmul.f32 %v662_v1, %v482_v7  ;;  %v606_v34 = vld [vmem:[%s1146_s0 + $0x20] sm:$0xff]  }
   0x5   :  { %v150_v20 = vmul.f32 %v662_v1, %v485_v12  ;;  %v151_v21 = vmul.f32 %v662_v1, %v486_v13  ;;  %v152_v24 = vmul.f32 %v662_v1, %v489_v16  ;;  %v153_v25 = vmul.f32 %v662_v1, %v490_v17  ;;  %v610_v16 = vld [vmem:[%s1146_s0 + $0x40] sm:$0xff]  }
   0x6   :  { %v214_v18 = vadd.f32 %v667_v3, %v146_v10  ;;  %v215_v19 = vadd.f32 %v667_v3, %v147_v11  ;;  %v216_v22 = vadd.f32 %v667_v3, %v148_v14  ;;  %v217_v23 = vadd.f32 %v667_v3, %v149_v15 }
   0x7   :  { %v218_v28 = vadd.f32 %v667_v3, %v150_v20  ;;  %v219_v29 = vadd.f32 %v667_v3, %v151_v21  ;;  %v220_v32 = vadd.f32 %v667_v3, %v152_v24  ;;  %v221_v33 = vadd.f32 %v667_v3, %v153_v25  ;;  %v611_v21 = vld [vmem:[%s1146_s0 + $0x48] sm:$0xff]  }
   0x8   :  { %v278_v26 = vmax.f32 %v214_v18, 0.0  ;;  %v279_v27 = vmax.f32 %v215_v19, 0.0  ;;  %v280_v30 = vmax.f32 %v216_v22, 0.0  ;;  %v281_v31 = vmax.f32 %v217_v23, 0.0 }
   0x9   :  { %v282_v37 = vmax.f32 %v218_v28, 0.0  ;;  %v283_v38 = vmax.f32 %v219_v29, 0.0  ;;  %v284_v42 = vmax.f32 %v220_v32, 0.0  ;;  %v285_v43 = vmax.f32 %v221_v33, 0.0 }
   0xa   :  { %v342_v35 = vpack.c.bf16 %v278_v26, %v278_v26  ;;  %v343_v36 = vpack.c.bf16 %v279_v27, %v279_v27  ;;  %v344_v40 = vpack.c.bf16 %v280_v30, %v280_v30  ;;  %v345_v41 = vpack.c.bf16 %v281_v31, %v281_v31  ;;  %v612_v26 = vld [vmem:[%s1146_s0 + $0x50] sm:$0xff]   ;;  %v613_v31 = vld [vmem:[%s1146_s0 + $0x58] sm:$0xff]  }
   0xb   :  { %v346_v45 = vpack.c.bf16 %v282_v37, %v282_v37  ;;  %v347_v46 = vpack.c.bf16 %v283_v38, %v283_v38  ;;  %v493_v47 = vunpack.c.l.bf16 %v606_v34  ;;  %v494_v48 = vunpack.c.h.bf16 %v606_v34 }
   0xc   :  { %407 = vst.msk [vmem:[%s1149_s3] sm:$0xf] %vm406_vm0, %v342_v35  ;;  %v348_v50 = vpack.c.bf16 %v284_v42, %v284_v42  ;;  %v349_v51 = vpack.c.bf16 %v285_v43, %v285_v43  ;;  %v497_v52 = vunpack.c.l.bf16 %v607_v39  ;;  %v498_v53 = vunpack.c.h.bf16 %v607_v39 }
   0xd   :  { %408 = vst.msk [vmem:[%s1149_s3 + $0x4] sm:$0xf] %vm406_vm0, %v343_v36  ;;  %v154_v54 = vmul.f32 %v662_v1, %v493_v47  ;;  %v155_v55 = vmul.f32 %v662_v1, %v494_v48  ;;  %v501_v56 = vunpack.c.l.bf16 %v608_v44  ;;  %v502_v57 = vunpack.c.h.bf16 %v608_v44 }
   0xe   :  { %409 = vst.msk [vmem:[%s1149_s3 + $0x8] sm:$0xf] %vm406_vm0, %v344_v40  ;;  %v156_v58 = vmul.f32 %v662_v1, %v497_v52  ;;  %v157_v59 = vmul.f32 %v662_v1, %v498_v53  ;;  %v505_v60 = vunpack.c.l.bf16 %v609_v49  ;;  %v506_v61 = vunpack.c.h.bf16 %v609_v49 }
   0xf   :  { %410 = vst.msk [vmem:[%s1149_s3 + $0xc] sm:$0xf] %vm406_vm0, %v345_v41  ;;  %v222_v62 = vadd.f32 %v667_v3, %v154_v54  ;;  %v223_v63 = vadd.f32 %v667_v3, %v155_v55  ;;  %v158_v0 = vmul.f32 %v662_v1, %v501_v56  ;;  %v159_v2 = vmul.f32 %v662_v1, %v502_v57 }
  0x10   :  { %411 = vst.msk [vmem:[%s1149_s3 + $0x10] sm:$0xf] %vm406_vm0, %v346_v45  ;;  %v224_v4 = vadd.f32 %v667_v3, %v156_v58  ;;  %v225_v5 = vadd.f32 %v667_v3, %v157_v59  ;;  %v160_v6 = vmul.f32 %v662_v1, %v505_v60  ;;  %v161_v7 = vmul.f32 %v662_v1, %v506_v61  ;;  %v614_v60 = vld [vmem:[%s1146_s0 + $0x60] sm:$0xff]  }
  0x11   :  { %412 = vst.msk [vmem:[%s1149_s3 + $0x14] sm:$0xf] %vm406_vm0, %v347_v46  ;;  %v286_v8 = vmax.f32 %v222_v62, 0.0  ;;  %v287_v9 = vmax.f32 %v223_v63, 0.0  ;;  %v226_v10 = vadd.f32 %v667_v3, %v158_v0  ;;  %v227_v11 = vadd.f32 %v667_v3, %v159_v2  ;;  %v615_v2 = vld [vmem:[%s1146_s0 + $0x68] sm:$0xff]  }
  0x12   :  { %413 = vst.msk [vmem:[%s1149_s3 + $0x18] sm:$0xf] %vm406_vm0, %v348_v50  ;;  %v288_v12 = vmax.f32 %v224_v4, 0.0  ;;  %v289_v13 = vmax.f32 %v225_v5, 0.0  ;;  %v228_v14 = vadd.f32 %v667_v3, %v160_v6  ;;  %v229_v15 = vadd.f32 %v667_v3, %v161_v7 }
  0x13   :  { %414 = vst.msk [vmem:[%s1149_s3 + $0x1c] sm:$0xf] %vm406_vm0, %v349_v51  ;;  %v350_v17 = vpack.c.bf16 %v286_v8, %v286_v8  ;;  %v351_v18 = vpack.c.bf16 %v287_v9, %v287_v9  ;;  %v290_v19 = vmax.f32 %v226_v10, 0.0  ;;  %v291_v20 = vmax.f32 %v227_v11, 0.0  ;;  %v616_v8 = vld [vmem:[%s1146_s0 + $0x70] sm:$0xff]  }
  0x14   :  { %v352_v22 = vpack.c.bf16 %v288_v12, %v288_v12  ;;  %v353_v23 = vpack.c.bf16 %v289_v13, %v289_v13  ;;  %v292_v24 = vmax.f32 %v228_v14, 0.0  ;;  %v293_v25 = vmax.f32 %v229_v15, 0.0  ;;  %v617_v13 = vld [vmem:[%s1146_s0 + $0x78] sm:$0xff]  }
  0x15   :  { %415 = vst.msk [vmem:[%s1149_s3 + $0x20] sm:$0xf] %vm406_vm0, %v350_v17  ;;  %v354_v27 = vpack.c.bf16 %v290_v19, %v290_v19  ;;  %v355_v28 = vpack.c.bf16 %v291_v20, %v291_v20  ;;  %v509_v29 = vunpack.c.l.bf16 %v610_v16  ;;  %v510_v30 = vunpack.c.h.bf16 %v610_v16 }
  0x16   :  { %416 = vst.msk [vmem:[%s1149_s3 + $0x24] sm:$0xf] %vm406_vm0, %v351_v18  ;;  %v356_v32 = vpack.c.bf16 %v292_v24, %v292_v24  ;;  %v357_v33 = vpack.c.bf16 %v293_v25, %v293_v25  ;;  %v513_v34 = vunpack.c.l.bf16 %v611_v21  ;;  %v514_v35 = vunpack.c.h.bf16 %v611_v21 }
  0x17   :  { %417 = vst.msk [vmem:[%s1149_s3 + $0x28] sm:$0xf] %vm406_vm0, %v352_v22  ;;  %v162_v36 = vmul.f32 %v662_v1, %v509_v29  ;;  %v163_v37 = vmul.f32 %v662_v1, %v510_v30  ;;  %v517_v38 = vunpack.c.l.bf16 %v612_v26  ;;  %v518_v39 = vunpack.c.h.bf16 %v612_v26 }
  0x18   :  { %418 = vst.msk [vmem:[%s1149_s3 + $0x2c] sm:$0xf] %vm406_vm0, %v353_v23  ;;  %v164_v40 = vmul.f32 %v662_v1, %v513_v34  ;;  %v165_v41 = vmul.f32 %v662_v1, %v514_v35  ;;  %v521_v42 = vunpack.c.l.bf16 %v613_v31  ;;  %v522_v43 = vunpack.c.h.bf16 %v613_v31 }
  0x19   :  { %419 = vst.msk [vmem:[%s1149_s3 + $0x30] sm:$0xf] %vm406_vm0, %v354_v27  ;;  %v230_v44 = vadd.f32 %v667_v3, %v162_v36  ;;  %v231_v45 = vadd.f32 %v667_v3, %v163_v37  ;;  %v166_v46 = vmul.f32 %v662_v1, %v517_v38  ;;  %v167_v47 = vmul.f32 %v662_v1, %v518_v39 }
  0x1a   :  { %420 = vst.msk [vmem:[%s1149_s3 + $0x34] sm:$0xf] %vm406_vm0, %v355_v28  ;;  %v232_v48 = vadd.f32 %v667_v3, %v164_v40  ;;  %v233_v49 = vadd.f32 %v667_v3, %v165_v41  ;;  %v168_v50 = vmul.f32 %v662_v1, %v521_v42  ;;  %v169_v51 = vmul.f32 %v662_v1, %v522_v43  ;;  %v618_v42 = vld [vmem:[%s1146_s0 + $0x80] sm:$0xff]  }
  0x1b   :  { %421 = vst.msk [vmem:[%s1149_s3 + $0x38] sm:$0xf] %vm406_vm0, %v356_v32  ;;  %v294_v52 = vmax.f32 %v230_v44, 0.0  ;;  %v295_v53 = vmax.f32 %v231_v45, 0.0  ;;  %v234_v54 = vadd.f32 %v667_v3, %v166_v46  ;;  %v235_v55 = vadd.f32 %v667_v3, %v167_v47  ;;  %v619_v47 = vld [vmem:[%s1146_s0 + $0x88] sm:$0xff]  }
  0x1c   :  { %422 = vst.msk [vmem:[%s1149_s3 + $0x3c] sm:$0xf] %vm406_vm0, %v357_v33  ;;  %v296_v56 = vmax.f32 %v232_v48, 0.0  ;;  %v297_v57 = vmax.f32 %v233_v49, 0.0  ;;  %v236_v58 = vadd.f32 %v667_v3, %v168_v50  ;;  %v237_v59 = vadd.f32 %v667_v3, %v169_v51 }
  0x1d   :  { %v358_v61 = vpack.c.bf16 %v294_v52, %v294_v52  ;;  %v359_v62 = vpack.c.bf16 %v295_v53, %v295_v53  ;;  %v298_v63 = vmax.f32 %v234_v54, 0.0  ;;  %v299_v0 = vmax.f32 %v235_v55, 0.0  ;;  %v620_v52 = vld [vmem:[%s1146_s0 + $0x90] sm:$0xff]  }
  0x1e   :  { %v360_v4 = vpack.c.bf16 %v296_v56, %v296_v56  ;;  %v361_v5 = vpack.c.bf16 %v297_v57, %v297_v57  ;;  %v300_v6 = vmax.f32 %v236_v58, 0.0  ;;  %v301_v7 = vmax.f32 %v237_v59, 0.0  ;;  %v621_v57 = vld [vmem:[%s1146_s0 + $0x98] sm:$0xff]  }
  0x1f   :  { %423 = vst.msk [vmem:[%s1149_s3 + $0x40] sm:$0xf] %vm406_vm0, %v358_v61  ;;  %v362_v9 = vpack.c.bf16 %v298_v63, %v298_v63  ;;  %v363_v10 = vpack.c.bf16 %v299_v0, %v299_v0  ;;  %v525_v11 = vunpack.c.l.bf16 %v614_v60  ;;  %v526_v12 = vunpack.c.h.bf16 %v614_v60 }
  0x20   :  { %424 = vst.msk [vmem:[%s1149_s3 + $0x44] sm:$0xf] %vm406_vm0, %v359_v62  ;;  %v364_v14 = vpack.c.bf16 %v300_v6, %v300_v6  ;;  %v365_v15 = vpack.c.bf16 %v301_v7, %v301_v7  ;;  %v529_v16 = vunpack.c.l.bf16 %v615_v2  ;;  %v530_v17 = vunpack.c.h.bf16 %v615_v2 }
  0x21   :  { %425 = vst.msk [vmem:[%s1149_s3 + $0x48] sm:$0xf] %vm406_vm0, %v360_v4  ;;  %v170_v18 = vmul.f32 %v662_v1, %v525_v11  ;;  %v171_v19 = vmul.f32 %v662_v1, %v526_v12  ;;  %v533_v20 = vunpack.c.l.bf16 %v616_v8  ;;  %v534_v21 = vunpack.c.h.bf16 %v616_v8 }
  0x22   :  { %426 = vst.msk [vmem:[%s1149_s3 + $0x4c] sm:$0xf] %vm406_vm0, %v361_v5  ;;  %v172_v22 = vmul.f32 %v662_v1, %v529_v16  ;;  %v173_v23 = vmul.f32 %v662_v1, %v530_v17  ;;  %v537_v24 = vunpack.c.l.bf16 %v617_v13  ;;  %v538_v25 = vunpack.c.h.bf16 %v617_v13 }
  0x23   :  { %427 = vst.msk [vmem:[%s1149_s3 + $0x50] sm:$0xf] %vm406_vm0, %v362_v9  ;;  %v238_v26 = vadd.f32 %v667_v3, %v170_v18  ;;  %v239_v27 = vadd.f32 %v667_v3, %v171_v19  ;;  %v174_v28 = vmul.f32 %v662_v1, %v533_v20  ;;  %v175_v29 = vmul.f32 %v662_v1, %v534_v21 }
  0x24   :  { %428 = vst.msk [vmem:[%s1149_s3 + $0x54] sm:$0xf] %vm406_vm0, %v363_v10  ;;  %v240_v30 = vadd.f32 %v667_v3, %v172_v22  ;;  %v241_v31 = vadd.f32 %v667_v3, %v173_v23  ;;  %v176_v32 = vmul.f32 %v662_v1, %v537_v24  ;;  %v177_v33 = vmul.f32 %v662_v1, %v538_v25  ;;  %v622_v24 = vld [vmem:[%s1146_s0 + $0xa0] sm:$0xff]  }
  0x25   :  { %429 = vst.msk [vmem:[%s1149_s3 + $0x58] sm:$0xf] %vm406_vm0, %v364_v14  ;;  %v302_v34 = vmax.f32 %v238_v26, 0.0  ;;  %v303_v35 = vmax.f32 %v239_v27, 0.0  ;;  %v242_v36 = vadd.f32 %v667_v3, %v174_v28  ;;  %v243_v37 = vadd.f32 %v667_v3, %v175_v29  ;;  %v623_v29 = vld [vmem:[%s1146_s0 + $0xa8] sm:$0xff]  }
  0x26   :  { %430 = vst.msk [vmem:[%s1149_s3 + $0x5c] sm:$0xf] %vm406_vm0, %v365_v15  ;;  %v304_v38 = vmax.f32 %v240_v30, 0.0  ;;  %v305_v39 = vmax.f32 %v241_v31, 0.0  ;;  %v244_v40 = vadd.f32 %v667_v3, %v176_v32  ;;  %v245_v41 = vadd.f32 %v667_v3, %v177_v33 }
  0x27   :  { %v366_v43 = vpack.c.bf16 %v302_v34, %v302_v34  ;;  %v367_v44 = vpack.c.bf16 %v303_v35, %v303_v35  ;;  %v306_v45 = vmax.f32 %v242_v36, 0.0  ;;  %v307_v46 = vmax.f32 %v243_v37, 0.0  ;;  %v624_v34 = vld [vmem:[%s1146_s0 + $0xb0] sm:$0xff]  }
  0x28   :  { %v368_v48 = vpack.c.bf16 %v304_v38, %v304_v38  ;;  %v369_v49 = vpack.c.bf16 %v305_v39, %v305_v39  ;;  %v308_v50 = vmax.f32 %v244_v40, 0.0  ;;  %v309_v51 = vmax.f32 %v245_v41, 0.0  ;;  %v625_v39 = vld [vmem:[%s1146_s0 + $0xb8] sm:$0xff]  }
  0x29   :  { %431 = vst.msk [vmem:[%s1149_s3 + $0x60] sm:$0xf] %vm406_vm0, %v366_v43  ;;  %v370_v53 = vpack.c.bf16 %v306_v45, %v306_v45  ;;  %v371_v54 = vpack.c.bf16 %v307_v46, %v307_v46  ;;  %v541_v55 = vunpack.c.l.bf16 %v618_v42  ;;  %v542_v56 = vunpack.c.h.bf16 %v618_v42 }
  0x2a   :  { %432 = vst.msk [vmem:[%s1149_s3 + $0x64] sm:$0xf] %vm406_vm0, %v367_v44  ;;  %v372_v58 = vpack.c.bf16 %v308_v50, %v308_v50  ;;  %v373_v59 = vpack.c.bf16 %v309_v51, %v309_v51  ;;  %v545_v60 = vunpack.c.l.bf16 %v619_v47  ;;  %v546_v61 = vunpack.c.h.bf16 %v619_v47 }
  0x2b   :  { %433 = vst.msk [vmem:[%s1149_s3 + $0x68] sm:$0xf] %vm406_vm0, %v368_v48  ;;  %v178_v62 = vmul.f32 %v662_v1, %v541_v55  ;;  %v179_v63 = vmul.f32 %v662_v1, %v542_v56  ;;  %v549_v0 = vunpack.c.l.bf16 %v620_v52  ;;  %v550_v2 = vunpack.c.h.bf16 %v620_v52 }
  0x2c   :  { %434 = vst.msk [vmem:[%s1149_s3 + $0x6c] sm:$0xf] %vm406_vm0, %v369_v49  ;;  %v180_v4 = vmul.f32 %v662_v1, %v545_v60  ;;  %v181_v5 = vmul.f32 %v662_v1, %v546_v61  ;;  %v553_v6 = vunpack.c.l.bf16 %v621_v57  ;;  %v554_v7 = vunpack.c.h.bf16 %v621_v57 }
  0x2d   :  { %435 = vst.msk [vmem:[%s1149_s3 + $0x70] sm:$0xf] %vm406_vm0, %v370_v53  ;;  %v246_v8 = vadd.f32 %v667_v3, %v178_v62  ;;  %v247_v9 = vadd.f32 %v667_v3, %v179_v63  ;;  %v182_v10 = vmul.f32 %v662_v1, %v549_v0  ;;  %v183_v11 = vmul.f32 %v662_v1, %v550_v2 }
  0x2e   :  { %436 = vst.msk [vmem:[%s1149_s3 + $0x74] sm:$0xf] %vm406_vm0, %v371_v54  ;;  %v248_v12 = vadd.f32 %v667_v3, %v180_v4  ;;  %v249_v13 = vadd.f32 %v667_v3, %v181_v5  ;;  %v184_v14 = vmul.f32 %v662_v1, %v553_v6  ;;  %v185_v15 = vmul.f32 %v662_v1, %v554_v7  ;;  %v626_v6 = vld [vmem:[%s1146_s0 + $0xc0] sm:$0xff]  }
  0x2f   :  { %437 = vst.msk [vmem:[%s1149_s3 + $0x78] sm:$0xf] %vm406_vm0, %v372_v58  ;;  %v310_v16 = vmax.f32 %v246_v8, 0.0  ;;  %v311_v17 = vmax.f32 %v247_v9, 0.0  ;;  %v250_v18 = vadd.f32 %v667_v3, %v182_v10  ;;  %v251_v19 = vadd.f32 %v667_v3, %v183_v11  ;;  %v627_v11 = vld [vmem:[%s1146_s0 + $0xc8] sm:$0xff]  }
  0x30   :  { %438 = vst.msk [vmem:[%s1149_s3 + $0x7c] sm:$0xf] %vm406_vm0, %v373_v59  ;;  %v312_v20 = vmax.f32 %v248_v12, 0.0  ;;  %v313_v21 = vmax.f32 %v249_v13, 0.0  ;;  %v252_v22 = vadd.f32 %v667_v3, %v184_v14  ;;  %v253_v23 = vadd.f32 %v667_v3, %v185_v15 }
  0x31   :  { %v374_v25 = vpack.c.bf16 %v310_v16, %v310_v16  ;;  %v375_v26 = vpack.c.bf16 %v311_v17, %v311_v17  ;;  %v314_v27 = vmax.f32 %v250_v18, 0.0  ;;  %v315_v28 = vmax.f32 %v251_v19, 0.0  ;;  %v628_v16 = vld [vmem:[%s1146_s0 + $0xd0] sm:$0xff]  }
  0x32   :  { %v376_v30 = vpack.c.bf16 %v312_v20, %v312_v20  ;;  %v377_v31 = vpack.c.bf16 %v313_v21, %v313_v21  ;;  %v316_v32 = vmax.f32 %v252_v22, 0.0  ;;  %v317_v33 = vmax.f32 %v253_v23, 0.0  ;;  %v629_v21 = vld [vmem:[%s1146_s0 + $0xd8] sm:$0xff]  }
  0x33   :  { %439 = vst.msk [vmem:[%s1149_s3 + $0x80] sm:$0xf] %vm406_vm0, %v374_v25  ;;  %v378_v35 = vpack.c.bf16 %v314_v27, %v314_v27  ;;  %v379_v36 = vpack.c.bf16 %v315_v28, %v315_v28  ;;  %v557_v37 = vunpack.c.l.bf16 %v622_v24  ;;  %v558_v38 = vunpack.c.h.bf16 %v622_v24 }
  0x34   :  { %440 = vst.msk [vmem:[%s1149_s3 + $0x84] sm:$0xf] %vm406_vm0, %v375_v26  ;;  %v380_v40 = vpack.c.bf16 %v316_v32, %v316_v32  ;;  %v381_v41 = vpack.c.bf16 %v317_v33, %v317_v33  ;;  %v561_v42 = vunpack.c.l.bf16 %v623_v29  ;;  %v562_v43 = vunpack.c.h.bf16 %v623_v29 }
  0x35   :  { %441 = vst.msk [vmem:[%s1149_s3 + $0x88] sm:$0xf] %vm406_vm0, %v376_v30  ;;  %v186_v44 = vmul.f32 %v662_v1, %v557_v37  ;;  %v187_v45 = vmul.f32 %v662_v1, %v558_v38  ;;  %v565_v46 = vunpack.c.l.bf16 %v624_v34  ;;  %v566_v47 = vunpack.c.h.bf16 %v624_v34 }
  0x36   :  { %442 = vst.msk [vmem:[%s1149_s3 + $0x8c] sm:$0xf] %vm406_vm0, %v377_v31  ;;  %v188_v48 = vmul.f32 %v662_v1, %v561_v42  ;;  %v189_v49 = vmul.f32 %v662_v1, %v562_v43  ;;  %v569_v50 = vunpack.c.l.bf16 %v625_v39  ;;  %v570_v51 = vunpack.c.h.bf16 %v625_v39 }
  0x37   :  { %443 = vst.msk [vmem:[%s1149_s3 + $0x90] sm:$0xf] %vm406_vm0, %v378_v35  ;;  %v254_v52 = vadd.f32 %v667_v3, %v186_v44  ;;  %v255_v53 = vadd.f32 %v667_v3, %v187_v45  ;;  %v190_v54 = vmul.f32 %v662_v1, %v565_v46  ;;  %v191_v55 = vmul.f32 %v662_v1, %v566_v47 }
  0x38   :  { %444 = vst.msk [vmem:[%s1149_s3 + $0x94] sm:$0xf] %vm406_vm0, %v379_v36  ;;  %v256_v56 = vadd.f32 %v667_v3, %v188_v48  ;;  %v257_v57 = vadd.f32 %v667_v3, %v189_v49  ;;  %v192_v58 = vmul.f32 %v662_v1, %v569_v50  ;;  %v193_v59 = vmul.f32 %v662_v1, %v570_v51  ;;  %v630_v50 = vld [vmem:[%s1146_s0 + $0xe0] sm:$0xff]  }
  0x39   :  { %445 = vst.msk [vmem:[%s1149_s3 + $0x98] sm:$0xf] %vm406_vm0, %v380_v40  ;;  %v318_v60 = vmax.f32 %v254_v52, 0.0  ;;  %v319_v61 = vmax.f32 %v255_v53, 0.0  ;;  %v258_v62 = vadd.f32 %v667_v3, %v190_v54  ;;  %v259_v63 = vadd.f32 %v667_v3, %v191_v55  ;;  %v631_v55 = vld [vmem:[%s1146_s0 + $0xe8] sm:$0xff]  }
  0x3a   :  { %446 = vst.msk [vmem:[%s1149_s3 + $0x9c] sm:$0xf] %vm406_vm0, %v381_v41  ;;  %v320_v0 = vmax.f32 %v256_v56, 0.0  ;;  %v321_v2 = vmax.f32 %v257_v57, 0.0  ;;  %v260_v4 = vadd.f32 %v667_v3, %v192_v58  ;;  %v261_v5 = vadd.f32 %v667_v3, %v193_v59 }
  0x3b   :  { %v382_v7 = vpack.c.bf16 %v318_v60, %v318_v60  ;;  %v383_v8 = vpack.c.bf16 %v319_v61, %v319_v61  ;;  %v322_v9 = vmax.f32 %v258_v62, 0.0  ;;  %v323_v10 = vmax.f32 %v259_v63, 0.0  ;;  %v632_v60 = vld [vmem:[%s1146_s0 + $0xf0] sm:$0xff]  }
  0x3c   :  { %v384_v12 = vpack.c.bf16 %v320_v0, %v320_v0  ;;  %v385_v13 = vpack.c.bf16 %v321_v2, %v321_v2  ;;  %v324_v14 = vmax.f32 %v260_v4, 0.0  ;;  %v325_v15 = vmax.f32 %v261_v5, 0.0  ;;  %v633_v2 = vld [vmem:[%s1146_s0 + $0xf8] sm:$0xff]  }
  0x3d   :  { %447 = vst.msk [vmem:[%s1149_s3 + $0xa0] sm:$0xf] %vm406_vm0, %v382_v7  ;;  %v386_v17 = vpack.c.bf16 %v322_v9, %v322_v9  ;;  %v387_v18 = vpack.c.bf16 %v323_v10, %v323_v10  ;;  %v573_v19 = vunpack.c.l.bf16 %v626_v6  ;;  %v574_v20 = vunpack.c.h.bf16 %v626_v6 }
  0x3e   :  { %448 = vst.msk [vmem:[%s1149_s3 + $0xa4] sm:$0xf] %vm406_vm0, %v383_v8  ;;  %v388_v22 = vpack.c.bf16 %v324_v14, %v324_v14  ;;  %v389_v23 = vpack.c.bf16 %v325_v15, %v325_v15  ;;  %v577_v24 = vunpack.c.l.bf16 %v627_v11  ;;  %v578_v25 = vunpack.c.h.bf16 %v627_v11 }
  0x3f   :  { %449 = vst.msk [vmem:[%s1149_s3 + $0xa8] sm:$0xf] %vm406_vm0, %v384_v12  ;;  %v194_v26 = vmul.f32 %v662_v1, %v573_v19  ;;  %v195_v27 = vmul.f32 %v662_v1, %v574_v20  ;;  %v581_v28 = vunpack.c.l.bf16 %v628_v16  ;;  %v582_v29 = vunpack.c.h.bf16 %v628_v16 }
  0x40   :  { %450 = vst.msk [vmem:[%s1149_s3 + $0xac] sm:$0xf] %vm406_vm0, %v385_v13  ;;  %v196_v30 = vmul.f32 %v662_v1, %v577_v24  ;;  %v197_v31 = vmul.f32 %v662_v1, %v578_v25  ;;  %v585_v32 = vunpack.c.l.bf16 %v629_v21  ;;  %v586_v33 = vunpack.c.h.bf16 %v629_v21 }
  0x41   :  { %451 = vst.msk [vmem:[%s1149_s3 + $0xb0] sm:$0xf] %vm406_vm0, %v386_v17  ;;  %v262_v34 = vadd.f32 %v667_v3, %v194_v26  ;;  %v263_v35 = vadd.f32 %v667_v3, %v195_v27  ;;  %v198_v36 = vmul.f32 %v662_v1, %v581_v28  ;;  %v199_v37 = vmul.f32 %v662_v1, %v582_v29 }
  0x42   :  { %452 = vst.msk [vmem:[%s1149_s3 + $0xb4] sm:$0xf] %vm406_vm0, %v387_v18  ;;  %v264_v38 = vadd.f32 %v667_v3, %v196_v30  ;;  %v265_v39 = vadd.f32 %v667_v3, %v197_v31  ;;  %v200_v40 = vmul.f32 %v662_v1, %v585_v32  ;;  %v201_v41 = vmul.f32 %v662_v1, %v586_v33 }
  0x43   :  { %453 = vst.msk [vmem:[%s1149_s3 + $0xb8] sm:$0xf] %vm406_vm0, %v388_v22  ;;  %v326_v42 = vmax.f32 %v262_v34, 0.0  ;;  %v327_v43 = vmax.f32 %v263_v35, 0.0  ;;  %v266_v44 = vadd.f32 %v667_v3, %v198_v36  ;;  %v267_v45 = vadd.f32 %v667_v3, %v199_v37 }
  0x44   :  { %454 = vst.msk [vmem:[%s1149_s3 + $0xbc] sm:$0xf] %vm406_vm0, %v389_v23  ;;  %v328_v46 = vmax.f32 %v264_v38, 0.0  ;;  %v329_v47 = vmax.f32 %v265_v39, 0.0  ;;  %v268_v48 = vadd.f32 %v667_v3, %v200_v40  ;;  %v269_v49 = vadd.f32 %v667_v3, %v201_v41 }
  0x45   :  { %v390_v51 = vpack.c.bf16 %v326_v42, %v326_v42  ;;  %v391_v52 = vpack.c.bf16 %v327_v43, %v327_v43  ;;  %v330_v53 = vmax.f32 %v266_v44, 0.0  ;;  %v331_v54 = vmax.f32 %v267_v45, 0.0 }
  0x46   :  { %v392_v56 = vpack.c.bf16 %v328_v46, %v328_v46  ;;  %v393_v57 = vpack.c.bf16 %v329_v47, %v329_v47  ;;  %v332_v58 = vmax.f32 %v268_v48, 0.0  ;;  %v333_v59 = vmax.f32 %v269_v49, 0.0 }
  0x47   :  { %455 = vst.msk [vmem:[%s1149_s3 + $0xc0] sm:$0xf] %vm406_vm0, %v390_v51  ;;  %v394_v61 = vpack.c.bf16 %v330_v53, %v330_v53  ;;  %v395_v62 = vpack.c.bf16 %v331_v54, %v331_v54  ;;  %v589_v63 = vunpack.c.l.bf16 %v630_v50  ;;  %v590_v0 = vunpack.c.h.bf16 %v630_v50 }
  0x48   :  { %456 = vst.msk [vmem:[%s1149_s3 + $0xc4] sm:$0xf] %vm406_vm0, %v391_v52  ;;  %v396_v4 = vpack.c.bf16 %v332_v58, %v332_v58  ;;  %v397_v5 = vpack.c.bf16 %v333_v59, %v333_v59  ;;  %v593_v6 = vunpack.c.l.bf16 %v631_v55  ;;  %v594_v7 = vunpack.c.h.bf16 %v631_v55 }
  0x49   :  { %457 = vst.msk [vmem:[%s1149_s3 + $0xc8] sm:$0xf] %vm406_vm0, %v392_v56  ;;  %v202_v8 = vmul.f32 %v662_v1, %v589_v63  ;;  %v203_v9 = vmul.f32 %v662_v1, %v590_v0  ;;  %v597_v10 = vunpack.c.l.bf16 %v632_v60  ;;  %v598_v11 = vunpack.c.h.bf16 %v632_v60 }
  0x4a   :  { %458 = vst.msk [vmem:[%s1149_s3 + $0xcc] sm:$0xf] %vm406_vm0, %v393_v57  ;;  %v204_v12 = vmul.f32 %v662_v1, %v593_v6  ;;  %v205_v13 = vmul.f32 %v662_v1, %v594_v7  ;;  %v601_v14 = vunpack.c.l.bf16 %v633_v2  ;;  %v602_v15 = vunpack.c.h.bf16 %v633_v2 }
  0x4b   :  { %459 = vst.msk [vmem:[%s1149_s3 + $0xd0] sm:$0xf] %vm406_vm0, %v394_v61  ;;  %v270_v16 = vadd.f32 %v667_v3, %v202_v8  ;;  %v271_v17 = vadd.f32 %v667_v3, %v203_v9  ;;  %v206_v18 = vmul.f32 %v662_v1, %v597_v10  ;;  %v207_v19 = vmul.f32 %v662_v1, %v598_v11 }
  0x4c   :  { %460 = vst.msk [vmem:[%s1149_s3 + $0xd4] sm:$0xf] %vm406_vm0, %v395_v62  ;;  %v272_v20 = vadd.f32 %v667_v3, %v204_v12  ;;  %v273_v21 = vadd.f32 %v667_v3, %v205_v13  ;;  %v208_v22 = vmul.f32 %v662_v1, %v601_v14  ;;  %v209_v23 = vmul.f32 %v662_v1, %v602_v15 }
  0x4d   :  { %461 = vst.msk [vmem:[%s1149_s3 + $0xd8] sm:$0xf] %vm406_vm0, %v396_v4  ;;  %v334_v24 = vmax.f32 %v270_v16, 0.0  ;;  %v335_v25 = vmax.f32 %v271_v17, 0.0  ;;  %v274_v26 = vadd.f32 %v667_v3, %v206_v18  ;;  %v275_v27 = vadd.f32 %v667_v3, %v207_v19 }
  0x4e   :  { %462 = vst.msk [vmem:[%s1149_s3 + $0xdc] sm:$0xf] %vm406_vm0, %v397_v5  ;;  %v336_v28 = vmax.f32 %v272_v20, 0.0  ;;  %v337_v29 = vmax.f32 %v273_v21, 0.0  ;;  %v276_v1 = vadd.f32 %v667_v3, %v208_v22  ;;  %v277_v30 = vadd.f32 %v667_v3, %v209_v23 }
  0x4f   :  { %v398_v31 = vpack.c.bf16 %v334_v24, %v334_v24  ;;  %v399_v32 = vpack.c.bf16 %v335_v25, %v335_v25  ;;  %v338_v33 = vmax.f32 %v274_v26, 0.0  ;;  %v339_v34 = vmax.f32 %v275_v27, 0.0 }
  0x50   :  { %v400_v35 = vpack.c.bf16 %v336_v28, %v336_v28  ;;  %v401_v36 = vpack.c.bf16 %v337_v29, %v337_v29  ;;  %v340_v37 = vmax.f32 %v276_v1, 0.0  ;;  %v341_v38 = vmax.f32 %v277_v30, 0.0 }
  0x51   :  { %463 = vst.msk [vmem:[%s1149_s3 + $0xe0] sm:$0xf] %vm406_vm0, %v398_v31  ;;  %v402_v39 = vpack.c.bf16 %v338_v33, %v338_v33  ;;  %v403_v3 = vpack.c.bf16 %v339_v34, %v339_v34 }
  0x52   :  { %464 = vst.msk [vmem:[%s1149_s3 + $0xe4] sm:$0xf] %vm406_vm0, %v399_v32  ;;  %v404_v40 = vpack.c.bf16 %v340_v37, %v340_v37  ;;  %v405_v41 = vpack.c.bf16 %v341_v38, %v341_v38 }
  0x53   :  { %465 = vst.msk [vmem:[%s1149_s3 + $0xe8] sm:$0xf] %vm406_vm0, %v400_v35 }
  0x54   :  { %466 = vst.msk [vmem:[%s1149_s3 + $0xec] sm:$0xf] %vm406_vm0, %v401_v36 }
  0x55   :  { %467 = vst.msk [vmem:[%s1149_s3 + $0xf0] sm:$0xf] %vm406_vm0, %v402_v39 }
  0x56   :  { %468 = vst.msk [vmem:[%s1149_s3 + $0xf4] sm:$0xf] %vm406_vm0, %v403_v3 }
  0x57   :  { %469 = vst.msk [vmem:[%s1149_s3 + $0xf8] sm:$0xf] %vm406_vm0, %v404_v40 }
  0x58   :  { %470 = vst.msk [vmem:[%s1149_s3 + $0xfc] sm:$0xf] %vm406_vm0, %v405_v41 }

// kernel: lsun_decoder_forward.17
= control target key start
LH: loop header
LB: loop body
LE: loop exit
PB: predicated region body
PF: predicated region fallthrough
CT: control target
= control target key end

     0   :  { %s796_s9 = smov 0   ;;  %s932_s0 = inlined_call_operand.vmem [shape: bf16[2048,72], index: 0, kind: input, shape index: {}]   ;;  %s933_s1 = inlined_call_operand.vmem [shape: bf16[72,12], index: 1, kind: input, shape index: {}]   ;;  %s934_s2 = inlined_call_operand.vmem [shape: f32[2048,12], index: 2, kind: output, shape index: {}]  }
   0x1 LB: > { %s559_s10 = sadd.s32 4294967295, %s779_s9   ;;  %p563_p0 = scmp.ge.s32.totalorder %s779_s9, 1  ;;  %s779_s9 = sphi %s796_s9, %s12_s9  }
   0x2   : > { %p113_p1 = scmp.lt.s32.totalorder %s779_s9, 9 }
   0x4   : > { %p114_p2 = pnand %p563_p0, %p113_p1 }
   0x5   : > { %s564_s13 = sshll.u32 (!%p114_p2), %s559_s10, 5 }
   0x6   : > { %117 = sbr.rel (%p114_p2) target bundleno = 234 (0xea), region = 28  ;;  %p136_p3 = scmp.lt.s32.totalorder (!%p114_p2), %s564_s13, 255 }
   0xb   : > { %v188_v0 = vld [vmem:[%s933_s1 + $0x20] sm:$0xf]  ;;  %vm345_vm0 = vcmask 1043456   ;;  %v685_v4 = vld [vmem:[%s933_s1 + $0x18] sm:$0xff]  ;;  %v684_v5 = vld [vmem:[%s933_s1 + $0x10] sm:$0xff]  ;;  %s936_s13 = smov (!%p136_p3, %s564_s13), 255 }
   0xc   : > { %v286_v1 = vunpack.c.l.b16 %v188_v0  ;;  %v683_v6 = vld [vmem:[%s933_s1 + $0x8] sm:$0xff]  ;;  %s565_s20 = sshll.u32 %s936_s13, 2  ;;  %v682_v7 = vld [vmem:[%s933_s1] sm:$0xff]  ;;  %vm296_vm1 = vcmask 588800   ;;  %s567_s26 = sshll.u32 %s936_s13, 3  ;;  %vm470_vm2 = vcmask 97280  }
   0xd   : > { %s825_s25 = scalar_lea.vmem %s932_s0, %s565_s20  ;;  %s863_s29 = scalar_lea.vmem %s934_s2, %s567_s26 }
   0xe   : > { %v291_v2 = vpack.c.b16 %v286_v1, %v286_v1  ;;  %v666_v8 = vld [vmem:[%s825_s25] sm:$0xff]  ;;  %v667_v12 = vld [vmem:[%s825_s25 + $0x8] sm:$0xff]  ;;  %v668_v16 = vld [vmem:[%s825_s25 + $0x10] sm:$0xff] }
   0xf   : > { %v670_v9 = vld [vmem:[%s825_s25 + $0x20] sm:$0xff]  ;;  %v671_v13 = vld [vmem:[%s825_s25 + $0x28] sm:$0xff]  ;;  %v672_v17 = vld [vmem:[%s825_s25 + $0x30] sm:$0xff] }
  0x10   : > { %v347_v3 = vsel %vm345_vm0, %v291_v2, 0  ;;  %v674_v10 = vld [vmem:[%s825_s25 + $0x40] sm:$0xff]  ;;  %v675_v14 = vld [vmem:[%s825_s25 + $0x48] sm:$0xff]  ;;  %v676_v18 = vld [vmem:[%s825_s25 + $0x50] sm:$0xff] }
  0x11   : > { %352 = vmatpush.bf16.msra.mxu0 %v347_v3  ;;  %686 = vmatpush.bf16.msra.mxu1 %v347_v3  ;;  %v678_v11 = vld [vmem:[%s825_s25 + $0x60] sm:$0xff]  ;;  %v679_v15 = vld [vmem:[%s825_s25 + $0x68] sm:$0xff]  ;;  %v680_v19 = vld [vmem:[%s825_s25 + $0x70] sm:$0xff] }
  0x12   : > { %687 = vmatpush.bf16.msra.mxu2 %v347_v3  ;;  %688 = vmatpush.bf16.msra.mxu3 %v347_v3  ;;  %v669_v20 = vld [vmem:[%s825_s25 + $0x18] sm:$0xff] }
  0x13   : > { %v673_v21 = vld [vmem:[%s825_s25 + $0x38] sm:$0xff] }
  0x14   : > { %v677_v22 = vld [vmem:[%s825_s25 + $0x58] sm:$0xff] }
  0x15   : > { %353 = vmatpush.bf16.msra.mxu0 %v685_v4  ;;  %689 = vmatpush.bf16.msra.mxu1 %v685_v4  ;;  %v681_v23 = vld [vmem:[%s825_s25 + $0x78] sm:$0xff] }
  0x16   : > { %690 = vmatpush.bf16.msra.mxu2 %v685_v4  ;;  %691 = vmatpush.bf16.msra.mxu3 %v685_v4 }
  0x19   : > { %354 = vmatpush.bf16.msra.mxu0 %v684_v5  ;;  %692 = vmatpush.bf16.msra.mxu1 %v684_v5 }
  0x1a   : > { %693 = vmatpush.bf16.msra.mxu2 %v684_v5  ;;  %694 = vmatpush.bf16.msra.mxu3 %v684_v5 }
  0x1d   : > { %355 = vmatpush.bf16.msra.mxu0 %v683_v6  ;;  %695 = vmatpush.bf16.msra.mxu1 %v683_v6 }
  0x1e   : > { %696 = vmatpush.bf16.msra.mxu2 %v683_v6  ;;  %697 = vmatpush.bf16.msra.mxu3 %v683_v6 }
  0x21   : > { %356 = vmatpush.bf16.msra.mxu0 %v682_v7  ;;  %698 = vmatpush.bf16.msra.mxu1 %v682_v7 }
  0x22   : > { %699 = vmatpush.bf16.msra.mxu2 %v682_v7  ;;  %700 = vmatpush.bf16.msra.mxu3 %v682_v7 }
  0x24   : > { %648 = vmatmul.msk.bf16.vlgmr.msra.gmra.mxu0 %vm296_vm1, %v666_v8  ;;  %652 = vmatmul.msk.bf16.vlgmr.msra.gmra.mxu1 %vm296_vm1, %v670_v9 }
  0x25   : > { %656 = vmatmul.msk.bf16.vlgmr.msra.gmra.mxu2 %vm296_vm1, %v674_v10  ;;  %660 = vmatmul.msk.bf16.vlgmr.msra.gmra.mxu3 %vm296_vm1, %v678_v11 }
  0x34   : > { %649 = vmatmul.msk.bf16.gmra.mxu0 %vm296_vm1, %v667_v12  ;;  %653 = vmatmul.msk.bf16.gmra.mxu1 %vm296_vm1, %v671_v13 }
  0x35   : > { %657 = vmatmul.msk.bf16.gmra.mxu2 %vm296_vm1, %v675_v14  ;;  %661 = vmatmul.msk.bf16.gmra.mxu3 %vm296_vm1, %v679_v15 }
  0x44   : > { %650 = vmatmul.msk.bf16.gmra.mxu0 %vm296_vm1, %v668_v16  ;;  %654 = vmatmul.msk.bf16.gmra.mxu1 %vm296_vm1, %v672_v17 }
  0x45   : > { %658 = vmatmul.msk.bf16.gmra.mxu2 %vm296_vm1, %v676_v18  ;;  %662 = vmatmul.msk.bf16.gmra.mxu3 %vm296_vm1, %v680_v19 }
  0x54   : > { %651 = vmatmul.msk.bf16.gmra.mxu0 %vm296_vm1, %v669_v20  ;;  %655 = vmatmul.msk.bf16.gmra.mxu1 %vm296_vm1, %v673_v21 }
  0x55   : > { %659 = vmatmul.msk.bf16.gmra.mxu2 %vm296_vm1, %v677_v22  ;;  %663 = vmatmul.msk.bf16.gmra.mxu3 %vm296_vm1, %v681_v23 }
  0xa1   : > { %v358_v24 = vpop.f32.mrf.mxu0  ;;  %v378_v25 = vpop.f32.mrf.mxu1 }
  0xa2   : > { %709 = vtanh.f32 %v358_v24 }
  0xa3   : > { %711 = vtanh.f32 %v378_v25 }
  0xa8   : > { %v710_v26 = vpop.eup %709  ;;  %v398_v27 = vpop.f32.mrf.mxu2 }
  0xa9   : > { %v418_v28 = vpop.f32.mrf.mxu3  ;;  %v712_v29 = vpop.eup %711  ;;  %471 = vst.msk [vmem:[%s863_s29] sm:$0xff] %vm470_vm2, %v710_v26  ;;  %713 = vtanh.f32 %v398_v27 }
  0xaa   : > { %v360_v30 = vpop.f32.mrf.mxu0  ;;  %v380_v31 = vpop.f32.mrf.mxu1  ;;  %479 = vst.msk [vmem:[%s863_s29 + $0x40] sm:$0xff] %vm470_vm2, %v712_v29  ;;  %715 = vtanh.f32 %v418_v28 }
  0xab   : > { %717 = vtanh.f32 %v360_v30 }
  0xac   : > { %719 = vtanh.f32 %v380_v31 }
  0xaf   : > { %v714_v32 = vpop.eup %713 }
  0xb0   : > { %v716_v33 = vpop.eup %715  ;;  %487 = vst.msk [vmem:[%s863_s29 + $0x80] sm:$0xff] %vm470_vm2, %v714_v32  ;;  %v400_v34 = vpop.f32.mrf.mxu2 }
  0xb1   : > { %v420_v35 = vpop.f32.mrf.mxu3  ;;  %v718_v36 = vpop.eup %717  ;;  %495 = vst.msk [vmem:[%s863_s29 + $0xc0] sm:$0xff] %vm470_vm2, %v716_v33  ;;  %721 = vtanh.f32 %v400_v34 }
  0xb2   : > { %v363_v37 = vpop.f32.mrf.mxu0  ;;  %v383_v38 = vpop.f32.mrf.mxu1  ;;  %472 = vst.msk [vmem:[%s863_s29 + $0x8] sm:$0xff] %vm470_vm2, %v718_v36  ;;  %723 = vtanh.f32 %v420_v35 }
  0xb3   : > { %v720_v39 = vpop.eup %719  ;;  %725 = vtanh.f32 %v363_v37 }
  0xb4   : > { %480 = vst.msk [vmem:[%s863_s29 + $0x48] sm:$0xff] %vm470_vm2, %v720_v39  ;;  %727 = vtanh.f32 %v383_v38 }
  0xb7   : > { %v722_v40 = vpop.eup %721 }
  0xb8   : > { %v724_v41 = vpop.eup %723  ;;  %488 = vst.msk [vmem:[%s863_s29 + $0x88] sm:$0xff] %vm470_vm2, %v722_v40  ;;  %v403_v42 = vpop.f32.mrf.mxu2 }
  0xb9   : > { %v423_v43 = vpop.f32.mrf.mxu3  ;;  %v726_v44 = vpop.eup %725  ;;  %496 = vst.msk [vmem:[%s863_s29 + $0xc8] sm:$0xff] %vm470_vm2, %v724_v41  ;;  %729 = vtanh.f32 %v403_v42 }
  0xba   : > { %v365_v45 = vpop.f32.mrf.mxu0  ;;  %v385_v46 = vpop.f32.mrf.mxu1  ;;  %473 = vst.msk [vmem:[%s863_s29 + $0x10] sm:$0xff] %vm470_vm2, %v726_v44  ;;  %731 = vtanh.f32 %v423_v43 }
  0xbb   : > { %v728_v47 = vpop.eup %727  ;;  %733 = vtanh.f32 %v365_v45 }
  0xbc   : > { %481 = vst.msk [vmem:[%s863_s29 + $0x50] sm:$0xff] %vm470_vm2, %v728_v47  ;;  %735 = vtanh.f32 %v385_v46 }
  0xbf   : > { %v730_v48 = vpop.eup %729 }
  0xc0   : > { %v732_v49 = vpop.eup %731  ;;  %489 = vst.msk [vmem:[%s863_s29 + $0x90] sm:$0xff] %vm470_vm2, %v730_v48  ;;  %v405_v50 = vpop.f32.mrf.mxu2 }
  0xc1   : > { %v425_v51 = vpop.f32.mrf.mxu3  ;;  %v734_v52 = vpop.eup %733  ;;  %497 = vst.msk [vmem:[%s863_s29 + $0xd0] sm:$0xff] %vm470_vm2, %v732_v49  ;;  %737 = vtanh.f32 %v405_v50 }
  0xc2   : > { %v368_v53 = vpop.f32.mrf.mxu0  ;;  %v388_v54 = vpop.f32.mrf.mxu1  ;;  %474 = vst.msk [vmem:[%s863_s29 + $0x18] sm:$0xff] %vm470_vm2, %v734_v52  ;;  %739 = vtanh.f32 %v425_v51 }
  0xc3   : > { %v736_v55 = vpop.eup %735  ;;  %741 = vtanh.f32 %v368_v53 }
  0xc4   : > { %482 = vst.msk [vmem:[%s863_s29 + $0x58] sm:$0xff] %vm470_vm2, %v736_v55  ;;  %743 = vtanh.f32 %v388_v54 }
  0xc7   : > { %v738_v56 = vpop.eup %737 }
  0xc8   : > { %v740_v57 = vpop.eup %739  ;;  %490 = vst.msk [vmem:[%s863_s29 + $0x98] sm:$0xff] %vm470_vm2, %v738_v56  ;;  %v408_v58 = vpop.f32.mrf.mxu2 }
  0xc9   : > { %v428_v59 = vpop.f32.mrf.mxu3  ;;  %v742_v60 = vpop.eup %741  ;;  %498 = vst.msk [vmem:[%s863_s29 + $0xd8] sm:$0xff] %vm470_vm2, %v740_v57  ;;  %745 = vtanh.f32 %v408_v58 }
  0xca   : > { %v370_v61 = vpop.f32.mrf.mxu0  ;;  %v390_v62 = vpop.f32.mrf.mxu1  ;;  %475 = vst.msk [vmem:[%s863_s29 + $0x20] sm:$0xff] %vm470_vm2, %v742_v60  ;;  %747 = vtanh.f32 %v428_v59 }
  0xcb   : > { %v744_v63 = vpop.eup %743  ;;  %749 = vtanh.f32 %v370_v61 }
  0xcc   : > { %483 = vst.msk [vmem:[%s863_s29 + $0x60] sm:$0xff] %vm470_vm2, %v744_v63  ;;  %751 = vtanh.f32 %v390_v62 }
  0xcf   : > { %v746_v0 = vpop.eup %745 }
  0xd0   : > { %v748_v1 = vpop.eup %747  ;;  %491 = vst.msk [vmem:[%s863_s29 + $0xa0] sm:$0xff] %vm470_vm2, %v746_v0  ;;  %v410_v2 = vpop.f32.mrf.mxu2 }
  0xd1   : > { %v430_v3 = vpop.f32.mrf.mxu3  ;;  %v750_v4 = vpop.eup %749  ;;  %499 = vst.msk [vmem:[%s863_s29 + $0xe0] sm:$0xff] %vm470_vm2, %v748_v1  ;;  %753 = vtanh.f32 %v410_v2 }
  0xd2   : > { %v373_v5 = vpop.f32.mrf.mxu0  ;;  %v393_v6 = vpop.f32.mrf.mxu1  ;;  %476 = vst.msk [vmem:[%s863_s29 + $0x28] sm:$0xff] %vm470_vm2, %v750_v4  ;;  %755 = vtanh.f32 %v430_v3 }
  0xd3   : > { %v752_v7 = vpop.eup %751  ;;  %757 = vtanh.f32 %v373_v5 }
  0xd4   : > { %484 = vst.msk [vmem:[%s863_s29 + $0x68] sm:$0xff] %vm470_vm2, %v752_v7  ;;  %759 = vtanh.f32 %v393_v6 }
  0xd7   : > { %v754_v8 = vpop.eup %753 }
  0xd8   : > { %v756_v9 = vpop.eup %755  ;;  %492 = vst.msk [vmem:[%s863_s29 + $0xa8] sm:$0xff] %vm470_vm2, %v754_v8  ;;  %v413_v10 = vpop.f32.mrf.mxu2 }
  0xd9   : > { %v433_v11 = vpop.f32.mrf.mxu3  ;;  %v758_v12 = vpop.eup %757  ;;  %500 = vst.msk [vmem:[%s863_s29 + $0xe8] sm:$0xff] %vm470_vm2, %v756_v9  ;;  %761 = vtanh.f32 %v413_v10 }
  0xda   : > { %v375_v13 = vpop.f32.mrf.mxu0  ;;  %v395_v14 = vpop.f32.mrf.mxu1  ;;  %477 = vst.msk [vmem:[%s863_s29 + $0x30] sm:$0xff] %vm470_vm2, %v758_v12  ;;  %763 = vtanh.f32 %v433_v11 }
  0xdb   : > { %v760_v15 = vpop.eup %759  ;;  %765 = vtanh.f32 %v375_v13 }
  0xdc   : > { %485 = vst.msk [vmem:[%s863_s29 + $0x70] sm:$0xff] %vm470_vm2, %v760_v15  ;;  %767 = vtanh.f32 %v395_v14 }
  0xdf   : > { %v762_v16 = vpop.eup %761 }
  0xe0   : > { %v764_v17 = vpop.eup %763  ;;  %493 = vst.msk [vmem:[%s863_s29 + $0xb0] sm:$0xff] %vm470_vm2, %v762_v16  ;;  %v415_v18 = vpop.f32.mrf.mxu2 }
  0xe1   : > { %v435_v19 = vpop.f32.mrf.mxu3  ;;  %v766_v20 = vpop.eup %765  ;;  %501 = vst.msk [vmem:[%s863_s29 + $0xf0] sm:$0xff] %vm470_vm2, %v764_v17  ;;  %769 = vtanh.f32 %v415_v18 }
  0xe2   : > { %v768_v21 = vpop.eup %767  ;;  %478 = vst.msk [vmem:[%s863_s29 + $0x38] sm:$0xff] %vm470_vm2, %v766_v20  ;;  %771 = vtanh.f32 %v435_v19 }
  0xe3   : > { %486 = vst.msk [vmem:[%s863_s29 + $0x78] sm:$0xff] %vm470_vm2, %v768_v21 }
  0xe7   : > { %v770_v22 = vpop.eup %769 }
  0xe8   : > { %v772_v23 = vpop.eup %771  ;;  %494 = vst.msk [vmem:[%s863_s29 + $0xb8] sm:$0xff] %vm470_vm2, %v770_v22 }
  0xe9   : > { %502 = vst.msk [vmem:[%s863_s29 + $0xf8] sm:$0xff] %vm470_vm2, %v772_v23 }
  0xea PF: > { %s12_s9 = sadd.s32 1, %s779_s9  }
  0xeb   : > { %p9_p4 = scmp.ge.s32.totalorder %s12_s9, 10  }
  0xed   :  { %11 = sbr.rel (!%p9_p4) target bundleno = 1 (0x1), region = 58 }

</bundles_post_ra>
